<compile_context>
chip_gen: v7x
topology: tpu7x:2x2x1
jax: 0.10.0
libtpu: 0.0.40
codegen_flags: <defaults>
</compile_context>

<pallas_src>
import functools

import jax
import jax.numpy as jnp
from jax.experimental import pallas as pl
from jax.experimental.pallas import tpu as pltpu


# Row-tile target in pixels (TH * padded width).  ~512 px keeps the
# double-buffered working set tiny on every generation (v7x has only 64 MiB of
# VMEM); bump toward 2048-4096 for large images on v5e/v6e.
_TARGET_PX = 512

_COMPILER_PARAMS = pltpu.CompilerParams(
    dimension_semantics=("parallel", "parallel"),   # (batch, row-tile)
    vmem_limit_bytes=48 * 1024 * 1024,              # leaves headroom on v7x
)


# ----------------------------------------------------------------------------
# stride-1 Pallas kernels (halo rows + folded-tap single MXU matmul)
# ----------------------------------------------------------------------------

def _tap_slices(xa, xb2, th, w_ext, c):
    """The 9 3x3-tap views of a row tile, each flattened to (th*w_ext, c).

    xa  : (th, w_ext + 2, c)  rows [r*th, (r+1)*th) of the zero-padded image
    xb2 : (2,  w_ext + 2, c)  the two halo rows directly below the tile
    """
    halo = jnp.concatenate([xa, xb2], axis=0)              # (th+2, w_ext+2, c)
    return [halo[di:di + th, dj:dj + w_ext, :].reshape(th * w_ext, c)
            for di in range(3) for dj in range(3)]


def _conv_kernel(xa_ref, xb_ref, w_ref, b_ref, o_ref, *, th, w_ext, c):
    """Plain 3x3 conv + bias + ReLU for one (batch, row-tile) block."""
    taps = _tap_slices(xa_ref[0], xb_ref[0, :2], th, w_ext, c)
    tm = jnp.concatenate([t.astype(jnp.bfloat16) for t in taps], axis=-1)
    acc = jnp.dot(tm, w_ref[...], preferred_element_type=jnp.float32)
    o_ref[0] = jnp.maximum(acc + b_ref[...], 0.0)


def _pac_kernel(xa_ref, xb_ref, k_ref, w_ref, b_ref, o_ref, *, th, w_ext, c):
    """PAC conv + bias + ReLU with a precomputed per-pixel kernel k (P, 9)."""
    taps = _tap_slices(xa_ref[0], xb_ref[0, :2], th, w_ext, c)
    k = k_ref[0]                                           # (P, 9) f32
    tm = jnp.concatenate(
        [(taps[t] * k[:, t:t + 1]).astype(jnp.bfloat16) for t in range(9)],
        axis=-1)
    acc = jnp.dot(tm, w_ref[...], preferred_element_type=jnp.float32)
    o_ref[0] = jnp.maximum(acc + b_ref[...], 0.0)


def _pac_first_kernel(xa_ref, xb_ref, w_ref, b_ref, o_ref, k_ref, *,
                      th, w_ext, c, coeff):
    """First PAC conv of a level: builds the Gaussian adapting kernel from its
    own input (guide = coeff * input, fused into the exponent), applies it and
    writes it out as a second output."""
    taps = _tap_slices(xa_ref[0], xb_ref[0, :2], th, w_ext, c)
    center = taps[4]                                       # 3x3 window center
    scale = -0.5 * coeff * coeff
    cols = []
    for t in range(9):
        d = taps[t] - center
        kt = jnp.exp(scale * jnp.sum(d * d, axis=-1, keepdims=True))  # (P, 1)
        k_ref[0, :, t:t + 1] = kt
        cols.append((taps[t] * kt).astype(jnp.bfloat16))
    tm = jnp.concatenate(cols, axis=-1)
    acc = jnp.dot(tm, w_ref[...], preferred_element_type=jnp.float32)
    o_ref[0] = jnp.maximum(acc + b_ref[...], 0.0)


# ----------------------------------------------------------------------------
# stride-2 Pallas kernels (parity-plane taps, decimated output computed
# directly -- no wasted full-resolution compute / stores)
# ----------------------------------------------------------------------------

def _shift_rows(main, nxt):
    """Rows [1, tho] of an even-row plane: drop row 0, append 1st halo row."""
    if main.shape[0] == 1:
        return nxt[:1]
    return jnp.concatenate([main[1:], nxt[:1]], axis=0)


def _s2_tap_slices(ee, een, eo, eon, oe, oo, tho, we, c):
    """The 9 taps of a stride-2 3x3 conv from parity planes, flattened.

    Output pixel (i, j) reads padded input (2i+di, 2j+dj):
      di = 0, 2 -> even rows (ee/eo planes, plane rows i and i+1)
      di = 1    -> odd rows  (oe/oo planes, plane row i)
      dj = 0, 2 -> even cols (plane cols j and j+1)
      dj = 1    -> odd cols  (plane col j)
    Every slice is contiguous; no strided vector ops in the kernel.
    """
    ee2 = _shift_rows(ee, een)
    eo2 = _shift_rows(eo, eon)
    rows = {0: (ee, eo), 1: (oe, oo), 2: (ee2, eo2)}
    taps = []
    for di in range(3):
        even_col, odd_col = rows[di]
        for dj in range(3):
            src, j0 = (odd_col, 0) if dj == 1 else (even_col, dj // 2)
            taps.append(src[:, j0:j0 + we, :].reshape(tho * we, c))
    return taps


def _conv_s2_kernel(ee_ref, een_ref, eo_ref, eon_ref, oe_ref, oo_ref,
                    w_ref, b_ref, o_ref, *, tho, we, c):
    taps = _s2_tap_slices(ee_ref[0], een_ref[0], eo_ref[0], eon_ref[0],
                          oe_ref[0], oo_ref[0], tho, we, c)
    tm = jnp.concatenate([t.astype(jnp.bfloat16) for t in taps], axis=-1)
    acc = jnp.dot(tm, w_ref[...], preferred_element_type=jnp.float32)
    o_ref[0] = jnp.maximum(acc + b_ref[...], 0.0)


def _pac_s2_kernel(ee_ref, een_ref, eo_ref, eon_ref, oe_ref, oo_ref,
                   k_ref, w_ref, b_ref, o_ref, *, tho, we, c):
    taps = _s2_tap_slices(ee_ref[0], een_ref[0], eo_ref[0], eon_ref[0],
                          oe_ref[0], oo_ref[0], tho, we, c)
    k = k_ref[0]                                           # (P, 9) f32
    tm = jnp.concatenate(
        [(taps[t] * k[:, t:t + 1]).astype(jnp.bfloat16) for t in range(9)],
        axis=-1)
    acc = jnp.dot(tm, w_ref[...], preferred_element_type=jnp.float32)
    o_ref[0] = jnp.maximum(acc + b_ref[...], 0.0)


# ----------------------------------------------------------------------------
# Wrappers (tiling geometry, BlockSpecs, crops)
# ----------------------------------------------------------------------------

def _round_up(n, m):
    return (n + m - 1) // m * m


def _row_tile(h, w_ext, target_px=_TARGET_PX):
    divisors = [t for t in range(2, h + 1) if h % t == 0]
    fitting = [t for t in divisors if t * w_ext <= target_px]
    if fitting:
        return max(fitting)
    return min(divisors) if divisors else h


def _prep_wb(w, b):
    cin, cout = w.shape[1], w.shape[2]
    return (w.reshape(9 * cin, cout).astype(jnp.bfloat16),
            b.reshape(1, cout).astype(jnp.float32))


def _conv_geometry(x):
    """Zero-pad x (B,H,W,C) for the row-tiled stride-1 3x3 / pad-1 conv."""
    B, H, W, C = x.shape
    if H < 2:
        raise ValueError("HeadPac Pallas kernels need spatial height >= 2")
    w_ext = _round_up(W, 8)            # (8,128)-friendly extended output width
    th = _row_tile(H, w_ext)
    n_tiles = H // th
    hb = 2 if th % 2 == 0 else th      # row-block size of the halo operand
    xp = jnp.pad(x, ((0, 0), (1, th - 1), (1, w_ext + 1 - W), (0, 0)))
    return xp, th, hb, n_tiles, w_ext


def _specs(th, hb, w_ext, cin, cout):
    wp = w_ext + 2
    xa = pl.BlockSpec((1, th, wp, cin), lambda b, r: (b, r, 0, 0))
    # Same padded array, next row block: supplies the 2-row halo below the
    # tile (only its first two rows are read by the kernel).
    xb = pl.BlockSpec((1, hb, wp, cin),
                      lambda b, r, m=th // hb: (b, (r + 1) * m, 0, 0))
    ws = pl.BlockSpec((9 * cin, cout), lambda b, r: (0, 0))
    bs = pl.BlockSpec((1, cout), lambda b, r: (0, 0))
    return xa, xb, ws, bs


def _s2_geometry(x):
    """Space-to-depth split of the zero-padded input for stride-2 convs.

    Returns four parity planes of shape (B, (n_tiles+1)*tho, we+1, C) so that
    every tap inside the kernel is a contiguous slice of one plane.
    """
    B, H, W, C = x.shape
    Ho, Wo = (H + 1) // 2, (W + 1) // 2
    we = _round_up(Wo, 8)
    tho = _row_tile(Ho, we)
    n_tiles = Ho // tho
    hp = 2 * (n_tiles + 1) * tho       # padded rows (even; even-row halo fits)
    wp = 2 * (we + 1)                  # padded cols (even)
    xp = jnp.pad(x, ((0, 0), (1, hp - H - 1), (1, wp - W - 1), (0, 0)))
    ee = xp[:, 0::2, 0::2, :]          # even rows, even cols
    eo = xp[:, 0::2, 1::2, :]          # even rows, odd  cols
    oe = xp[:, 1::2, 0::2, :]          # odd  rows, even cols
    oo = xp[:, 1::2, 1::2, :]          # odd  rows, odd  cols
    return (ee, eo, oe, oo), tho, n_tiles, we, Ho, Wo


def _s2_specs(tho, we, cin, cout):
    wc = we + 1
    main = pl.BlockSpec((1, tho, wc, cin), lambda b, r: (b, r, 0, 0))
    nxt = pl.BlockSpec((1, tho, wc, cin), lambda b, r: (b, r + 1, 0, 0))
    ws = pl.BlockSpec((9 * cin, cout), lambda b, r: (0, 0))
    bs = pl.BlockSpec((1, cout), lambda b, r: (0, 0))
    return main, nxt, ws, bs


def _decimate_kernel(k, H, W, we):
    """(B, H*w_ext, 9) full-res adapting kernel -> (B, ceil(H/2)*we, 9) at the
    even-pixel positions (== the PyTorch k[..., ::2, ::2])."""
    B = k.shape[0]
    w_ext = _round_up(W, 8)
    kd = k.reshape(B, H, w_ext, 9)[:, ::2, ::2, :]
    kw = kd.shape[2]
    if kw < we:
        kd = jnp.pad(kd, ((0, 0), (0, 0), (0, we - kw), (0, 0)))
    elif kw > we:
        kd = kd[:, :, :we, :]
    return kd.reshape(B, kd.shape[1] * we, 9)


def conv3x3_relu(x, w, b, stride=1):
    """3x3 conv (padding=1, stride 1 or 2) + bias + ReLU.  w: (9, Cin, Cout)."""
    if stride == 2:
        return _conv3x3_relu_s2(x, w, b)
    B, H, W, Cin = x.shape
    Cout = w.shape[-1]
    xp, th, hb, n_tiles, w_ext = _conv_geometry(x)
    wf, bf = _prep_wb(w, b)
    xa, xb, ws, bs = _specs(th, hb, w_ext, Cin, Cout)
    out = pl.pallas_call(
        functools.partial(_conv_kernel, th=th, w_ext=w_ext, c=Cin),
        out_shape=jax.ShapeDtypeStruct((B, H * w_ext, Cout), jnp.float32),
        grid=(B, n_tiles),
        in_specs=[xa, xb, ws, bs],
        out_specs=pl.BlockSpec((1, th * w_ext, Cout), lambda bb, r: (bb, r, 0)),
        compiler_params=_COMPILER_PARAMS,
    )(xp, xp, wf, bf)
    return out.reshape(B, H, w_ext, Cout)[:, :, :W, :]


def _conv3x3_relu_s2(x, w, b):
    """Native stride-2 3x3 conv + bias + ReLU (decimated output computed
    directly; 4x less MXU work and output DMA than compute-then-subsample)."""
    B, H, W, Cin = x.shape
    Cout = w.shape[-1]
    (ee, eo, oe, oo), tho, n_tiles, we, Ho, Wo = _s2_geometry(x)
    wf, bf = _prep_wb(w, b)
    main, nxt, ws, bs = _s2_specs(tho, we, Cin, Cout)
    out = pl.pallas_call(
        functools.partial(_conv_s2_kernel, tho=tho, we=we, c=Cin),
        out_shape=jax.ShapeDtypeStruct((B, Ho * we, Cout), jnp.float32),
        grid=(B, n_tiles),
        in_specs=[main, nxt, main, nxt, main, main, ws, bs],
        out_specs=pl.BlockSpec((1, tho * we, Cout), lambda bb, r: (bb, r, 0)),
        compiler_params=_COMPILER_PARAMS,
    )(ee, ee, eo, eo, oe, oo, wf, bf)
    return out.reshape(B, Ho, we, Cout)[:, :, :Wo, :]


def pacconv3x3_relu_first(x, w, b, coeff):
    """First PAC conv of a level (guide = coeff * x, fused): returns
    (relu(pacconv(x) + b), k) with k of shape (B, H*w_ext, 9)."""
    B, H, W, Cin = x.shape
    Cout = w.shape[-1]
    xp, th, hb, n_tiles, w_ext = _conv_geometry(x)
    wf, bf = _prep_wb(w, b)
    xa, xb, ws, bs = _specs(th, hb, w_ext, Cin, Cout)
    out, k = pl.pallas_call(
        functools.partial(_pac_first_kernel, th=th, w_ext=w_ext, c=Cin,
                          coeff=float(coeff)),
        out_shape=(jax.ShapeDtypeStruct((B, H * w_ext, Cout), jnp.float32),
                   jax.ShapeDtypeStruct((B, H * w_ext, 9), jnp.float32)),
        grid=(B, n_tiles),
        in_specs=[xa, xb, ws, bs],
        out_specs=(pl.BlockSpec((1, th * w_ext, Cout),
                                lambda bb, r: (bb, r, 0)),
                   pl.BlockSpec((1, th * w_ext, 9),
                                lambda bb, r: (bb, r, 0))),
        compiler_params=_COMPILER_PARAMS,
    )(xp, xp, wf, bf)
    out = out.reshape(B, H, w_ext, Cout)[:, :, :W, :]
    return out, k


def pacconv3x3_relu(x, k, w, b, stride=1):
    """PAC conv + bias + ReLU with a precomputed kernel k (B, H*w_ext, 9)."""
    if stride == 2:
        return _pacconv3x3_relu_s2(x, k, w, b)
    B, H, W, Cin = x.shape
    Cout = w.shape[-1]
    xp, th, hb, n_tiles, w_ext = _conv_geometry(x)
    wf, bf = _prep_wb(w, b)
    xa, xb, ws, bs = _specs(th, hb, w_ext, Cin, Cout)
    ks = pl.BlockSpec((1, th * w_ext, 9), lambda bb, r: (bb, r, 0))
    out = pl.pallas_call(
        functools.partial(_pac_kernel, th=th, w_ext=w_ext, c=Cin),
        out_shape=jax.ShapeDtypeStruct((B, H * w_ext, Cout), jnp.float32),
        grid=(B, n_tiles),
        in_specs=[xa, xb, ks, ws, bs],
        out_specs=pl.BlockSpec((1, th * w_ext, Cout), lambda bb, r: (bb, r, 0)),
        compiler_params=_COMPILER_PARAMS,
    )(xp, xp, k, wf, bf)
    return out.reshape(B, H, w_ext, Cout)[:, :, :W, :]


def _pacconv3x3_relu_s2(x, k, w, b):
    """Native stride-2 PAC conv: PyTorch uses kernel k[..., ::2, ::2]; the
    wrapper decimates k and the kernel only computes the kept pixels."""
    B, H, W, Cin = x.shape
    Cout = w.shape[-1]
    (ee, eo, oe, oo), tho, n_tiles, we, Ho, Wo = _s2_geometry(x)
    kd = _decimate_kernel(k, H, W, we)
    wf, bf = _prep_wb(w, b)
    main, nxt, ws, bs = _s2_specs(tho, we, Cin, Cout)
    ks = pl.BlockSpec((1, tho * we, 9), lambda bb, r: (bb, r, 0))
    out = pl.pallas_call(
        functools.partial(_pac_s2_kernel, tho=tho, we=we, c=Cin),
        out_shape=jax.ShapeDtypeStruct((B, Ho * we, Cout), jnp.float32),
        grid=(B, n_tiles),
        in_specs=[main, nxt, main, nxt, main, main, ks, ws, bs],
        out_specs=pl.BlockSpec((1, tho * we, Cout), lambda bb, r: (bb, r, 0)),
        compiler_params=_COMPILER_PARAMS,
    )(ee, ee, eo, eo, oe, oo, kd, wf, bf)
    return out.reshape(B, Ho, we, Cout)[:, :, :Wo, :]


# ----------------------------------------------------------------------------
# HeadPac forward
# ----------------------------------------------------------------------------

def _kernel_to_nhwc(k, feat):
    """(B, H*w_ext, 9) -> (B, H, W, 9) at the resolution of `feat`."""
    B, H, W, _ = feat.shape
    w_ext = _round_up(W, 8)
    return k.reshape(B, H, w_ext, 9)[:, :, :W, :]


@functools.partial(jax.jit, static_argnames=("kernel_coeff",))
def head_pac_forward(params, x, kernel_coeff=1e-4):
    p = params
    h1 = conv3x3_relu(x, p["conv1_1_w"], p["conv1_1_b"])
    h1 = conv3x3_relu(h1, p["conv1_2_w"], p["conv1_2_b"])
    h2 = conv3x3_relu(h1, p["conv1_3_w"], p["conv1_3_b"], stride=2)

    h2, k2 = pacconv3x3_relu_first(h2, p["conv2_1_w"], p["conv2_1_b"],
                                   kernel_coeff)
    h2 = pacconv3x3_relu(h2, k2, p["conv2_2_w"], p["conv2_2_b"])
    h3 = pacconv3x3_relu(h2, k2, p["conv2_3_w"], p["conv2_3_b"], stride=2)

    h3, k3 = pacconv3x3_relu_first(h3, p["conv3_1_w"], p["conv3_1_b"],
                                   kernel_coeff)
    h3 = pacconv3x3_relu(h3, k3, p["conv3_2_w"], p["conv3_2_b"])
    h4 = pacconv3x3_relu(h3, k3, p["conv3_3_w"], p["conv3_3_b"], stride=2)

    # NOTE: the PyTorch reference hard-codes a guide scale of 2 at this level.
    h4, k4 = pacconv3x3_relu_first(h4, p["conv4_1_w"], p["conv4_1_b"], 2.0)
    h4 = pacconv3x3_relu(h4, k4, p["conv4_2_w"], p["conv4_2_b"])
    h5 = pacconv3x3_relu(h4, k4, p["conv4_3_w"], p["conv4_3_b"], stride=2)

    h5, k5 = pacconv3x3_relu_first(h5, p["conv5_1_w"], p["conv5_1_b"],
                                   kernel_coeff)
    h5 = pacconv3x3_relu(h5, k5, p["conv5_2_w"], p["conv5_2_b"])

    kernels = [None,
               _kernel_to_nhwc(k2, h2), _kernel_to_nhwc(k3, h3),
               _kernel_to_nhwc(k4, h4), _kernel_to_nhwc(k5, h5)]
    return ([h1, h2, h3, h4, h5], kernels)


def init_params(key, num_channels):
    nc = num_channels
    layers = [
        ("conv1_1", nc[0], nc[1]), ("conv1_2", nc[1], nc[1]),
        ("conv1_3", nc[1], nc[1]),
        ("conv2_1", nc[1], nc[2]), ("conv2_2", nc[2], nc[2]),
        ("conv2_3", nc[2], nc[2]),
        ("conv3_1", nc[2], nc[3]), ("conv3_2", nc[3], nc[3]),
        ("conv3_3", nc[3], nc[3]),
        ("conv4_1", nc[3], nc[4]), ("conv4_2", nc[4], nc[4]),
        ("conv4_3", nc[4], nc[4]),
        ("conv5_1", nc[4], nc[5]), ("conv5_2", nc[5], nc[5]),
    ]
    params = {}
    for i, (name, cin, cout) in enumerate(layers):
        kw, kb = jax.random.split(jax.random.fold_in(key, i))
        fan_in = 9 * cin
        params[name + "_w"] = (jax.random.normal(kw, (9, cin, cout),
                                                 jnp.float32)
                               / jnp.sqrt(jnp.float32(fan_in)))
        params[name + "_b"] = jax.random.normal(kb, (cout,), jnp.float32) * 0.01
    return params


# ----------------------------------------------------------------------------
# Self-test
# ----------------------------------------------------------------------------

def _conv_ref(x, w, b, stride=1):
    out = jax.lax.conv_general_dilated(
        x, w.reshape(3, 3, w.shape[1], w.shape[2]),
        window_strides=(stride, stride), padding=((1, 1), (1, 1)),
        dimension_numbers=("NHWC", "HWIO", "NHWC"))
    return jnp.maximum(out + b, 0.0)


def _pac_ref(x, guide, w, b, stride=1):
    B, H, W, C = x.shape
    xp = jnp.pad(x, ((0, 0), (1, 1), (1, 1), (0, 0)))
    gp = jnp.pad(guide, ((0, 0), (1, 1), (1, 1), (0, 0)))
    tx = [xp[:, di:di + H, dj:dj + W, :] for di in range(3) for dj in range(3)]
    tg = [gp[:, di:di + H, dj:dj + W, :] for di in range(3) for dj in range(3)]
    ks = [jnp.exp(-0.5 * jnp.sum((g - tg[4]) ** 2, -1, keepdims=True))
          for g in tg]
    out = sum(jnp.einsum("bhwc,cd->bhwd", tx[t] * ks[t], w[t])
              for t in range(9))
    out = jnp.maximum(out + b, 0.0)
    if stride == 2:
        out = out[:, ::2, ::2, :]
    return out


def _rel_err(got, ref):
    return float(jnp.max(jnp.abs(got - ref)) / (jnp.max(jnp.abs(ref)) + 1e-6))


if __name__ == "__main__":
    key = jax.random.PRNGKey(0)
    # Scaled-down channel plan (the module takes num_channels as an argument).
    num_channels = [1, 32, 64, 128, 128, 128]
    params = init_params(jax.random.fold_in(key, 123), num_channels)

    # NHWC input, equivalent to PyTorch x of shape (2, 1, 32, 32).
    x = jax.random.normal(jax.random.fold_in(key, 7),
                          (2, 32, 32, num_channels[0]), jnp.float32)

    # Check 1: stride-1 row-tiled / halo / folded-tap conv vs XLA.
    w0, b0 = params["conv1_1_w"], params["conv1_1_b"]
    if _rel_err(conv3x3_relu(x, w0, b0), _conv_ref(x, w0, b0)) > 0.05:
        raise SystemExit("Pallas stride-1 conv mismatch vs XLA reference")

    # Check 2: native stride-2 conv (odd spatial dims, multiple row tiles).
    kc = jax.random.fold_in(key, 11)
    xs = jax.random.normal(jax.random.fold_in(kc, 0), (2, 63, 70, 16),
                           jnp.float32)
    ws_ = jax.random.normal(jax.random.fold_in(kc, 1), (9, 16, 24),
                            jnp.float32) / 12.0
    bs_ = jax.random.normal(jax.random.fold_in(kc, 2), (24,),
                            jnp.float32) * 0.01
    if _rel_err(conv3x3_relu(xs, ws_, bs_, stride=2),
                _conv_ref(xs, ws_, bs_, stride=2)) > 0.05:
        raise SystemExit("Pallas stride-2 conv mismatch vs XLA reference")

    # Check 3: native stride-2 PAC conv with a wrapper-decimated Gaussian
    # kernel (exercises the k[..., ::2, ::2] path end to end).
    kp = jax.random.fold_in(key, 13)
    xq = jax.random.normal(jax.random.fold_in(kp, 0), (2, 24, 22, 8),
                           jnp.float32)
    w1 = jax.random.normal(jax.random.fold_in(kp, 1), (9, 8, 8),
                           jnp.float32) / 8.0
    b1 = jnp.zeros((8,), jnp.float32)
    w2 = jax.random.normal(jax.random.fold_in(kp, 2), (9, 8, 16),
                           jnp.float32) / 8.0
    b2 = jax.random.normal(jax.random.fold_in(kp, 3), (16,),
                           jnp.float32) * 0.01
    _, k_full = pacconv3x3_relu_first(xq, w1, b1, 1.0)      # guide = 1.0 * xq
    got = pacconv3x3_relu(xq, k_full, w2, b2, stride=2)
    ref = _pac_ref(xq, xq, w2, b2, stride=2)
    if _rel_err(got, ref) > 0.05:
        raise SystemExit("Pallas stride-2 PAC conv mismatch vs reference")

    feats, kernels = head_pac_forward(params, x)
    jax.block_until_ready(feats)
    jax.block_until_ready([k for k in kernels if k is not None])
    print("KERNEL_OK")
</pallas_src>

<mosaic_0001>
module attributes {stable_mosaic.version = 11 : i64} {
  func.func @_conv_kernel(%arg0: i32, %arg1: i32, %arg2: memref<1x16x34x1xf32, #tpu.memory_space<vmem>>, %arg3: memref<1x2x34x1xf32, #tpu.memory_space<vmem>>, %arg4: memref<9x32xbf16, #tpu.memory_space<vmem>>, %arg5: memref<1x32xf32, #tpu.memory_space<vmem>>, %arg6: memref<1x512x32xf32, #tpu.memory_space<vmem>>) attributes {dimension_semantics = [#tpu.dimension_semantics<parallel>, #tpu.dimension_semantics<parallel>], iteration_bounds = array<i64: 2, 2>, scalar_prefetch = 0 : i64, scratch_operands = 0 : i64, tpu.core_type = #tpu.core_type<tc>, window_params = [{transform_indices = @transform_0, window_bounds = array<i64: 1, 16, 34, 1>}, {transform_indices = @transform_1, window_bounds = array<i64: 1, 2, 34, 1>}, {pipeline_mode = #tpu.pipeline_mode<synchronous>, transform_indices = @transform_2, window_bounds = array<i64: 9, 32>}, {pipeline_mode = #tpu.pipeline_mode<synchronous>, transform_indices = @transform_3, window_bounds = array<i64: 1, 32>}, {transform_indices = @transform_4, window_bounds = array<i64: 1, 512, 32>}]} {
    %c0 = arith.constant 0 : index
    %c0_0 = arith.constant 0 : index
    %c0_1 = arith.constant 0 : index
    %c0_2 = arith.constant 0 : index
    %0 = vector.load %arg2[%c0, %c0_0, %c0_1, %c0_2] : memref<1x16x34x1xf32, #tpu.memory_space<vmem>>, vector<1x16x34x1xf32>
    %1 = vector.shape_cast %0 : vector<1x16x34x1xf32> to vector<16x34x1xf32>
    %c0_3 = arith.constant 0 : index
    %c0_4 = arith.constant 0 : index
    %c0_5 = arith.constant 0 : index
    %c0_6 = arith.constant 0 : index
    %2 = vector.load %arg3[%c0_3, %c0_4, %c0_5, %c0_6] : memref<1x2x34x1xf32, #tpu.memory_space<vmem>>, vector<1x2x34x1xf32>
    %3 = vector.shape_cast %2 : vector<1x2x34x1xf32> to vector<2x34x1xf32>
    %4 = tpu.concatenate %1, %3 in 0 : vector<16x34x1xf32>, vector<2x34x1xf32> -> vector<18x34x1xf32>
    %5 = vector.extract_strided_slice %4 {offsets = [0, 0, 0], sizes = [16, 32, 1], strides = [1, 1, 1]} : vector<18x34x1xf32> to vector<16x32x1xf32>
    %6 = vector.shape_cast %5 : vector<16x32x1xf32> to vector<512x1xf32>
    %7 = vector.extract_strided_slice %4 {offsets = [0, 1, 0], sizes = [16, 32, 1], strides = [1, 1, 1]} : vector<18x34x1xf32> to vector<16x32x1xf32>
    %8 = vector.shape_cast %7 : vector<16x32x1xf32> to vector<512x1xf32>
    %9 = vector.extract_strided_slice %4 {offsets = [0, 2, 0], sizes = [16, 32, 1], strides = [1, 1, 1]} : vector<18x34x1xf32> to vector<16x32x1xf32>
    %10 = vector.shape_cast %9 : vector<16x32x1xf32> to vector<512x1xf32>
    %11 = vector.extract_strided_slice %4 {offsets = [1, 0, 0], sizes = [16, 32, 1], strides = [1, 1, 1]} : vector<18x34x1xf32> to vector<16x32x1xf32>
    %12 = vector.shape_cast %11 : vector<16x32x1xf32> to vector<512x1xf32>
    %13 = vector.extract_strided_slice %4 {offsets = [1, 1, 0], sizes = [16, 32, 1], strides = [1, 1, 1]} : vector<18x34x1xf32> to vector<16x32x1xf32>
    %14 = vector.shape_cast %13 : vector<16x32x1xf32> to vector<512x1xf32>
    %15 = vector.extract_strided_slice %4 {offsets = [1, 2, 0], sizes = [16, 32, 1], strides = [1, 1, 1]} : vector<18x34x1xf32> to vector<16x32x1xf32>
    %16 = vector.shape_cast %15 : vector<16x32x1xf32> to vector<512x1xf32>
    %17 = vector.extract_strided_slice %4 {offsets = [2, 0, 0], sizes = [16, 32, 1], strides = [1, 1, 1]} : vector<18x34x1xf32> to vector<16x32x1xf32>
    %18 = vector.shape_cast %17 : vector<16x32x1xf32> to vector<512x1xf32>
    %19 = vector.extract_strided_slice %4 {offsets = [2, 1, 0], sizes = [16, 32, 1], strides = [1, 1, 1]} : vector<18x34x1xf32> to vector<16x32x1xf32>
    %20 = vector.shape_cast %19 : vector<16x32x1xf32> to vector<512x1xf32>
    %21 = vector.extract_strided_slice %4 {offsets = [2, 2, 0], sizes = [16, 32, 1], strides = [1, 1, 1]} : vector<18x34x1xf32> to vector<16x32x1xf32>
    %22 = vector.shape_cast %21 : vector<16x32x1xf32> to vector<512x1xf32>
    %23 = arith.truncf %6 : vector<512x1xf32> to vector<512x1xbf16>
    %24 = arith.truncf %8 : vector<512x1xf32> to vector<512x1xbf16>
    %25 = arith.truncf %10 : vector<512x1xf32> to vector<512x1xbf16>
    %26 = arith.truncf %12 : vector<512x1xf32> to vector<512x1xbf16>
    %27 = arith.truncf %14 : vector<512x1xf32> to vector<512x1xbf16>
    %28 = arith.truncf %16 : vector<512x1xf32> to vector<512x1xbf16>
    %29 = arith.truncf %18 : vector<512x1xf32> to vector<512x1xbf16>
    %30 = arith.truncf %20 : vector<512x1xf32> to vector<512x1xbf16>
    %31 = arith.truncf %22 : vector<512x1xf32> to vector<512x1xbf16>
    %32 = tpu.concatenate %23, %24, %25, %26, %27, %28, %29, %30, %31 in 1 : vector<512x1xbf16>, vector<512x1xbf16>, vector<512x1xbf16>, vector<512x1xbf16>, vector<512x1xbf16>, vector<512x1xbf16>, vector<512x1xbf16>, vector<512x1xbf16>, vector<512x1xbf16> -> vector<512x9xbf16>
    %c0_7 = arith.constant 0 : index
    %c0_8 = arith.constant 0 : index
    %33 = vector.load %arg4[%c0_7, %c0_8] : memref<9x32xbf16, #tpu.memory_space<vmem>>, vector<9x32xbf16>
    %cst = arith.constant dense<0.000000e+00> : vector<512x32xf32>
    %34 = tpu.matmul %32, %33, %cst {dimension_numbers = #tpu.dot_dimension_numbers<[1], [0], [0], [1], [0, 0, 1, 1], [], []>} : vector<512x9xbf16>, vector<9x32xbf16>, vector<512x32xf32> -> vector<512x32xf32>
    %c0_9 = arith.constant 0 : index
    %c0_10 = arith.constant 0 : index
    %35 = vector.load %arg5[%c0_9, %c0_10] : memref<1x32xf32, #tpu.memory_space<vmem>>, vector<1x32xf32>
    %36 = vector.broadcast %35 : vector<1x32xf32> to vector<512x32xf32>
    %37 = arith.addf %34, %36 : vector<512x32xf32>
    %cst_11 = arith.constant 0.000000e+00 : f32
    %38 = vector.broadcast %cst_11 : f32 to vector<512x32xf32>
    %39 = arith.maximumf %37, %38 : vector<512x32xf32>
    %c0_12 = arith.constant 0 : index
    %c0_13 = arith.constant 0 : index
    %c0_14 = arith.constant 0 : index
    %40 = vector.load %arg6[%c0_12, %c0_13, %c0_14] : memref<1x512x32xf32, #tpu.memory_space<vmem>>, vector<1x512x32xf32>
    %41 = vector.shape_cast %40 : vector<1x512x32xf32> to vector<512x32xf32>
    %42 = vector.shape_cast %39 : vector<512x32xf32> to vector<1x512x32xf32>
    tpu.vector_store %arg6[%c0_12, %c0_13, %c0_14], %42 {strides = array<i32>} : memref<1x512x32xf32, #tpu.memory_space<vmem>>, vector<1x512x32xf32>,
    return
  }
  func.func @transform_0(%arg0: i32, %arg1: i32) -> (i32, i32, i32, i32) {
    %c0_i32 = arith.constant 0 : i32
    %c0_i32_0 = arith.constant 0 : i32
    %c0_i32_1 = arith.constant 0 : i32
    return %arg0, %arg1, %c0_i32, %c0_i32_0 : i32, i32, i32, i32
  }
  func.func @transform_1(%arg0: i32, %arg1: i32) -> (i32, i32, i32, i32) {
    %c1_i32 = arith.constant 1 : i32
    %0 = arith.addi %arg1, %c1_i32 : i32
    %c8_i32 = arith.constant 8 : i32
    %1 = arith.muli %0, %c8_i32 : i32
    %c0_i32 = arith.constant 0 : i32
    %c0_i32_0 = arith.constant 0 : i32
    %c0_i32_1 = arith.constant 0 : i32
    return %arg0, %1, %c0_i32, %c0_i32_0 : i32, i32, i32, i32
  }
  func.func @transform_2(%arg0: i32, %arg1: i32) -> (i32, i32) {
    %c0_i32 = arith.constant 0 : i32
    %c0_i32_0 = arith.constant 0 : i32
    %c0_i32_1 = arith.constant 0 : i32
    return %c0_i32, %c0_i32_0 : i32, i32
  }
  func.func @transform_3(%arg0: i32, %arg1: i32) -> (i32, i32) {
    %c0_i32 = arith.constant 0 : i32
    %c0_i32_0 = arith.constant 0 : i32
    %c0_i32_1 = arith.constant 0 : i32
    return %c0_i32, %c0_i32_0 : i32, i32
  }
  func.func @transform_4(%arg0: i32, %arg1: i32) -> (i32, i32, i32) {
    %c0_i32 = arith.constant 0 : i32
    %c0_i32_0 = arith.constant 0 : i32
    return %arg0, %arg1, %c0_i32 : i32, i32, i32
  }
}

</mosaic_0001>

<bundles_post_ra>
// kernel: tpu_custom_call.1
= control target key start
LH: loop header
LB: loop body
LE: loop exit
PB: predicated region body
PF: predicated region fallthrough
CT: control target
= control target key end

     0   :  { %s3131_s15 = smov 0   ;;  %s3133_s16 = smov 0   ;;  %s5369_s0 = inlined_call_operand.vmem [shape: f32[2,48,34,1], index: 0, kind: input, shape index: {}]   ;;  %s5370_s1 = inlined_call_operand.vmem [shape: f32[2,48,34,1], index: 1, kind: input, shape index: {}]   ;;  %s5371_s2 = inlined_call_operand.vmem [shape: bf16[9,32], index: 2, kind: input, shape index: {}]   ;;  %s5372_s3 = inlined_call_operand.vmem [shape: f32[1,32], index: 3, kind: input, shape index: {}]   ;;  %s5373_s4 = inlined_call_operand.vmem [shape: f32[2,1024,32], index: 4, kind: output, shape index: {}]  }
   0x1   :  { %s3135_s17 = smov 0   ;;  %s3137_s18 = smov 0  }
   0x2   :  { %s3139_s19 = smov 0  }
   0x3 LB: > { %s23_s20 = sadd.s32 1, %s3087_s17  ;;  %s26_s21 = sadd.s32 1, %s3091_s18  ;;  %s3095_s19 = sphi %s3139_s19, %s14_s19   ;;  %s3091_s18 = sphi %s3137_s18, %s5902_s18   ;;  %s3087_s17 = sphi %s3135_s17, %s5901_s17   ;;  %s3083_s16 = sphi %s3133_s16, %s5900_s16   ;;  %s3079_s15 = sphi %s3131_s15, %s5899_s15  }
   0x4   : > { %p24_p0 = scmp.ge.s32.totalorder %s23_s20, 2  ;;  %p2846_p1 = scmp.ge.s32.totalorder %s3095_s19, 1 }
   0x5   : > { %p210_p2 = scmp.lt.s32.totalorder %s3095_s19, 5 }
   0x6   : > { %s5904_s20 = smov (%p24_p0, %s23_s20), 0  ;;  %s5906_s21 = smov (!%p24_p0, %s26_s21), %s3091_s18 }
   0x7   : > { %p211_p3 = pnand %p2846_p1, %p210_p2  ;;  %p28_p4 = scmp.ge.s32.totalorder %s5906_s21, 2 }
   0x9   : > { %s5908_s21 = smov (%p28_p4, %s5906_s21), 0  ;;  %214 = sbr.rel (%p211_p3) target bundleno = 877 (0x36d), region = 36 }
  0x10   : > { %s3164_s22 = sshll.u32 %s3079_s15, 4  ;;  %p258_p5 = scmp.lt.s32.totalorder %s3083_s16, 1  ;;  %vm464_vm0 = vcmask 1046528   ;;  %vm673_vm1 = vcmask 1045504   ;;  %vm1670_vm2 = vcmask 7168   ;;  %vm1767_vm3 = vcmask 15360  }
  0x11   : > { %p260_p6 = scmp.lt.s32.totalorder %s3164_s22, 47  ;;  %s3097_s5 = smov 1   ;;  %vm2301_vm4 = vcmask 1043456   ;;  %vm2302_vm5 = vcmask 1044480   ;;  %vm1832_vm6 = vcmask 23552   ;;  %vm1897_vm7 = vcmask 31744  }
  0x12   : > { %s5910_s16 = smov (!%p258_p5, %s3083_s16), 1  ;;  %s3098_s6 = smov 2   ;;  %vm1962_vm8 = vcmask 39936   ;;  %vm2027_vm9 = vcmask 48128   ;;  %vm2092_vm10 = vcmask 56320   ;;  %vm2157_vm11 = vcmask 64512  }
  0x13   : > { %s261_s23 = scalar_select %p260_p6, %s3164_s22, 47  ;;  %vm2236_vm12 = vcmask 72704   ;;  %vm2661_vm13 = vcmask 261120  }
  0x14   : > { %s3002_s24 = smul.u32 240, %s5910_s16  ;;  %s3099_s7 = smov 3  }
  0x15   : > { %s3001_s25 = smul.u32 5, %s261_s23  ;;  %s3100_s8 = smov 4  }
  0x16   : > { %s3101_s9 = smov 5   ;;  %s3102_s10 = smov 6  }
  0x17   : > { %s264_s26 = sadd.s32 %s3002_s24, %s3001_s25  ;;  %s3104_s13 = smov 7  }
  0x18   : > { %s2848_s27 = sshll.u32 %s264_s26, 3  ;;  %s3105_s14 = smov 8  }
  0x19   : > { %s3176_s30 = scalar_lea.vmem %s5369_s0, %s2848_s27  ;;  %s2899_s23 = sadd.s32 16, %s3164_s22 }
  0x1a   : > { %v3179_v0 = vld [vmem:[%s3176_s30 + $0x28] sm:$0xff]  ;;  %v3182_v1 = vld [vmem:[%s3176_s30 + $0x30] sm:$0xff]  ;;  %v3185_v2 = vld [vmem:[%s3176_s30 + $0x38] sm:$0xff]  ;;  %p273_p7 = scmp.lt.s32.totalorder %s2899_s23, 47 }
  0x1b   : > { %v474_v3 = vrot.slane %v3179_v0, 1  ;;  %v475_v4 = vrot.slane %v3182_v1, 1  ;;  %v477_v5 = vrot.slane %v3185_v2, 1  ;;  %v3191_v6 = vld [vmem:[%s3176_s30] sm:$0xff]  ;;  %v3194_v7 = vld [vmem:[%s3176_s30 + $0x8] sm:$0xff]  ;;  %v3197_v8 = vld [vmem:[%s3176_s30 + $0x10] sm:$0xff]  ;;  %v3201_v9 = vpack.c.bf16 %v3182_v1, %v3179_v0 }
  0x1c   : > { %5578 = vst [vmem:[#allocation2_spill] sm:$0xff] %v3191_v6  ;;  %5579 = vst [vmem:[#allocation3_spill] sm:$0xff] %v3194_v7  ;;  %v465_v10 = vrot.slane %v3191_v6, 1  ;;  %v466_v11 = vrot.slane %v3194_v7, 1  ;;  %v468_v12 = vrot.slane %v3197_v8, 1  ;;  %v3207_v13 = vld [vmem:[%s3176_s30 + $0x40] sm:$0xff] }
  0x1d   : > { %5580 = vst [vmem:[#allocation4_spill] sm:$0xff] %v3201_v9  ;;  %v3210_v14 = vld [vmem:[%s3176_s30 + $0x48] sm:$0x3]  ;;  %v476_v16 = vsel %vm464_vm0, %v474_v3, %v475_v4  ;;  %v478_v17 = vsel %vm464_vm0, %v475_v4, %v477_v5  ;;  %v479_v18 = vrot.slane %v3207_v13, 1  ;;  %v3219_v20 = vld [vmem:[%s3176_s30 + $0x18] sm:$0xff]  ;;  %v3225_v22 = vld [vmem:[%s3176_s30 + $0x60] sm:$0xff] }
  0x1e   : > { %v481_v19 = vrot.slane %v3210_v14, 1  ;;  %v3222_v21 = vld [vmem:[%s3176_s30 + $0x20] sm:$0x3]  ;;  %v3227_v23 = vpack.c.bf16 %v478_v17, %v476_v16  ;;  %v467_v24 = vsel %vm464_vm0, %v465_v10, %v466_v11  ;;  %v469_v25 = vsel %vm464_vm0, %v466_v11, %v468_v12  ;;  %v3233_v27 = vld [vmem:[%s3176_s30 + $0x68] sm:$0xff]  ;;  %v3236_v28 = vld [vmem:[%s3176_s30 + $0x70] sm:$0x3] }
  0x1f   : > { %v470_v26 = vrot.slane %v3219_v20, 1  ;;  %5582 = vst [vmem:[#allocation6_spill] sm:$0xff] %v3233_v27  ;;  %v3239_v29 = vld [vmem:[%s3176_s30 + $0x50] sm:$0xff]  ;;  %v976_v30 = vpack.c.bf16 %v469_v25, %v467_v24  ;;  %v480_v31 = vsel %vm464_vm0, %v477_v5, %v479_v18  ;;  %v472_v33 = vrot.slane %v3222_v21, 1  ;;  %v3245_v34 = vld [vmem:[%s3176_s30 + $0x58] sm:$0xff]  ;;  %v3248_v35 = vld [vmem:[%s3176_s30 + $0x88] sm:$0xff] }
  0x20   : > { %5581 = vst [vmem:[#allocation5_spill] sm:$0xff] %v3227_v23  ;;  %v482_v32 = vsel %vm464_vm0, %v479_v18, %v481_v19  ;;  %5583 = vst [vmem:[#allocation7_spill] sm:$0xff] %v3248_v35  ;;  %v3251_v36 = vld [vmem:[%s3176_s30 + $0x90] sm:$0xff]  ;;  %1088 = vrot.lane.b32.xlu1 %v3227_v23, %s3097_s5  ;;  %v486_v39 = vrot.slane %v3225_v22, 1  ;;  %v488_v40 = vrot.slane %v3233_v27, 1  ;;  %v490_v43 = vrot.slane %v3236_v28, 1 }
  0x21   : > { %5584 = vst [vmem:[#allocation8_spill] sm:$0xff] %v3251_v36  ;;  %v3255_v37 = vpack.c.bf16 %v482_v32, %v480_v31  ;;  %v471_v38 = vsel %vm464_vm0, %v468_v12, %v470_v26  ;;  %v3261_v41 = vld [vmem:[%s3176_s30 + $0x98] sm:$0x3]  ;;  %1084 = vrot.lane.b32.xlu0 %v976_v30, %s3097_s5  ;;  %v473_v42 = vsel %vm464_vm0, %v470_v26, %v472_v33  ;;  %v483_v44 = vrot.slane %v3239_v29, 1  ;;  %v3275_v51 = vld [vmem:[%s3176_s30 + $0x80] sm:$0xff]  ;;  %v3278_v52 = vld [vmem:[%s3176_s30 + $0xb0] sm:$0xff] }
  0x22   : > { %v484_v45 = vrot.slane %v3245_v34, 1  ;;  %v3269_v46 = vld [vmem:[%s3176_s30 + $0x78] sm:$0xff]  ;;  %v977_v47 = vpack.c.bf16 %v473_v42, %v471_v38  ;;  %v489_v48 = vsel %vm464_vm0, %v486_v39, %v488_v40  ;;  %v495_v49 = vrot.slane %v3248_v35, 1  ;;  %5587 = vst [vmem:[#allocation11_spill] sm:$0xff] %v3275_v51  ;;  %5588 = vst [vmem:[#allocation12_spill] sm:$0xff] %v3278_v52  ;;  %v3291_v59 = vld [vmem:[%s3176_s30 + $0xa0] sm:$0xff] }
  0x23   : > { %5585 = vst [vmem:[#allocation9_spill] sm:$0xff] %v3255_v37  ;;  %5586 = vst [vmem:[#allocation10_spill] sm:$0xff] %v3269_v46  ;;  %v497_v50 = vrot.slane %v3251_v36, 1  ;;  %v3281_v53 = vld [vmem:[%s3176_s30 + $0xb8] sm:$0xff]  ;;  %v491_v54 = vsel %vm464_vm0, %v488_v40, %v490_v43  ;;  %v499_v57 = vrot.slane %v3261_v41, 1  ;;  %v3294_v60 = vld [vmem:[%s3176_s30 + $0xa8] sm:$0xff] }
  0x24   : > { %5589 = vst [vmem:[#allocation13_spill] sm:$0xff] %v3281_v53  ;;  %v485_v55 = vsel %vm464_vm0, %v483_v44, %v484_v45  ;;  %v487_v56 = vsel %vm464_vm0, %v484_v45, %v486_v39  ;;  %v3288_v58 = vld [vmem:[%s3176_s30 + $0xc0] sm:$0x3]  ;;  %5590 = vst [vmem:[#allocation14_spill] sm:$0xff] %v3291_v59  ;;  %1090 = vrot.lane.b32.xlu1 %v3255_v37, %s3097_s5  ;;  %v3298_v61 = vpack.c.bf16 %v491_v54, %v489_v48  ;;  %v3305_v4 = vld [vmem:[%s3176_s30 + $0xd8] sm:$0xff]  ;;  %s5912_s23 = smov (!%p273_p7, %s2899_s23), 47 }
  0x25   : > { %5591 = vst [vmem:[#allocation15_spill] sm:$0xff] %v3294_v60  ;;  %v3300_v62 = vpack.c.bf16 %v487_v56, %v485_v55  ;;  %v498_v63 = vsel %vm464_vm0, %v495_v49, %v497_v50  ;;  %v492_v3 = vrot.slane %v3269_v46, 1  ;;  %5594 = vst [vmem:[#allocation18_spill] sm:$0xff] %v3305_v4  ;;  %1086 = vrot.lane.b32.xlu0 %v977_v47, %s3097_s5  ;;  %v493_v10 = vrot.slane %v3275_v51, 1  ;;  %v3316_v19 = vld [vmem:[%s3176_s30 + $0xe0] sm:$0xff]  ;;  %v3325_v31 = vld [vmem:[%s3176_s30 + $0xc8] sm:$0xff] }
  0x26   : > { %5592 = vst [vmem:[#allocation16_spill] sm:$0xff] %v3298_v61  ;;  %v500_v5 = vsel %vm464_vm0, %v497_v50, %v499_v57  ;;  %v504_v11 = vrot.slane %v3278_v52, 1  ;;  %v506_v12 = vrot.slane %v3281_v53, 1  ;;  %v508_v16 = vrot.slane %v3288_v58, 1  ;;  %5595 = vst [vmem:[#allocation19_spill] sm:$0xff] %v3316_v19  ;;  %v3328_v32 = vld [vmem:[%s3176_s30 + $0xd0] sm:$0xff] }
  0x27   : > { %5593 = vst [vmem:[#allocation17_spill] sm:$0xff] %v3300_v62  ;;  %v501_v17 = vrot.slane %v3291_v59, 1  ;;  %v502_v18 = vrot.slane %v3294_v60, 1  ;;  %v3319_v24 = vld [vmem:[%s3176_s30 + $0xe8] sm:$0x3]  ;;  %v494_v25 = vsel %vm464_vm0, %v492_v3, %v493_v10  ;;  %v496_v26 = vsel %vm464_vm0, %v493_v10, %v495_v49  ;;  %5596 = vst [vmem:[#allocation20_spill] sm:$0xff] %v3325_v31 }
  0x28   : > { %v513_v30 = vrot.slane %v3305_v4, 1  ;;  %5597 = vst [vmem:[#allocation21_spill] sm:$0xff] %v3328_v32  ;;  %v3331_v33 = vld [vmem:[%s3176_s30 + $0x100] sm:$0xff]  ;;  %1094 = vrot.lane.b32.xlu1 %v3298_v61, %s3097_s5  ;;  %v3335_v38 = vpack.c.bf16 %v500_v5, %v498_v63  ;;  %v3337_v39 = vpack.c.bf16 %v496_v26, %v494_v25  ;;  %v507_v40 = vsel %vm464_vm0, %v504_v11, %v506_v12  ;;  %v3341_v42 = vld [vmem:[%s3176_s30 + $0x108] sm:$0xff]  ;;  %v3344_v43 = vld [vmem:[%s3176_s30 + $0x110] sm:$0x3] }
  0x29   : > { %5598 = vst [vmem:[#allocation22_spill] sm:$0xff] %v3331_v33  ;;  %5601 = vst [vmem:[#allocation25_spill] sm:$0xff] %v3341_v42  ;;  %1092 = vrot.lane.b32.xlu0 %v3300_v62, %s3097_s5  ;;  %v509_v44 = vsel %vm464_vm0, %v506_v12, %v508_v16  ;;  %v503_v45 = vsel %vm464_vm0, %v501_v17, %v502_v18  ;;  %v515_v47 = vrot.slane %v3316_v19, 1  ;;  %v517_v48 = vrot.slane %v3319_v24, 1  ;;  %v3353_v49 = vld [vmem:[%s3176_s30 + $0xf0] sm:$0xff]  ;;  %v3360_v57 = vld [vmem:[%s3176_s30 + $0xf8] sm:$0xff] }
  0x2a   : > { %5599 = vst [vmem:[#allocation23_spill] sm:$0xff] %v3335_v38  ;;  %5600 = vst [vmem:[#allocation24_spill] sm:$0xff] %v3337_v39  ;;  %v505_v50 = vsel %vm464_vm0, %v502_v18, %v504_v11  ;;  %v510_v54 = vrot.slane %v3325_v31, 1  ;;  %v511_v55 = vrot.slane %v3328_v32, 1  ;;  %v522_v56 = vrot.slane %v3331_v33, 1  ;;  %v3374_v18 = vld [vmem:[%s3176_s30 + $0x128] sm:$0xff] }
  0x2b   : > { %5602 = vst [vmem:[#allocation26_spill] sm:$0xff] %v3353_v49  ;;  %5603 = vst [vmem:[#allocation27_spill] sm:$0xff] %v3360_v57  ;;  %v516_v63 = vsel %vm464_vm0, %v513_v30, %v515_v47  ;;  %v518_v3 = vsel %vm464_vm0, %v515_v47, %v517_v48  ;;  %v524_v5 = vrot.slane %v3341_v42, 1  ;;  %v526_v10 = vrot.slane %v3344_v43, 1  ;;  %v3382_v47 = vld [vmem:[%s3176_s30 + $0x130] sm:$0xff]  ;;  %v3393_v48 = vld [vmem:[%s3176_s30 + $0x120] sm:$0xff] }
  0x2c   : > { %1098 = vrot.lane.b32.xlu1 %v3335_v38, %s3097_s5  ;;  %v3368_v11 = vpack.c.bf16 %v509_v44, %v507_v40  ;;  %v512_v12 = vsel %vm464_vm0, %v510_v54, %v511_v55  ;;  %v514_v16 = vsel %vm464_vm0, %v511_v55, %v513_v30  ;;  %v519_v17 = vrot.slane %v3353_v49, 1  ;;  %5605 = vst [vmem:[#allocation29_spill] sm:$0xff] %v3374_v18  ;;  %v3385_v40 = vld [vmem:[%s3176_s30 + $0x138] sm:$0x3]  ;;  %v3396_v54 = vld [vmem:[%s3176_s30 + $0x150] sm:$0xff]  ;;  %v3416_v61 = vld [vmem:[%s3176_s30 + $0x140] sm:$0xff] }
  0x2d   : > { %1096 = vrot.lane.b32.xlu0 %v3337_v39, %s3097_s5  ;;  %v3378_v25 = vpack.c.bf16 %v505_v50, %v503_v45  ;;  %v520_v26 = vrot.slane %v3360_v57, 1  ;;  %5607 = vst [vmem:[#allocation31_spill] sm:$0xff] %v3382_v47  ;;  %5608 = vst [vmem:[#allocation32_spill] sm:$0xff] %v3385_v40  ;;  %v3388_v44 = vld [vmem:[%s3176_s30 + $0x118] sm:$0xff]  ;;  %v3390_v30 = vpack.c.bf16 %v518_v3, %v516_v63  ;;  %v531_v38 = vrot.slane %v3374_v18, 1  ;;  %s3003_s22 = smul.u32 5, %s5912_s23 }
  0x2e   : > { %5604 = vst [vmem:[#allocation28_spill] sm:$0xff] %v3368_v11  ;;  %5609 = vst [vmem:[#allocation33_spill] sm:$0xff] %v3388_v44  ;;  %v3399_v55 = vld [vmem:[%s3176_s30 + $0x158] sm:$0xff]  ;;  %v3401_v45 = vpack.c.bf16 %v514_v16, %v512_v12  ;;  %v525_v50 = vsel %vm464_vm0, %v522_v56, %v524_v5  ;;  %v527_v15 = vsel %vm464_vm0, %v524_v5, %v526_v10  ;;  %v3407_v39 = vld [vmem:[%s3176_s30 + $0x160] sm:$0x3]  ;;  %v533_v3 = vrot.slane %v3382_v47, 1 }
  0x2f   : > { %5606 = vst [vmem:[#allocation30_spill] sm:$0xff] %v3378_v25  ;;  %5610 = vst [vmem:[#allocation34_spill] sm:$0xff] %v3390_v30  ;;  %v521_v63 = vsel %vm464_vm0, %v519_v17, %v520_v26  ;;  %v535_v12 = vrot.slane %v3385_v40, 1  ;;  %v528_v16 = vrot.slane %v3388_v44, 1  ;;  %v3419_v5 = vld [vmem:[%s3176_s30 + $0x148] sm:$0xff]  ;;  %v523_v10 = vsel %vm464_vm0, %v520_v26, %v522_v56  ;;  %v3431_v44 = vld [vmem:[%s3176_s30 + $0x178] sm:$0xff]  ;;  %s277_s25 = sadd.s32 %s3003_s22, %s3002_s24 }
  0x30   : > { %5611 = vst [vmem:[#allocation35_spill] sm:$0xff] %v3393_v48  ;;  %5612 = vst [vmem:[#allocation36_spill] sm:$0xff] %v3396_v54  ;;  %1102 = vrot.lane.b32.xlu1 %v3368_v11, %s3097_s5  ;;  %v529_v17 = vrot.slane %v3393_v48, 1  ;;  %v540_v11 = vrot.slane %v3396_v54, 1  ;;  %v542_v62 = vrot.slane %v3399_v55, 1  ;;  %v544_v37 = vrot.slane %v3407_v39, 1 }
  0x31   : > { %5613 = vst [vmem:[#allocation37_spill] sm:$0xff] %v3399_v55  ;;  %5614 = vst [vmem:[#allocation38_spill] sm:$0xff] %v3401_v45  ;;  %1100 = vrot.lane.b32.xlu0 %v3378_v25, %s3097_s5  ;;  %v537_v23 = vrot.slane %v3416_v61, 1  ;;  %v538_v9 = vrot.slane %v3419_v5, 1  ;;  %v3434_v40 = vld [vmem:[%s3176_s30 + $0x180] sm:$0xff]  ;;  %v3441_v56 = vpack.c.bf16 %v527_v15, %v525_v50  ;;  %v3443_v26 = vpack.c.bf16 %v523_v10, %v521_v63  ;;  %v3505_v48 = vld [vmem:[%s3176_s30 + $0x1b8] sm:$0xff] }
  0x32   : > { %5615 = vst [vmem:[#allocation39_spill] sm:$0xff] %v3407_v39  ;;  %5616 = vst [vmem:[#allocation40_spill] sm:$0xff] %v3416_v61  ;;  %v3437_v25 = vld [vmem:[%s3176_s30 + $0x188] sm:$0x3]  ;;  %v534_v55 = vsel %vm464_vm0, %v531_v38, %v533_v3  ;;  %v536_v61 = vsel %vm464_vm0, %v533_v3, %v535_v12  ;;  %v532_v15 = vsel %vm464_vm0, %v529_v17, %v531_v38  ;;  %v549_v10 = vrot.slane %v3431_v44, 1  ;;  %s2851_s26 = sshll.u32 %s277_s25, 3 }
  0x33   : > { %5617 = vst [vmem:[#allocation41_spill] sm:$0xff] %v3419_v5  ;;  %5618 = vst [vmem:[#allocation42_spill] sm:$0xff] %v3431_v44  ;;  %v3447_v39 = vld [vmem:[%s3176_s30 + $0x168] sm:$0xff]  ;;  %v3450_v5 = vld [vmem:[%s3176_s30 + $0x170] sm:$0xff]  ;;  %v543_v50 = vsel %vm464_vm0, %v540_v11, %v542_v62  ;;  %v545_v63 = vsel %vm464_vm0, %v542_v62, %v544_v37  ;;  %v551_v54 = vrot.slane %v3434_v40, 1  ;;  %v539_v3 = vsel %vm464_vm0, %v537_v23, %v538_v9  ;;  %s4848_s29 = scalar_lea.vmem %s5370_s1, %s2851_s26  ;;  %s2852_s24 = sshll.u32 %s3079_s15, 6 }
  0x34   : > { %5619 = vst [vmem:[#allocation43_spill] sm:$0xff] %v3434_v40  ;;  %5620 = vst [vmem:[#allocation44_spill] sm:$0xff] %v3437_v25  ;;  %1106 = vrot.lane.b32.xlu1 %v3390_v30, %s3097_s5  ;;  %v530_v30 = vsel %vm464_vm0, %v528_v16, %v529_v17  ;;  %v541_v12 = vsel %vm464_vm0, %v538_v9, %v540_v11  ;;  %v546_v38 = vrot.slane %v3447_v39, 1  ;;  %v547_v16 = vrot.slane %v3450_v5, 1  ;;  %v3467_v17 = vld [vmem:[%s3176_s30 + $0x1a0] sm:$0xff]  ;;  %v3470_v37 = vld [vmem:[%s3176_s30 + $0x1a8] sm:$0xff] }
  0x35   : > { %5621 = vst [vmem:[#allocation45_spill] sm:$0xff] %v3441_v56  ;;  %5622 = vst [vmem:[#allocation46_spill] sm:$0xff] %v3443_v26  ;;  %1104 = vrot.lane.b32.xlu0 %v3401_v45, %s3097_s5  ;;  %v553_v45 = vrot.slane %v3437_v25, 1  ;;  %v3474_v62 = vpack.c.bf16 %v536_v61, %v534_v55  ;;  %v3477_v25 = vld [vmem:[%s3176_s30 + $0x1b0] sm:$0x3]  ;;  %v3483_v9 = vld [vmem:[%s3176_s30 + $0x198] sm:$0xff]  ;;  %v3487_v11 = vpack.c.bf16 %v532_v15, %v530_v30 }
  0x36   : > { %5623 = vst [vmem:[#allocation47_spill] sm:$0xff] %v3447_v39  ;;  %5624 = vst [vmem:[#allocation48_spill] sm:$0xff] %v3450_v5  ;;  %v3480_v23 = vld [vmem:[%s3176_s30 + $0x190] sm:$0xff]  ;;  %v3490_v5 = vld [vmem:[%s3176_s30 + $0x1c8] sm:$0xff]  ;;  %v3498_v61 = vpack.c.bf16 %v545_v63, %v543_v50  ;;  %v3500_v55 = vpack.c.bf16 %v541_v12, %v539_v3  ;;  %v552_v40 = vsel %vm464_vm0, %v549_v10, %v551_v54  ;;  %v558_v47 = vrot.slane %v3467_v17, 1  ;;  %p286_p8 = scmp.lt.s32.totalorder %s2852_s24, 127 }
  0x37   : > { %5625 = vst [vmem:[#allocation49_spill] sm:$0xff] %v3467_v17  ;;  %5626 = vst [vmem:[#allocation50_spill] sm:$0xff] %v3470_v37  ;;  %v3493_v39 = vld [vmem:[%s3176_s30 + $0x1d0] sm:$0xff]  ;;  %v554_v44 = vsel %vm464_vm0, %v551_v54, %v553_v45  ;;  %v548_v15 = vsel %vm464_vm0, %v546_v38, %v547_v16  ;;  %v560_v18 = vrot.slane %v3470_v37, 1  ;;  %v562_v50 = vrot.slane %v3477_v25, 1  ;;  %v3518_v63 = vld [vmem:[%s3176_s30 + $0x1f8] sm:$0xff] }
  0x38   : > { %1110 = vrot.lane.b32.xlu1 %v3441_v56, %s3097_s5  ;;  %5627 = vst [vmem:[#allocation51_spill] sm:$0xff] %v3474_v62  ;;  %5628 = vst [vmem:[#allocation52_spill] sm:$0xff] %v3477_v25  ;;  %v3496_v56 = vld [vmem:[%s3176_s30 + $0x1d8] sm:$0x3]  ;;  %v3511_v30 = vld [vmem:[%s3176_s30 + $0x1f0] sm:$0xff]  ;;  %v550_v54 = vsel %vm464_vm0, %v547_v16, %v549_v10  ;;  %v555_v45 = vrot.slane %v3480_v23, 1 }
  0x39   : > { %5629 = vst [vmem:[#allocation53_spill] sm:$0xff] %v3480_v23  ;;  %5630 = vst [vmem:[#allocation54_spill] sm:$0xff] %v3483_v9  ;;  %1108 = vrot.lane.b32.xlu0 %v3443_v26, %s3097_s5  ;;  %v3508_v26 = vld [vmem:[%s3176_s30 + $0x1c0] sm:$0xff]  ;;  %v556_v12 = vrot.slane %v3483_v9, 1  ;;  %v567_v38 = vrot.slane %v3490_v5, 1  ;;  %v569_v25 = vrot.slane %v3493_v39, 1  ;;  %v3538_v23 = vpack.c.bf16 %v554_v44, %v552_v40 }
  0x3a   : > { %5631 = vst [vmem:[#allocation55_spill] sm:$0xff] %v3487_v11  ;;  %5632 = vst [vmem:[#allocation56_spill] sm:$0xff] %v3490_v5  ;;  %v3521_v3 = vld [vmem:[%s3176_s30 + $0x200] sm:$0x3]  ;;  %v571_v37 = vrot.slane %v3496_v56, 1  ;;  %v565_v17 = vrot.slane %v3508_v26, 1  ;;  %v3540_v5 = vpack.c.bf16 %v550_v54, %v548_v15 }
  0x3b   : > { %5633 = vst [vmem:[#allocation57_spill] sm:$0xff] %v3493_v39  ;;  %5634 = vst [vmem:[#allocation58_spill] sm:$0xff] %v3496_v56  ;;  %v576_v10 = vrot.slane %v3511_v30, 1  ;;  %v578_v16 = vrot.slane %v3518_v63, 1  ;;  %v580_v9 = vrot.slane %v3521_v3, 1  ;;  %v3546_v39 = vld [vmem:[%s3176_s30 + $0x1e8] sm:$0xff]  ;;  %v559_v40 = vsel %vm464_vm0, %v556_v12, %v558_v47 }
  0x3c   : > { %5635 = vst [vmem:[#allocation59_spill] sm:$0xff] %v3498_v61  ;;  %5636 = vst [vmem:[#allocation60_spill] sm:$0xff] %v3500_v55  ;;  %1114 = vrot.lane.b32.xlu1 %v3474_v62, %s3097_s5  ;;  %v564_v62 = vrot.slane %v3505_v48, 1  ;;  %v3555_v44 = vld [vmem:[%s3176_s30 + $0x218] sm:$0xff]  ;;  %v3558_v15 = vld [vmem:[%s3176_s30 + $0x220] sm:$0xff]  ;;  %v570_v54 = vsel %vm464_vm0, %v567_v38, %v569_v25  ;;  %s5914_s24 = smov (!%p286_p8, %s2852_s24), 127 }
  0x3d   : > { %5637 = vst [vmem:[#allocation61_spill] sm:$0xff] %v3505_v48  ;;  %5638 = vst [vmem:[#allocation62_spill] sm:$0xff] %v3508_v26  ;;  %1112 = vrot.lane.b32.xlu0 %v3487_v11, %s3097_s5  ;;  %v3543_v11 = vld [vmem:[%s3176_s30 + $0x1e0] sm:$0xff]  ;;  %v561_v26 = vsel %vm464_vm0, %v558_v47, %v560_v18  ;;  %v581_v47 = vsel %vm464_vm0, %v578_v16, %v580_v9  ;;  %v3571_v48 = vld [vmem:[%s3176_s30 + $0x228] sm:$0x3]  ;;  %v587_v56 = vrot.slane %v3558_v15, 1 }
  0x3e   : > { %5639 = vst [vmem:[#allocation63_spill] sm:$0xff] %v3511_v30  ;;  %5640 = vst [vmem:[#allocation64_spill] sm:$0xff] %v3518_v63  ;;  %v563_v30 = vsel %vm464_vm0, %v560_v18, %v562_v50  ;;  %v557_v63 = vsel %vm464_vm0, %v555_v45, %v556_v12  ;;  %v566_v18 = vsel %vm464_vm0, %v564_v62, %v565_v17  ;;  %v573_v12 = vrot.slane %v3543_v11, 1  ;;  %v3586_v62 = vld [vmem:[%s3176_s30 + $0x240] sm:$0xff]  ;;  %s2853_s15 = sshll.u32 %s5910_s16, 7 }
  0x3f   : > { %5641 = vst [vmem:[#allocation65_spill] sm:$0xff] %v3521_v3  ;;  %5642 = vst [vmem:[#allocation66_spill] sm:$0xff] %v3538_v23  ;;  %v568_v50 = vsel %vm464_vm0, %v565_v17, %v567_v38  ;;  %v579_v45 = vsel %vm464_vm0, %v576_v10, %v578_v16  ;;  %v574_v3 = vrot.slane %v3546_v39, 1  ;;  %v3580_v17 = vpack.c.bf16 %v563_v30, %v561_v26  ;;  %s289_s16 = sadd.s32 %s2853_s15, %s5914_s24 }
  0x40   : > { %5643 = vst [vmem:[#allocation67_spill] sm:$0xff] %v3540_v5  ;;  %5644 = vst [vmem:[#allocation68_spill] sm:$0xff] %v3543_v11  ;;  %1118 = vrot.lane.b32.xlu1 %v3498_v61, %s3097_s5  ;;  %v572_v61 = vsel %vm464_vm0, %v569_v25, %v571_v37  ;;  %v3576_v25 = vld [vmem:[%s3176_s30 + $0x208] sm:$0xff]  ;;  %v3583_v37 = vld [vmem:[%s3176_s30 + $0x210] sm:$0xff]  ;;  %v3590_v9 = vpack.c.bf16 %v559_v40, %v557_v63  ;;  %v3594_v16 = vpack.c.bf16 %v568_v50, %v566_v18 }
  0x41   : > { %5645 = vst [vmem:[#allocation69_spill] sm:$0xff] %v3546_v39  ;;  %5646 = vst [vmem:[#allocation70_spill] sm:$0xff] %v3555_v44  ;;  %1116 = vrot.lane.b32.xlu0 %v3500_v55, %s3097_s5  ;;  %v585_v55 = vrot.slane %v3555_v44, 1  ;;  %v3592_v38 = vpack.c.bf16 %v572_v61, %v570_v54  ;;  %v575_v26 = vsel %vm464_vm0, %v573_v12, %v574_v3  ;;  %v589_v44 = vrot.slane %v3571_v48, 1  ;;  %v3606_v11 = vld [vmem:[%s3176_s30 + $0x250] sm:$0x3] }
  0x42   : > { %5647 = vst [vmem:[#allocation71_spill] sm:$0xff] %v3558_v15  ;;  %5648 = vst [vmem:[#allocation72_spill] sm:$0xff] %v3576_v25  ;;  %v3596_v15 = vpack.c.bf16 %v581_v47, %v579_v45  ;;  %v577_v30 = vsel %vm464_vm0, %v574_v3, %v576_v10  ;;  %v582_v39 = vrot.slane %v3576_v25, 1  ;;  %v3609_v63 = vld [vmem:[%s3176_s30 + $0x230] sm:$0xff]  ;;  %v583_v40 = vrot.slane %v3583_v37, 1  ;;  %v3615_v18 = vld [vmem:[%s3176_s30 + $0x238] sm:$0xff] }
  0x43   : > { %5649 = vst [vmem:[#allocation73_spill] sm:$0xff] %v3580_v17  ;;  %5650 = vst [vmem:[#allocation74_spill] sm:$0xff] %v3583_v37  ;;  %v588_v61 = vsel %vm464_vm0, %v585_v55, %v587_v56  ;;  %v594_v54 = vrot.slane %v3586_v62, 1  ;;  %v674_v50 = vrot.slane %v3191_v6, 2  ;;  %v675_v45 = vrot.slane %v3194_v7, 2  ;;  %v3636_v7 = vld [vmem:[%s3176_s30 + $0x270] sm:$0xff] }
  0x44   : > { %1122 = vrot.lane.b32.xlu1 %v3538_v23, %s3097_s5  ;;  %5651 = vst [vmem:[#allocation75_spill] sm:$0xff] %v3586_v62  ;;  %5652 = vst [vmem:[#allocation76_spill] sm:$0xff] %v3590_v9  ;;  %v3599_v23 = vld [vmem:[%s3176_s30 + $0x248] sm:$0xff]  ;;  %v3626_v12 = vpack.c.bf16 %v577_v30, %v575_v26  ;;  %v598_v3 = vrot.slane %v3606_v11, 1  ;;  %v592_v6 = vrot.slane %v3615_v18, 1  ;;  %v5662_v26 = vrot.slane %v3197_v8, 2 }
  0x45   : > { %1120 = vrot.lane.b32.xlu0 %v3540_v5, %s3097_s5  ;;  %5653 = vst [vmem:[#allocation77_spill] sm:$0xff] %v3592_v38  ;;  %5654 = vst [vmem:[#allocation78_spill] sm:$0xff] %v3594_v16  ;;  %v596_v10 = vrot.slane %v3599_v23, 1  ;;  %v591_v5 = vrot.slane %v3609_v63, 1  ;;  %v3639_v47 = vld [vmem:[%s3176_s30 + $0x278] sm:$0x3]  ;;  %v3642_v62 = vsel %vm673_vm1, %v674_v50, %v675_v45 }
  0x46   : > { %5655 = vst [vmem:[#allocation79_spill] sm:$0xff] %v3596_v15  ;;  %5656 = vst [vmem:[#allocation80_spill] sm:$0xff] %v3599_v23  ;;  %v683_v23 = vrot.slane %v3179_v0, 2  ;;  %v3647_v30 = vsel %vm673_vm1, %v675_v45, %v5662_v26  ;;  %v584_v0 = vsel %vm464_vm0, %v582_v39, %v583_v40  ;;  %v3657_v37 = vld [vmem:[%s3176_s30 + $0x260] sm:$0xff]  ;;  %v5663_v39 = vrot.slane %v3185_v2, 2 }
  0x47   : > { %5657 = vst [vmem:[#allocation81_spill] sm:$0xff] %v3606_v11  ;;  %5658 = vst [vmem:[#allocation82_spill] sm:$0xff] %v3609_v63  ;;  %v590_v63 = vsel %vm464_vm0, %v587_v56, %v589_v44  ;;  %v3654_v11 = vld [vmem:[%s3176_s30 + $0x258] sm:$0xff]  ;;  %v597_v45 = vsel %vm464_vm0, %v594_v54, %v596_v10  ;;  %v599_v44 = vsel %vm464_vm0, %v596_v10, %v598_v3  ;;  %v607_v26 = vrot.slane %v3639_v47, 1 }
  0x48   : > { %5659 = vst [vmem:[#allocation83_spill] sm:$0xff] %v3615_v18  ;;  %1126 = vrot.lane.b32.xlu1 %v3580_v17, %s3097_s5  ;;  %5660 = vst [vmem:[#allocation84_spill] sm:$0xff] %v3626_v12  ;;  %v3631_v17 = vld [vmem:[%s3176_s30 + $0x268] sm:$0xff]  ;;  %v586_v18 = vsel %vm464_vm0, %v583_v40, %v585_v55  ;;  %v605_v40 = vrot.slane %v3636_v7, 1  ;;  %v601_v25 = vrot.slane %v3657_v37, 1  ;;  %v3688_v10 = vpack.c.bf16 %v599_v44, %v597_v45 }
  0x49   : > { %1124 = vrot.lane.b32.xlu0 %v3590_v9, %s3097_s5  ;;  %5661 = vst [vmem:[#allocation85_spill] sm:$0xff] %v3631_v17  ;;  %v684_v9 = vrot.slane %v3182_v1, 2  ;;  %v603_v1 = vrot.slane %v3631_v17, 1  ;;  %v595_v17 = vsel %vm464_vm0, %v592_v6, %v594_v54  ;;  %v3684_v3 = vpack.c.bf16 %v586_v18, %v584_v0 }
  0x4a   : > { %5667 = vst [vmem:[#allocation89_spill] sm:$0xff] %v3688_v10  ;;  %v688_v18 = vrot.slane %v3207_v13, 2  ;;  %v690_v0 = vrot.slane %v3210_v14, 2  ;;  %v695_v45 = vrot.slane %v3225_v22, 2  ;;  %v706_v14 = vrot.slane %v3251_v36, 2  ;;  %v5715_v36 = vld [vmem:[#allocation40_spill] sm:$0xff] }
  0x4b   : > { %v685_v56 = vsel %vm673_vm1, %v683_v23, %v684_v9  ;;  %v687_v55 = vsel %vm673_vm1, %v684_v9, %v5663_v39  ;;  %v600_v23 = vrot.slane %v3654_v11, 1  ;;  %v3682_v9 = vpack.c.bf16 %v590_v63, %v588_v61  ;;  %5666 = vst [vmem:[#allocation88_spill] sm:$0xff] %v3684_v3 }
  0x4c   : > { %1130 = vrot.lane.b32.xlu1 %v3592_v38, %s3097_s5  ;;  %v3674_v50 = vpack.c.bf16 %v687_v55, %v685_v56  ;;  %v593_v38 = vsel %vm464_vm0, %v591_v5, %v592_v6  ;;  %v606_v6 = vsel %vm464_vm0, %v603_v1, %v605_v40  ;;  %v608_v5 = vsel %vm464_vm0, %v605_v40, %v607_v26 }
  0x4d   : > { %1128 = vrot.lane.b32.xlu0 %v3594_v16, %s3097_s5  ;;  %5665 = vst [vmem:[#allocation87_spill] sm:$0xff] %v3682_v9  ;;  %v3690_v56 = vpack.c.bf16 %v595_v17, %v593_v38  ;;  %v602_v54 = vsel %vm464_vm0, %v600_v23, %v601_v25  ;;  %v604_v39 = vsel %vm464_vm0, %v601_v25, %v603_v1  ;;  %v679_v63 = vrot.slane %v3219_v20, 2 }
  0x4e   : > { %5664 = vst [vmem:[#allocation86_spill] sm:$0xff] %v3674_v50  ;;  %v681_v61 = vrot.slane %v3222_v21, 2  ;;  %v697_v17 = vrot.slane %v3233_v27, 2  ;;  %v699_v38 = vrot.slane %v3236_v28, 2  ;;  %v692_v55 = vrot.slane %v3239_v29, 2  ;;  %v5716_v27 = vld [vmem:[#allocation41_spill] sm:$0xff] }
  0x4f   : > { %5668 = vst [vmem:[#allocation90_spill] sm:$0xff] %v3690_v56  ;;  %v693_v25 = vrot.slane %v3245_v34, 2  ;;  %v704_v20 = vrot.slane %v3248_v35, 2  ;;  %v708_v21 = vrot.slane %v3261_v41, 2  ;;  %v701_v1 = vrot.slane %v3269_v46, 2 }
  0x50   : > { %1134 = vrot.lane.b32.xlu1 %v3596_v15, %s3097_s5  ;;  %v702_v44 = vrot.slane %v3275_v51, 2  ;;  %v3714_v40 = vpack.c.bf16 %v608_v5, %v606_v6  ;;  %v3716_v28 = vpack.c.bf16 %v604_v39, %v602_v54  ;;  %v5671_v26 = vrot.slane %v3197_v8, 2 }
  0x51   : > { %1132 = vrot.lane.b32.xlu0 %v3626_v12, %s3097_s5  ;;  %v691_v41 = vsel %vm673_vm1, %v688_v18, %v690_v0  ;;  %v698_v6 = vsel %vm673_vm1, %v695_v45, %v697_v17  ;;  %v700_v5 = vsel %vm673_vm1, %v697_v17, %v699_v38  ;;  %v694_v54 = vsel %vm673_vm1, %v692_v55, %v693_v25 }
  0x52   : > { %5669 = vst [vmem:[#allocation91_spill] sm:$0xff] %v3714_v40  ;;  %5670 = vst [vmem:[#allocation92_spill] sm:$0xff] %v3716_v28  ;;  %v680_v23 = vsel %vm673_vm1, %v5671_v26, %v679_v63  ;;  %v696_v8 = vsel %vm673_vm1, %v693_v25, %v695_v45  ;;  %v703_v39 = vsel %vm673_vm1, %v701_v1, %v702_v44  ;;  %v717_v0 = vrot.slane %v3288_v58, 2 }
  0x53   : > { %v710_v17 = vrot.slane %v3291_v59, 2  ;;  %v711_v45 = vrot.slane %v3294_v60, 2  ;;  %v722_v38 = vrot.slane %v3305_v4, 2  ;;  %v724_v55 = vrot.slane %v3316_v19, 2  ;;  %v5708_v59 = vld [vmem:[#allocation81_spill] sm:$0xff] }
  0x54   : > { %1138 = vrot.lane.b32.xlu1 %v3682_v9, %s3097_s5  ;;  %v682_v9 = vsel %vm673_vm1, %v679_v63, %v681_v61  ;;  %v705_v63 = vsel %vm673_vm1, %v702_v44, %v704_v20  ;;  %v713_v61 = vrot.slane %v3278_v52, 2  ;;  %v726_v25 = vrot.slane %v3319_v24, 2 }
  0x55   : > { %1136 = vrot.lane.b32.xlu0 %v3684_v3, %s3097_s5  ;;  %v5672_v3 = vrot.slane %v3185_v2, 2  ;;  %v707_v2 = vsel %vm673_vm1, %v704_v20, %v706_v14  ;;  %v1009_v20 = vpack.c.bf16 %v682_v9, %v680_v23  ;;  %v3754_v1 = vpack.c.bf16 %v700_v5, %v698_v6 }
  0x56   : > { %v3756_v44 = vpack.c.bf16 %v696_v8, %v694_v54  ;;  %v3760_v24 = vpack.c.bf16 %v705_v63, %v703_v39  ;;  %v712_v23 = vsel %vm673_vm1, %v710_v17, %v711_v45  ;;  %v731_v5 = vrot.slane %v3331_v33, 2  ;;  %v5682_v17 = vld [vmem:[#allocation31_spill] sm:$0xff]  ;;  %v5701_v33 = vld [vmem:[#allocation74_spill] sm:$0xff] }
  0x57   : > { %v689_v15 = vsel %vm673_vm1, %v5672_v3, %v688_v18  ;;  %v709_v3 = vsel %vm673_vm1, %v706_v14, %v708_v21  ;;  %v715_v18 = vrot.slane %v3281_v53, 2  ;;  %v719_v14 = vrot.slane %v3325_v31, 2  ;;  %5674 = vst [vmem:[#allocation94_spill] sm:$0xff] %v3754_v1  ;;  %v5709_v53 = vld [vmem:[#allocation82_spill] sm:$0xff] }
  0x58   : > { %1142 = vrot.lane.b32.xlu1 %v3688_v10, %s3097_s5  ;;  %v720_v21 = vrot.slane %v3328_v32, 2  ;;  %v3752_v58 = vpack.c.bf16 %v691_v41, %v689_v15  ;;  %5675 = vst [vmem:[#allocation95_spill] sm:$0xff] %v3756_v44  ;;  %v3758_v26 = vpack.c.bf16 %v709_v3, %v707_v2  ;;  %5677 = vst [vmem:[#allocation97_spill] sm:$0xff] %v3760_v24  ;;  %v733_v54 = vrot.slane %v3341_v42, 2 }
  0x59   : > { %1140 = vrot.lane.b32.xlu0 %v3690_v56, %s3097_s5  ;;  %v718_v9 = vsel %vm673_vm1, %v715_v18, %v717_v0  ;;  %v714_v10 = vsel %vm673_vm1, %v711_v45, %v713_v61  ;;  %v727_v15 = vsel %vm673_vm1, %v724_v55, %v726_v25  ;;  %v5678_v8 = vpack.c.bf16 %v3647_v30, %v3642_v62  ;;  %v5686_v30 = vld [vmem:[#allocation33_spill] sm:$0xff]  ;;  %v5692_v56 = vld [vmem:[#allocation62_spill] sm:$0xff] }
  0x5a   : > { %5673 = vst [vmem:[#allocation93_spill] sm:$0xff] %v3752_v58  ;;  %5676 = vst [vmem:[#allocation96_spill] sm:$0xff] %v3758_v26  ;;  %v721_v41 = vsel %vm673_vm1, %v719_v14, %v720_v21  ;;  %v723_v6 = vsel %vm673_vm1, %v720_v21, %v722_v38  ;;  %v735_v3 = vrot.slane %v3344_v43, 2  ;;  %v728_v39 = vrot.slane %v3353_v49, 2  ;;  %v5688_v14 = vld [vmem:[#allocation56_spill] sm:$0xff] }
  0x5b   : > { %v729_v63 = vrot.slane %v3360_v57, 2  ;;  %v742_v45 = vrot.slane %v5682_v17, 2  ;;  %v3789_v62 = vpack.c.bf16 %v723_v6, %v721_v41  ;;  %v776_v21 = vrot.slane %v5688_v14, 2  ;;  %v5691_v41 = vld [vmem:[#allocation61_spill] sm:$0xff] }
  0x5c   : > { %1146 = vrot.lane.b32.xlu1 %v3714_v40, %s3097_s5  ;;  %v716_v40 = vsel %vm673_vm1, %v713_v61, %v715_v18  ;;  %v3782_v61 = vpack.c.bf16 %v714_v10, %v712_v23  ;;  %v5681_v18 = vld [vmem:[#allocation29_spill] sm:$0xff]  ;;  %v3796_v10 = vsel %vm673_vm1, %v731_v5, %v733_v54  ;;  %v773_v6 = vrot.slane %v5691_v41, 2 }
  0x5d   : > { %1144 = vrot.lane.b32.xlu0 %v3716_v28, %s3097_s5  ;;  %v725_v28 = vsel %vm673_vm1, %v722_v38, %v724_v55  ;;  %v3777_v2 = vpack.c.bf16 %v718_v9, %v716_v40  ;;  %v740_v0 = vrot.slane %v5681_v18, 2  ;;  %v5683_v38 = vld [vmem:[#allocation32_spill] sm:$0xff]  ;;  %5685 = vst [vmem:[#allocation100_spill] sm:$0xff] %v3789_v62  ;;  %v737_v40 = vrot.slane %v5686_v30, 2  ;;  %v5689_v9 = vld [vmem:[#allocation57_spill] sm:$0xff] }
  0x5e   : > { %5680 = vst [vmem:[#allocation99_spill] sm:$0xff] %v3782_v61  ;;  %v744_v55 = vrot.slane %v5683_v38, 2  ;;  %v3787_v25 = vpack.c.bf16 %v727_v15, %v725_v28  ;;  %v778_v23 = vrot.slane %v5689_v9, 2  ;;  %v3804_v28 = vsel %vm673_vm1, %v733_v54, %v735_v3  ;;  %v5694_v30 = vld [vmem:[#allocation64_spill] sm:$0xff]  ;;  %v5697_v18 = vld [vmem:[#allocation69_spill] sm:$0xff] }
  0x5f   : > { %5679 = vst [vmem:[#allocation98_spill] sm:$0xff] %v3777_v2  ;;  %v3807_v15 = vsel %vm673_vm1, %v728_v39, %v729_v63  ;;  %v774_v12 = vrot.slane %v5692_v56, 2  ;;  %v3812_v16 = vsel %vm673_vm1, %v729_v63, %v731_v5  ;;  %v787_v17 = vrot.slane %v5694_v30, 2 }
  0x60   : > { %1182 = vrot.lane.b32.xlu1 %v1009_v20, %s3098_s6  ;;  %5684 = vst [vmem:[#allocation32_spill] sm:$0xff] %v3787_v25  ;;  %v5687_v20 = vld [vmem:[#allocation35_spill] sm:$0xff]  ;;  %v792_v32 = vrot.slane %v5701_v33, 2  ;;  %v816_v52 = vrot.slane %v3639_v47, 2  ;;  %v809_v46 = vrot.slane %v3654_v11, 2  ;;  %v746_v35 = vrot.slane %v5715_v36, 2 }
  0x61   : > { %1180 = vrot.lane.b32.xlu0 %v5678_v8, %s3098_s6  ;;  %v738_v43 = vrot.slane %v5687_v20, 2  ;;  %v5690_v8 = vld [vmem:[#allocation58_spill] sm:$0xff]  ;;  %v775_v39 = vsel %vm673_vm1, %v773_v6, %v774_v12  ;;  %v777_v20 = vsel %vm673_vm1, %v774_v12, %v776_v21  ;;  %v783_v12 = vrot.slane %v5697_v18, 2 }
  0x62   : > { %v780_v38 = vrot.slane %v5690_v8, 2  ;;  %v3818_v8 = vsel %vm673_vm1, %v742_v45, %v744_v55  ;;  %v3831_v63 = vpack.c.bf16 %v777_v20, %v775_v39  ;;  %v798_v39 = vrot.slane %v3571_v48, 2 }
  0x63   : > { %v3822_v54 = vsel %vm673_vm1, %v737_v40, %v738_v43  ;;  %v5695_v40 = vld [vmem:[#allocation65_spill] sm:$0xff]  ;;  %v3899_v47 = vpack.c.bf16 %v3804_v28, %v3796_v10 }
  0x64   : > { %1186 = vrot.lane.b32.xlu1 %v3752_v58, %s3098_s6  ;;  %v3815_v58 = vsel %vm673_vm1, %v740_v0, %v742_v45  ;;  %v781_v3 = vsel %vm673_vm1, %v778_v23, %v780_v38  ;;  %v5693_v45 = vld [vmem:[#allocation63_spill] sm:$0xff]  ;;  %v5696_v38 = vld [vmem:[#allocation68_spill] sm:$0xff] }
  0x65   : > { %1184 = vrot.lane.b32.xlu0 %v3674_v50, %s3098_s6  ;;  %v779_v50 = vsel %vm673_vm1, %v776_v21, %v778_v23  ;;  %v785_v55 = vrot.slane %v5693_v45, 2  ;;  %v789_v23 = vrot.slane %v5695_v40, 2  ;;  %v782_v6 = vrot.slane %v5696_v38, 2  ;;  %v5698_v21 = vld [vmem:[#allocation70_spill] sm:$0xff]  ;;  %5717 = vst [vmem:[#allocation62_spill] sm:$0xff] %v3899_v47 }
  0x66   : > { %v3829_v5 = vpack.c.bf16 %v781_v3, %v779_v50  ;;  %v794_v57 = vrot.slane %v5698_v21, 2  ;;  %v5699_v3 = vld [vmem:[#allocation71_spill] sm:$0xff] }
  0x67   : > { %v788_v50 = vsel %vm673_vm1, %v785_v55, %v787_v17  ;;  %v796_v20 = vrot.slane %v5699_v3, 2  ;;  %v790_v42 = vsel %vm673_vm1, %v787_v17, %v789_v23  ;;  %v786_v40 = vsel %vm673_vm1, %v783_v12, %v785_v55 }
  0x68   : > { %1190 = vrot.lane.b32.xlu1 %v3754_v1, %s3098_s6  ;;  %v5700_v1 = vld [vmem:[#allocation72_spill] sm:$0xff]  ;;  %v3851_v31 = vpack.c.bf16 %v790_v42, %v788_v50  ;;  %v741_v17 = vsel %vm673_vm1, %v738_v43, %v740_v0  ;;  %v800_v0 = vrot.slane %v5709_v53, 2 }
  0x69   : > { %1188 = vrot.lane.b32.xlu0 %v3756_v44, %s3098_s6  ;;  %v791_v49 = vrot.slane %v5700_v1, 2  ;;  %v784_v44 = vsel %vm673_vm1, %v782_v6, %v783_v12  ;;  %v797_v4 = vsel %vm673_vm1, %v794_v57, %v796_v20  ;;  %v799_v48 = vsel %vm673_vm1, %v796_v20, %v798_v39  ;;  %v5703_v12 = vld [vmem:[#allocation36_spill] sm:$0xff]  ;;  %v5707_v20 = vld [vmem:[#allocation37_spill] sm:$0xff] }
  0x6a   : > { %v3853_v19 = vpack.c.bf16 %v786_v40, %v784_v44  ;;  %v3860_v23 = vpack.c.bf16 %v799_v48, %v797_v4  ;;  %v795_v6 = vsel %vm673_vm1, %v792_v32, %v794_v57  ;;  %v749_v42 = vrot.slane %v5703_v12, 2  ;;  %v5705_v44 = vld [vmem:[#allocation75_spill] sm:$0xff]  ;;  %v5712_v48 = vld [vmem:[#allocation85_spill] sm:$0xff] }
  0x6b   : > { %v793_v55 = vsel %vm673_vm1, %v791_v49, %v792_v32  ;;  %v803_v40 = vrot.slane %v5705_v44, 2  ;;  %v751_v39 = vrot.slane %v5707_v20, 2  ;;  %v5710_v4 = vld [vmem:[#allocation83_spill] sm:$0xff] }
  0x6c   : > { %1194 = vrot.lane.b32.xlu1 %v3758_v26, %s3098_s6  ;;  %5702 = vst [vmem:[#allocation56_spill] sm:$0xff] %v3860_v23  ;;  %v3865_v50 = vpack.c.bf16 %v795_v6, %v793_v55  ;;  %v5706_v26 = vld [vmem:[#allocation80_spill] sm:$0xff]  ;;  %v801_v43 = vrot.slane %v5710_v4, 2  ;;  %v5711_v32 = vld [vmem:[#allocation39_spill] sm:$0xff]  ;;  %v812_v55 = vrot.slane %v5712_v48, 2  ;;  %v814_v6 = vrot.slane %v3636_v7, 2 }
  0x6d   : > { %1192 = vrot.lane.b32.xlu0 %v3760_v24, %s3098_s6  ;;  %v805_v60 = vrot.slane %v5706_v26, 2  ;;  %v807_v24 = vrot.slane %v5708_v59, 2  ;;  %v753_v49 = vrot.slane %v5711_v32, 2  ;;  %v752_v28 = vsel %vm673_vm1, %v749_v42, %v751_v39 }
  0x6e   : > { %5704 = vst [vmem:[#allocation57_spill] sm:$0xff] %v3865_v50  ;;  %v802_v20 = vsel %vm673_vm1, %v800_v0, %v801_v43  ;;  %v804_v12 = vsel %vm673_vm1, %v801_v43, %v803_v40  ;;  %v815_v51 = vsel %vm673_vm1, %v812_v55, %v814_v6 }
  0x6f   : > { %v806_v57 = vsel %vm673_vm1, %v803_v40, %v805_v60  ;;  %v808_v59 = vsel %vm673_vm1, %v805_v60, %v807_v24  ;;  %v3887_v32 = vpack.c.bf16 %v804_v12, %v802_v20  ;;  %v817_v60 = vsel %vm673_vm1, %v814_v6, %v816_v52 }
  0x70   : > { %1198 = vrot.lane.b32.xlu1 %v3777_v2, %s3098_s6  ;;  %v3885_v2 = vpack.c.bf16 %v808_v59, %v806_v57  ;;  %v810_v24 = vrot.slane %v3657_v37, 2  ;;  %v3903_v12 = vpack.c.bf16 %v3812_v16, %v3807_v15  ;;  %v3905_v40 = vpack.c.bf16 %v817_v60, %v815_v51  ;;  %v5722_v16 = vld [vmem:[#allocation42_spill] sm:$0xff]  ;;  %v5723_v51 = vld [vmem:[#allocation43_spill] sm:$0xff] }
  0x71   : > { %1196 = vrot.lane.b32.xlu0 %v3782_v61, %s3098_s6  ;;  %5714 = vst [vmem:[#allocation61_spill] sm:$0xff] %v3887_v32  ;;  %v747_v61 = vrot.slane %v5716_v27, 2  ;;  %v3911_v52 = vpack.c.bf16 %v3818_v8, %v3815_v58  ;;  %v3914_v20 = vpack.c.bf16 %v741_v17, %v3822_v54  ;;  %v758_v15 = vrot.slane %v5722_v16, 2  ;;  %v5725_v8 = vld [vmem:[#allocation44_spill] sm:$0xff]  ;;  %v5726_v54 = vld [vmem:[#allocation47_spill] sm:$0xff] }
  0x72   : > { %5713 = vst [vmem:[#allocation58_spill] sm:$0xff] %v3885_v2  ;;  %5718 = vst [vmem:[#allocation63_spill] sm:$0xff] %v3903_v12  ;;  %v811_v0 = vsel %vm673_vm1, %v809_v46, %v810_v24  ;;  %v813_v10 = vsel %vm673_vm1, %v810_v24, %v812_v55  ;;  %v760_v43 = vrot.slane %v5723_v51, 2  ;;  %v754_v6 = vsel %vm673_vm1, %v751_v39, %v753_v49  ;;  %v5727_v55 = vld [vmem:[#allocation48_spill] sm:$0xff]  ;;  %v5734_v49 = vld [vmem:[#allocation54_spill] sm:$0xff] }
  0x73   : > { %5719 = vst [vmem:[#allocation64_spill] sm:$0xff] %v3905_v40  ;;  %5720 = vst [vmem:[#allocation65_spill] sm:$0xff] %v3911_v52  ;;  %v3921_v57 = vpack.c.bf16 %v813_v10, %v811_v0  ;;  %v748_v58 = vsel %vm673_vm1, %v746_v35, %v747_v61  ;;  %v762_v59 = vrot.slane %v5725_v8, 2  ;;  %v755_v17 = vrot.slane %v5726_v54, 2 }
  0x74   : > { %1202 = vrot.lane.b32.xlu1 %v3787_v25, %s3098_s6  ;;  %5721 = vst [vmem:[#allocation68_spill] sm:$0xff] %v3914_v20  ;;  %v750_v46 = vsel %vm673_vm1, %v747_v61, %v749_v42  ;;  %v756_v60 = vrot.slane %v5727_v55, 2  ;;  %v3933_v24 = vpack.c.bf16 %v5689_v9, %v5688_v14  ;;  %v3937_v39 = vpack.c.bf16 %v5692_v56, %v5691_v41 }
  0x75   : > { %1200 = vrot.lane.b32.xlu0 %v3789_v62, %s3098_s6  ;;  %5724 = vst [vmem:[#allocation69_spill] sm:$0xff] %v3921_v57  ;;  %v3943_v35 = vpack.c.bf16 %v5694_v30, %v5693_v45  ;;  %v3947_v61 = vpack.c.bf16 %v5697_v18, %v5696_v38  ;;  %v3951_v42 = vpack.c.bf16 %v5699_v3, %v5698_v21  ;;  %v5731_v45 = vld [vmem:[#allocation50_spill] sm:$0xff] }
  0x76   : > { %v3955_v14 = vpack.c.bf16 %v5701_v33, %v5700_v1  ;;  %v3959_v56 = vpack.c.bf16 %v5706_v26, %v5705_v44  ;;  %v3963_v30 = vpack.c.bf16 %v5710_v4, %v5709_v53  ;;  %v3967_v18 = vpack.c.bf16 %v3636_v7, %v5712_v48  ;;  %v5730_v7 = vld [vmem:[#allocation49_spill] sm:$0xff] }
  0x77   : > { %v3971_v9 = vpack.c.bf16 %v3657_v37, %v3654_v11  ;;  %v3975_v33 = vpack.c.bf16 %v754_v6, %v752_v28  ;;  %v3977_v1 = vpack.c.bf16 %v750_v46, %v748_v58  ;;  %v761_v26 = vsel %vm673_vm1, %v758_v15, %v760_v43  ;;  %v5732_v11 = vld [vmem:[#allocation52_spill] sm:$0xff]  ;;  %v5733_v44 = vld [vmem:[#allocation53_spill] sm:$0xff] }
  0x78   : > { %1206 = vrot.lane.b32.xlu1 %v3899_v47, %s3098_s6  ;;  %v763_v53 = vsel %vm673_vm1, %v760_v43, %v762_v59  ;;  %v767_v41 = vrot.slane %v5730_v7, 2  ;;  %v769_v38 = vrot.slane %v5731_v45, 2  ;;  %v771_v37 = vrot.slane %v5732_v11, 2  ;;  %v3054_v11 = vld [vmem:[%s3176_s30 + $0x38] sm:$0xff] }
  0x79   : > { %1204 = vrot.lane.b32.xlu0 %v3903_v12, %s3098_s6  ;;  %5728 = vst [vmem:[#allocation70_spill] sm:$0xff] %v3975_v33  ;;  %5729 = vst [vmem:[#allocation71_spill] sm:$0xff] %v3977_v1  ;;  %v757_v21 = vsel %vm673_vm1, %v755_v17, %v756_v60  ;;  %v759_v3 = vsel %vm673_vm1, %v756_v60, %v758_v15  ;;  %v764_v4 = vrot.slane %v5733_v44, 2  ;;  %v765_v48 = vrot.slane %v5734_v49, 2 }
  0x7a   : > { %v3992_v0 = vpack.c.bf16 %v763_v53, %v761_v26  ;;  %v3996_v10 = vpack.c.bf16 %v759_v3, %v757_v21  ;;  %v770_v28 = vsel %vm673_vm1, %v767_v41, %v769_v38  ;;  %v772_v43 = vsel %vm673_vm1, %v769_v38, %v771_v37  ;;  %v5742_v21 = vld [vmem:[#allocation4_spill] sm:$0xff]  ;;  %v5743_v3 = vld [vmem:[#allocation6_spill] sm:$0xff] }
  0x7b   : > { %v766_v15 = vsel %vm673_vm1, %v764_v4, %v765_v48  ;;  %v768_v6 = vsel %vm673_vm1, %v765_v48, %v767_v41  ;;  %v4004_v58 = vpack.c.bf16 %v772_v43, %v770_v28  ;;  %v4038_v26 = vpack.c.bf16 %v3245_v34, %v3239_v29  ;;  %v5745_v43 = vld [vmem:[#allocation8_spill] sm:$0xff] }
  0x7c   : > { %1210 = vrot.lane.b32.xlu1 %v3911_v52, %s3098_s6  ;;  %5735 = vst [vmem:[#allocation72_spill] sm:$0xff] %v3992_v0  ;;  %5736 = vst [vmem:[#allocation74_spill] sm:$0xff] %v3996_v10  ;;  %v4008_v8 = vpack.c.bf16 %v768_v6, %v766_v15  ;;  %v4054_v29 = vpack.c.bf16 %v3207_v13, %v3054_v11  ;;  %v4066_v4 = vpack.c.bf16 %v5743_v3, %v3225_v22  ;;  %v5744_v13 = vld [vmem:[#allocation7_spill] sm:$0xff] }
  0x7d   : > { %1208 = vrot.lane.b32.xlu0 %v3914_v20, %s3098_s6  ;;  %v4078_v15 = vpack.c.bf16 %v5745_v43, %v5744_v13  ;;  %v5747_v11 = vld [vmem:[#allocation11_spill] sm:$0xff]  ;;  %v5750_v43 = vld [vmem:[#allocation14_spill] sm:$0xff] }
  0x7e   : > { %5741 = vst [vmem:[#allocation83_spill] sm:$0xff] %v4054_v29 }
  0x80   : > { %1214 = vrot.lane.b32.xlu1 %v3975_v33, %s3098_s6  ;;  %v5748_v33 = vld [vmem:[#allocation12_spill] sm:$0xff] }
  0x81   : > { %1212 = vrot.lane.b32.xlu0 %v3977_v1, %s3098_s6  ;;  %v5749_v1 = vld [vmem:[#allocation13_spill] sm:$0xff] }
  0x82   : > { %v4094_v52 = vpack.c.bf16 %v5749_v1, %v5748_v33  ;;  %v5754_v1 = vld [vmem:[#allocation20_spill] sm:$0xff] }
  0x84   : > { %1218 = vrot.lane.b32.xlu1 %v3992_v0, %s3098_s6 }
  0x85   : > { %1216 = vrot.lane.b32.xlu0 %v3996_v10, %s3098_s6 }
  0x88   : > { %1222 = vrot.lane.b32.xlu1 %v4004_v58, %s3098_s6 }
  0x89   : > { %1220 = vrot.lane.b32.xlu0 %v4008_v8, %s3098_s6 }
  0x8c   : > { %1226 = vrot.lane.b32.xlu1 %v3829_v5, %s3098_s6 }
  0x8d   : > { %1224 = vrot.lane.b32.xlu0 %v3831_v63, %s3098_s6 }
  0x90   : > { %1230 = vrot.lane.b32.xlu1 %v3851_v31, %s3098_s6 }
  0x91   : > { %1228 = vrot.lane.b32.xlu0 %v3853_v19, %s3098_s6 }
  0x92   : > { %v4022_v59 = vpop.permute.xlu1 %1088 }
  0x93   : > { %5737 = vst [vmem:[#allocation75_spill] sm:$0xff] %v4022_v59  ;;  %v4024_v17 = vpop.permute.xlu0 %1084  ;;  %v5763_v59 = vld [vmem:[#allocation31_spill] sm:$0xff] }
  0x94   : > { %5738 = vst [vmem:[#allocation80_spill] sm:$0xff] %v4024_v17  ;;  %1234 = vrot.lane.b32.xlu1 %v3860_v23, %s3098_s6  ;;  %v5766_v23 = vld [vmem:[#allocation35_spill] sm:$0xff] }
  0x95   : > { %1232 = vrot.lane.b32.xlu0 %v3865_v50, %s3098_s6  ;;  %v4160_v50 = vpack.c.bf16 %v5734_v49, %v5733_v44  ;;  %v4186_v49 = vpack.c.bf16 %v5723_v51, %v5722_v16 }
  0x96   : > { %v4030_v46 = vpop.permute.xlu1 %1090 }
  0x97   : > { %5739 = vst [vmem:[#allocation81_spill] sm:$0xff] %v4030_v46  ;;  %v4032_v60 = vpop.permute.xlu0 %1086  ;;  %v5760_v46 = vld [vmem:[#allocation27_spill] sm:$0xff]  ;;  %5772 = vst [vmem:[#allocation44_spill] sm:$0xff] %v4186_v49 }
  0x98   : > { %5740 = vst [vmem:[#allocation82_spill] sm:$0xff] %v4032_v60  ;;  %1238 = vrot.lane.b32.xlu1 %v3885_v2, %s3098_s6  ;;  %v5755_v2 = vld [vmem:[#allocation21_spill] sm:$0xff] }
  0x99   : > { %1236 = vrot.lane.b32.xlu0 %v3887_v32, %s3098_s6  ;;  %v4116_v12 = vpack.c.bf16 %v5755_v2, %v5754_v1  ;;  %v5757_v32 = vld [vmem:[#allocation25_spill] sm:$0xff] }
  0x9a   : > { %v4042_v53 = vpop.permute.xlu1 %1094  ;;  %v5762_v1 = vld [vmem:[#allocation29_spill] sm:$0xff] }
  0x9b   : > { %v1093_v41 = vpop.permute.xlu0 %1092  ;;  %v4142_v25 = vpack.c.bf16 %v5763_v59, %v5762_v1  ;;  %v5768_v59 = vld [vmem:[#allocation36_spill] sm:$0xff]  ;;  %v5769_v1 = vld [vmem:[#allocation37_spill] sm:$0xff] }
  0x9c   : > { %v4046_v38 = vsel %vm1670_vm2, %v4038_v26, %v1093_v41  ;;  %1242 = vrot.lane.b32.xlu1 %v3905_v40, %s3098_s6  ;;  %v5746_v41 = vld [vmem:[#allocation10_spill] sm:$0xff]  ;;  %v5751_v40 = vld [vmem:[#allocation15_spill] sm:$0xff] }
  0x9d   : > { %1240 = vrot.lane.b32.xlu0 %v3921_v57, %s3098_s6  ;;  %v4084_v22 = vpack.c.bf16 %v5747_v11, %v5746_v41  ;;  %v4100_v20 = vpack.c.bf16 %v5751_v40, %v5750_v43  ;;  %v5752_v11 = vld [vmem:[#allocation18_spill] sm:$0xff]  ;;  %v5753_v57 = vld [vmem:[#allocation19_spill] sm:$0xff]  ;;  %s2854_s6 = sshll.u32 %s289_s16, 3 }
  0x9e   : > { %v4056_v34 = vpop.permute.xlu1 %1098  ;;  %v4110_v47 = vpack.c.bf16 %v5753_v57, %v5752_v11  ;;  %v5756_v43 = vld [vmem:[#allocation22_spill] sm:$0xff] }
  0x9f   : > { %v4058_v37 = vpop.permute.xlu0 %1096  ;;  %v5759_v11 = vld [vmem:[#allocation26_spill] sm:$0xff] }
  0xa0   : > { %1278 = vrot.lane.b32.xlu1 %v4054_v29, %s3099_s7  ;;  %v4126_v29 = vpack.c.bf16 %v5757_v32, %v5756_v43  ;;  %v5765_v43 = vld [vmem:[#allocation33_spill] sm:$0xff] }
  0xa1   : > { %1276 = vrot.lane.b32.xlu0 %v5742_v21, %s3099_s7  ;;  %v4132_v21 = vpack.c.bf16 %v5760_v46, %v5759_v11  ;;  %v4148_v62 = vpack.c.bf16 %v5766_v23, %v5765_v43  ;;  %v4154_v11 = vpack.c.bf16 %v5731_v45, %v5730_v7  ;;  %v4166_v23 = vpack.c.bf16 %v5769_v1, %v5768_v59 }
  0xa2   : > { %v4068_v48 = vpop.permute.xlu1 %1102 }
  0xa3   : > { %v4070_v28 = vpop.permute.xlu0 %1100  ;;  %5770 = vst [vmem:[#allocation42_spill] sm:$0xff] %v4166_v23 }
  0xa4   : > { %1282 = vrot.lane.b32.xlu1 %v4066_v4, %s3099_s7 }
  0xa5   : > { %1280 = vrot.lane.b32.xlu0 %v4038_v26, %s3099_s7 }
  0xa6   : > { %v4080_v6 = vpop.permute.xlu1 %1106 }
  0xa7   : > { %v4086_v3 = vpop.permute.xlu0 %1104 }
  0xa8   : > { %1286 = vrot.lane.b32.xlu1 %v4078_v15, %s3099_s7 }
  0xa9   : > { %1284 = vrot.lane.b32.xlu0 %v4084_v22, %s3099_s7 }
  0xaa   : > { %v4096_v13 = vpop.permute.xlu1 %1110 }
  0xab   : > { %v4102_v41 = vpop.permute.xlu0 %1108 }
  0xac   : > { %1290 = vrot.lane.b32.xlu1 %v4094_v52, %s3099_s7 }
  0xad   : > { %1288 = vrot.lane.b32.xlu0 %v4100_v20, %s3099_s7 }
  0xae   : > { %v4112_v33 = vpop.permute.xlu1 %1114 }
  0xaf   : > { %v4118_v40 = vpop.permute.xlu0 %1112 }
  0xb0   : > { %1294 = vrot.lane.b32.xlu1 %v4110_v47, %s3099_s7 }
  0xb1   : > { %1292 = vrot.lane.b32.xlu0 %v4116_v12, %s3099_s7 }
  0xb2   : > { %v4128_v57 = vpop.permute.xlu1 %1118 }
  0xb3   : > { %5758 = vst [vmem:[#allocation39_spill] sm:$0xff] %v4128_v57  ;;  %v4134_v2 = vpop.permute.xlu0 %1116 }
  0xb4   : > { %5761 = vst [vmem:[#allocation85_spill] sm:$0xff] %v4134_v2  ;;  %1298 = vrot.lane.b32.xlu1 %v4126_v29, %s3099_s7  ;;  %v5779_v2 = vld [vmem:[#allocation66_spill] sm:$0xff] }
  0xb5   : > { %1296 = vrot.lane.b32.xlu0 %v4132_v21, %s3099_s7 }
  0xb6   : > { %v4144_v32 = vpop.permute.xlu1 %1122 }
  0xb7   : > { %5764 = vst [vmem:[#allocation40_spill] sm:$0xff] %v4144_v32  ;;  %v4150_v46 = vpop.permute.xlu0 %1120  ;;  %v4170_v32 = vpack.c.bf16 %v5716_v27, %v5715_v36  ;;  %v4192_v36 = vpack.c.bf16 %v5727_v55, %v5726_v54 }
  0xb8   : > { %5767 = vst [vmem:[#allocation41_spill] sm:$0xff] %v4150_v46  ;;  %1302 = vrot.lane.b32.xlu1 %v4142_v25, %s3099_s7  ;;  %v5775_v46 = vld [vmem:[#allocation9_spill] sm:$0xff] }
  0xb9   : > { %1300 = vrot.lane.b32.xlu0 %v4148_v62, %s3099_s7  ;;  %5771 = vst [vmem:[#allocation43_spill] sm:$0xff] %v4170_v32  ;;  %5773 = vst [vmem:[#allocation47_spill] sm:$0xff] %v4192_v36 }
  0xba   : > { %v1127_v43 = vpop.permute.xlu1 %1126 }
  0xbb   : > { %v4174_v7 = vsel %vm1670_vm2, %v4154_v11, %v1127_v43  ;;  %v1125_v45 = vpop.permute.xlu0 %1124 }
  0xbc   : > { %v4178_v44 = vsel %vm1670_vm2, %v4160_v50, %v1125_v45  ;;  %1306 = vrot.lane.b32.xlu1 %v4166_v23, %s3099_s7  ;;  %v5774_v45 = vld [vmem:[#allocation5_spill] sm:$0xff]  ;;  %v5776_v23 = vld [vmem:[#allocation67_spill] sm:$0xff] }
  0xbd   : > { %1304 = vrot.lane.b32.xlu0 %v4170_v32, %s3099_s7 }
  0xbe   : > { %v4188_v27 = vpop.permute.xlu1 %1130 }
  0xbf   : > { %v4194_v59 = vpop.permute.xlu0 %1128 }
  0xc0   : > { %1310 = vrot.lane.b32.xlu1 %v4186_v49, %s3099_s7 }
  0xc1   : > { %1308 = vrot.lane.b32.xlu0 %v4192_v36, %s3099_s7 }
  0xc2   : > { %v4200_v1 = vpop.permute.xlu1 %1134 }
  0xc3   : > { %v4202_v43 = vpop.permute.xlu0 %1132 }
  0xc4   : > { %1314 = vrot.lane.b32.xlu1 %v4154_v11, %s3099_s7 }
  0xc5   : > { %1312 = vrot.lane.b32.xlu0 %v4160_v50, %s3099_s7 }
  0xc6   : > { %v4208_v16 = vpop.permute.xlu1 %1138 }
  0xc7   : > { %v4210_v51 = vpop.permute.xlu0 %1136 }
  0xc8   : > { %1318 = vrot.lane.b32.xlu1 %v3933_v24, %s3099_s7 }
  0xc9   : > { %1316 = vrot.lane.b32.xlu0 %v3937_v39, %s3099_s7 }
  0xca   : > { %v4216_v54 = vpop.permute.xlu1 %1142 }
  0xcb   : > { %v4218_v55 = vpop.permute.xlu0 %1140 }
  0xcc   : > { %1342 = vrot.lane.b32.xlu1 %v5774_v45, %s3100_s8  ;;  %v5778_v45 = vld [vmem:[#allocation86_spill] sm:$0xff] }
  0xcd   : > { %1320 = vrot.lane.b32.xlu0 %v3947_v61, %s3099_s7 }
  0xce   : > { %v4224_v49 = vpop.permute.xlu1 %1146 }
  0xcf   : > { %v4226_v36 = vpop.permute.xlu0 %1144 }
  0xd0   : > { %1344 = vrot.lane.b32.xlu1 %v5775_v46, %s3100_s8  ;;  %v5781_v46 = vld [vmem:[#allocation93_spill] sm:$0xff] }
  0xd1   : > { %1374 = vrot.lane.b32.xlu0 %v5776_v23, %s3100_s8  ;;  %v1688_v23 = vsel %vm1670_vm2, %v4066_v4, %v4042_v53  ;;  %v3053_v53 = vld [vmem:[%s5371_s2] sm:$0x1f]  }
  0xd2   : > { %v4232_v57 = vpop.permute.xlu1 %1182 }
  0xd3   : > { %5777 = vst [vmem:[#allocation48_spill] sm:$0xff] %v4232_v57  ;;  %v4234_v32 = vpop.permute.xlu0 %1180 }
  0xd4   : > { %1408 = vrot.lane.b32.xlu1 %v5778_v45, %s3101_s9 }
  0xd5   : > { %1376 = vrot.lane.b32.xlu0 %v5779_v2, %s3100_s8 }
  0xd6   : > { %v4240_v60 = vpop.permute.xlu1 %1186 }
  0xd7   : > { %5780 = vst [vmem:[#allocation49_spill] sm:$0xff] %v4240_v60  ;;  %v4242_v17 = vpop.permute.xlu0 %1184 }
  0xd8   : > { %1410 = vrot.lane.b32.xlu1 %v5781_v46, %s3101_s9 }
  0xd9   : > { %1440 = vrot.lane.b32.xlu0 %v3996_v10, %s3101_s9 }
  0xda   : > { %v1191_v57 = vpop.permute.xlu1 %1190 }
  0xdb   : > { %v4252_v45 = vsel %vm1767_vm3, %v1688_v23, %v1191_v57  ;;  %v1189_v2 = vpop.permute.xlu0 %1188  ;;  %v3103_v57 = vmov 65535  }
  0xdc   : > { %5782 = vst [vmem:[#allocation50_spill] sm:$0xff] %v4252_v45  ;;  %v4256_v60 = vsel %vm1767_vm3, %v4046_v38, %v1189_v2  ;;  %1474 = vrot.lane.b32.xlu1 %v4038_v26, %s3102_s10  ;;  %v2303_v23 = vsel %vm2301_vm4, 4294967295, %v3103_v57  ;;  %v1694_v38 = vsel %vm1670_vm2, %v4078_v15, %v4056_v34  ;;  %v1691_v26 = vsel %vm1670_vm2, %v4084_v22, %v4058_v37 }
  0xdd   : > { %5783 = vst [vmem:[#allocation52_spill] sm:$0xff] %v4256_v60  ;;  %1442 = vrot.lane.b32.xlu0 %v3992_v0, %s3101_s9  ;;  %v2304_v46 = vsel %vm2302_vm5, %v2303_v23, 0  ;;  %v1700_v34 = vsel %vm1670_vm2, %v4094_v52, %v4068_v48  ;;  %v1706_v48 = vsel %vm1670_vm2, %v4110_v47, %v4080_v6  ;;  %v1703_v23 = vsel %vm1670_vm2, %v4116_v12, %v4086_v3 }
  0xde   : > { %v1195_v2 = vpop.permute.xlu1 %1194  ;;  %v2306_v45 = vand.u32 %v3053_v53, %v2304_v46  ;;  %v1697_v53 = vsel %vm1670_vm2, %v4100_v20, %v4070_v28  ;;  %v5789_v46 = vld [vmem:[#allocation16_spill] sm:$0xff]  ;;  %v1712_v6 = vsel %vm1670_vm2, %v4126_v29, %v4096_v13  ;;  %v1709_v3 = vsel %vm1670_vm2, %v4132_v21, %v4102_v41 }
  0xdf   : > { %v4272_v10 = vsel %vm1767_vm3, %v1694_v38, %v1195_v2  ;;  %v1193_v0 = vpop.permute.xlu0 %1192  ;;  %v1718_v13 = vsel %vm1670_vm2, %v4142_v25, %v4112_v33  ;;  %v1715_v41 = vsel %vm1670_vm2, %v4148_v62, %v4118_v40 }
  0xe0   : > { %v4275_v60 = vsel %vm1767_vm3, %v1691_v26, %v1193_v0  ;;  %1476 = vrot.lane.b32.xlu1 %v4066_v4, %s3102_s10  ;;  %2933 = vmatprep.subr.bf16.mxu0 %v2306_v45 }
  0xe1   : > { %1506 = vrot.lane.b32.xlu0 %v4160_v50, %s3102_s10  ;;  %2934 = vmatpush3.bf16.msra.mxu0 %v2306_v45  ;;  %v5786_v50 = vld [vmem:[#allocation17_spill] sm:$0xff] }
  0xe2   : > { %v1199_v37 = vpop.permute.xlu1 %1198  ;;  %2999 = vmatprep.subr.bf16.mxu1 %v2306_v45 }
  0xe3   : > { %v4288_v0 = vsel %vm1767_vm3, %v1700_v34, %v1199_v37  ;;  %v1197_v57 = vpop.permute.xlu0 %1196  ;;  %3000 = vmatpush3.bf16.msra.mxu1 %v2306_v45 }
  0xe4   : > { %5784 = vst [vmem:[#allocation53_spill] sm:$0xff] %v4288_v0  ;;  %v4291_v4 = vsel %vm1767_vm3, %v1697_v53, %v1197_v57  ;;  %1540 = vrot.lane.b32.xlu1 %v5786_v50, %s3104_s13  ;;  %v5793_v57 = vld [vmem:[#allocation95_spill] sm:$0xff] }
  0xe5   : > { %5785 = vst [vmem:[#allocation54_spill] sm:$0xff] %v4291_v4  ;;  %1508 = vrot.lane.b32.xlu0 %v4154_v11, %s3102_s10  ;;  %v5790_v11 = vld [vmem:[#allocation76_spill] sm:$0xff]  ;;  %v3056_v4 = vld [vmem:[%s3176_s30 + $0x18] sm:$0xff] }
  0xe6   : > { %v1203_v28 = vpop.permute.xlu1 %1202 }
  0xe7   : > { %v4304_v45 = vsel %vm1767_vm3, %v1706_v48, %v1203_v28  ;;  %v1201_v38 = vpop.permute.xlu0 %1200  ;;  %v5794_v48 = vld [vmem:[#allocation73_spill] sm:$0xff] }
  0xe8   : > { %5787 = vst [vmem:[#allocation6_spill] sm:$0xff] %v4304_v45  ;;  %v4307_v2 = vsel %vm1767_vm3, %v1703_v23, %v1201_v38  ;;  %1542 = vrot.lane.b32.xlu1 %v5789_v46, %s3104_s13 }
  0xe9   : > { %5788 = vst [vmem:[#allocation7_spill] sm:$0xff] %v4307_v2  ;;  %1572 = vrot.lane.b32.xlu0 %v5790_v11, %s3104_s13 }
  0xea   : > { %v1207_v26 = vpop.permute.xlu1 %1206 }
  0xeb   : > { %v4320_v34 = vsel %vm1767_vm3, %v1712_v6, %v1207_v26  ;;  %v1205_v37 = vpop.permute.xlu0 %1204  ;;  %v5797_v26 = vld [vmem:[#allocation94_spill] sm:$0xff] }
  0xec   : > { %5791 = vst [vmem:[#allocation8_spill] sm:$0xff] %v4320_v34  ;;  %v4323_v53 = vsel %vm1767_vm3, %v1709_v3, %v1205_v37  ;;  %1606 = vrot.lane.b32.xlu1 %v5793_v57, %s3105_s14 }
  0xed   : > { %5792 = vst [vmem:[#allocation10_spill] sm:$0xff] %v4323_v53  ;;  %1574 = vrot.lane.b32.xlu0 %v5794_v48, %s3104_s13 }
  0xee   : > { %v1211_v28 = vpop.permute.xlu1 %1210 }
  0xef   : > { %v4336_v23 = vsel %vm1767_vm3, %v1718_v13, %v1211_v28  ;;  %v1209_v38 = vpop.permute.xlu0 %1208 }
  0xf0   : > { %5795 = vst [vmem:[#allocation11_spill] sm:$0xff] %v4336_v23  ;;  %v4339_v6 = vsel %vm1767_vm3, %v1715_v41, %v1209_v38  ;;  %1608 = vrot.lane.b32.xlu1 %v5797_v26, %s3105_s14 }
  0xf1   : > { %5796 = vst [vmem:[#allocation12_spill] sm:$0xff] %v4339_v6  ;;  %1638 = vrot.lane.b32.xlu0 %v4008_v8, %s3105_s14  ;;  %v5818_v6 = vld [vmem:[#allocation30_spill] sm:$0xff] }
  0xf2   : > { %v4345_v3 = vpop.permute.xlu1 %1214 }
  0xf3   : > { %v4347_v33 = vpop.permute.xlu0 %1212 }
  0xf4   : > { %1346 = vrot.lane.b32.xlu1 %v5786_v50, %s3100_s8 }
  0xf5   : > { %1640 = vrot.lane.b32.xlu0 %v4004_v58, %s3105_s14 }
  0xf6   : > { %v4353_v40 = vpop.permute.xlu1 %1218 }
  0xf7   : > { %v4355_v37 = vpop.permute.xlu0 %1216 }
  0xf8   : > { %1348 = vrot.lane.b32.xlu1 %v5789_v46, %s3100_s8  ;;  %v1742_v46 = vsel %vm1670_vm2, %v3933_v24, %v4188_v27  ;;  %v1748_v27 = vsel %vm1670_vm2, %v3943_v35, %v4200_v1 }
  0xf9   : > { %1378 = vrot.lane.b32.xlu0 %v5790_v11, %s3100_s8 }
  0xfa   : > { %v1223_v13 = vpop.permute.xlu1 %1222 }
  0xfb   : > { %v4363_v28 = vsel %vm1767_vm3, %v4174_v7, %v1223_v13  ;;  %v1221_v41 = vpop.permute.xlu0 %1220  ;;  %v1739_v7 = vsel %vm1670_vm2, %v3937_v39, %v4194_v59  ;;  %v1745_v59 = vsel %vm1670_vm2, %v3947_v61, %v4202_v43  ;;  %v1751_v43 = vsel %vm1670_vm2, %v3955_v14, %v4210_v51 }
  0xfc   : > { %v4367_v50 = vsel %vm1767_vm3, %v4178_v44, %v1221_v41  ;;  %1412 = vrot.lane.b32.xlu1 %v5793_v57, %s3101_s9 }
  0xfd   : > { %1380 = vrot.lane.b32.xlu0 %v5794_v48, %s3100_s8 }
  0xfe   : > { %v1227_v11 = vpop.permute.xlu1 %1226 }
  0xff   : > { %v4380_v38 = vsel %vm1767_vm3, %v1742_v46, %v1227_v11  ;;  %v1225_v44 = vpop.permute.xlu0 %1224 }
 0x100   : > { %v4383_v13 = vsel %vm1767_vm3, %v1739_v7, %v1225_v44  ;;  %1414 = vrot.lane.b32.xlu1 %v5797_v26, %s3101_s9 }
 0x101   : > { %1444 = vrot.lane.b32.xlu0 %v4008_v8, %s3101_s9  ;;  %v1754_v8 = vsel %vm1670_vm2, %v3951_v42, %v4208_v16  ;;  %v1757_v16 = vsel %vm1670_vm2, %v3963_v30, %v4218_v55  ;;  %v1763_v55 = vsel %vm1670_vm2, %v3971_v9, %v4226_v36  ;;  %v5809_v36 = vld [vmem:[#allocation77_spill] sm:$0xff] }
 0x102   : > { %v1231_v57 = vpop.permute.xlu1 %1230 }
 0x103   : > { %v4396_v48 = vsel %vm1767_vm3, %v1748_v27, %v1231_v57  ;;  %v1229_v41 = vpop.permute.xlu0 %1228 }
 0x104   : > { %5798 = vst [vmem:[#allocation13_spill] sm:$0xff] %v4396_v48  ;;  %v4399_v46 = vsel %vm1767_vm3, %v1745_v59, %v1229_v41  ;;  %1478 = vrot.lane.b32.xlu1 %v4084_v22, %s3102_s10  ;;  %v5826_v48 = vld [vmem:[#allocation2_spill] sm:$0xff] }
 0x105   : > { %1446 = vrot.lane.b32.xlu0 %v4004_v58, %s3101_s9  ;;  %v1760_v58 = vsel %vm1670_vm2, %v3959_v56, %v4216_v54 }
 0x106   : > { %v1235_v1 = vpop.permute.xlu1 %1234 }
 0x107   : > { %v4412_v26 = vsel %vm1767_vm3, %v1754_v8, %v1235_v1  ;;  %v1233_v11 = vpop.permute.xlu0 %1232  ;;  %v5806_v8 = vld [vmem:[#allocation23_spill] sm:$0xff] }
 0x108   : > { %5799 = vst [vmem:[#allocation14_spill] sm:$0xff] %v4412_v26  ;;  %v4415_v7 = vsel %vm1767_vm3, %v1751_v43, %v1233_v11  ;;  %1480 = vrot.lane.b32.xlu1 %v4078_v15, %s3102_s10  ;;  %v5803_v15 = vld [vmem:[#allocation24_spill] sm:$0xff]  ;;  %v5808_v43 = vld [vmem:[#allocation97_spill] sm:$0xff] }
 0x109   : > { %5800 = vst [vmem:[#allocation15_spill] sm:$0xff] %v4415_v7  ;;  %1510 = vrot.lane.b32.xlu0 %v3937_v39, %s3102_s10  ;;  %v1766_v39 = vsel %vm1670_vm2, %v3967_v18, %v4224_v49  ;;  %v5825_v7 = vld [vmem:[#allocation3_spill] sm:$0xff] }
 0x10a   : > { %v1239_v22 = vpop.permute.xlu1 %1238  ;;  %v5827_v0 = vpack.c.bf16 %v5825_v7, %v5826_v48  ;;  %v5828_v7 = vld [vmem:[#allocation82_spill] sm:$0xff] }
 0x10b   : > { %v4428_v51 = vsel %vm1767_vm3, %v1760_v58, %v1239_v22  ;;  %v1237_v44 = vpop.permute.xlu0 %1236  ;;  %v5810_v22 = vld [vmem:[#allocation96_spill] sm:$0xff] }
 0x10c   : > { %5801 = vst [vmem:[#allocation18_spill] sm:$0xff] %v4428_v51  ;;  %v4431_v27 = vsel %vm1767_vm3, %v1757_v16, %v1237_v44  ;;  %1544 = vrot.lane.b32.xlu1 %v5803_v15, %s3104_s13  ;;  %v5823_v51 = vld [vmem:[#allocation98_spill] sm:$0xff] }
 0x10d   : > { %5802 = vst [vmem:[#allocation19_spill] sm:$0xff] %v4431_v27  ;;  %1512 = vrot.lane.b32.xlu0 %v3933_v24, %s3102_s10  ;;  %v5807_v24 = vld [vmem:[#allocation78_spill] sm:$0xff] }
 0x10e   : > { %v1243_v54 = vpop.permute.xlu1 %1242 }
 0x10f   : > { %v4444_v57 = vsel %vm1767_vm3, %v1766_v39, %v1243_v54  ;;  %v1241_v59 = vpop.permute.xlu0 %1240 }
 0x110   : > { %5804 = vst [vmem:[#allocation20_spill] sm:$0xff] %v4444_v57  ;;  %v4447_v41 = vsel %vm1767_vm3, %v1763_v55, %v1241_v59  ;;  %1546 = vrot.lane.b32.xlu1 %v5806_v8, %s3104_s13 }
 0x111   : > { %5805 = vst [vmem:[#allocation21_spill] sm:$0xff] %v4447_v41  ;;  %1576 = vrot.lane.b32.xlu0 %v5807_v24, %s3104_s13  ;;  %v5822_v41 = vld [vmem:[#allocation79_spill] sm:$0xff] }
 0x112   : > { %v4453_v1 = vpop.permute.xlu1 %1278 }
 0x113   : > { %v4455_v49 = vpop.permute.xlu0 %1276 }
 0x114   : > { %1610 = vrot.lane.b32.xlu1 %v5808_v43, %s3105_s14 }
 0x115   : > { %1578 = vrot.lane.b32.xlu0 %v5809_v36, %s3104_s13 }
 0x116   : > { %v4461_v11 = vpop.permute.xlu1 %1282 }
 0x117   : > { %v4463_v58 = vpop.permute.xlu0 %1280 }
 0x118   : > { %1612 = vrot.lane.b32.xlu1 %v5810_v22, %s3105_s14 }
 0x119   : > { %1642 = vrot.lane.b32.xlu0 %v3831_v63, %s3105_s14 }
 0x11a   : > { %v4469_v16 = vpop.permute.xlu1 %1286 }
 0x11b   : > { %v4471_v44 = vpop.permute.xlu0 %1284 }
 0x11c   : > { %1350 = vrot.lane.b32.xlu1 %v5803_v15, %s3100_s8 }
 0x11d   : > { %1644 = vrot.lane.b32.xlu0 %v3829_v5, %s3105_s14 }
 0x11e   : > { %v4477_v39 = vpop.permute.xlu1 %1290 }
 0x11f   : > { %v4479_v54 = vpop.permute.xlu0 %1288 }
 0x120   : > { %1352 = vrot.lane.b32.xlu1 %v5806_v8, %s3100_s8 }
 0x121   : > { %1382 = vrot.lane.b32.xlu0 %v5807_v24, %s3100_s8 }
 0x122   : > { %v4485_v55 = vpop.permute.xlu1 %1294 }
 0x123   : > { %5811 = vst [vmem:[#allocation22_spill] sm:$0xff] %v4485_v55  ;;  %v4487_v59 = vpop.permute.xlu0 %1292  ;;  %v3055_v55 = vld [vmem:[%s3176_s30 + $0x10] sm:$0xff] }
 0x124   : > { %1416 = vrot.lane.b32.xlu1 %v5808_v43, %s3101_s9 }
 0x125   : > { %1384 = vrot.lane.b32.xlu0 %v5809_v36, %s3100_s8 }
 0x126   : > { %v4493_v15 = vpop.permute.xlu1 %1298 }
 0x127   : > { %5812 = vst [vmem:[#allocation25_spill] sm:$0xff] %v4493_v15  ;;  %v4495_v57 = vpop.permute.xlu0 %1296 }
 0x128   : > { %5813 = vst [vmem:[#allocation26_spill] sm:$0xff] %v4495_v57  ;;  %1418 = vrot.lane.b32.xlu1 %v5810_v22, %s3101_s9  ;;  %v5824_v57 = vld [vmem:[#allocation80_spill] sm:$0xff] }
 0x129   : > { %1448 = vrot.lane.b32.xlu0 %v3831_v63, %s3101_s9 }
 0x12a   : > { %v4501_v8 = vpop.permute.xlu1 %1302 }
 0x12b   : > { %5814 = vst [vmem:[#allocation27_spill] sm:$0xff] %v4501_v8  ;;  %v4503_v24 = vpop.permute.xlu0 %1300 }
 0x12c   : > { %5815 = vst [vmem:[#allocation29_spill] sm:$0xff] %v4503_v24  ;;  %1482 = vrot.lane.b32.xlu1 %v4100_v20, %s3102_s10 }
 0x12d   : > { %1450 = vrot.lane.b32.xlu0 %v3829_v5, %s3101_s9 }
 0x12e   : > { %v4509_v43 = vpop.permute.xlu1 %1306 }
 0x12f   : > { %5816 = vst [vmem:[#allocation31_spill] sm:$0xff] %v4509_v43  ;;  %v4511_v36 = vpop.permute.xlu0 %1304  ;;  %v5821_v43 = vld [vmem:[#allocation99_spill] sm:$0xff] }
 0x130   : > { %5817 = vst [vmem:[#allocation33_spill] sm:$0xff] %v4511_v36  ;;  %1484 = vrot.lane.b32.xlu1 %v4094_v52, %s3102_s10  ;;  %v5819_v36 = vld [vmem:[#allocation28_spill] sm:$0xff] }
 0x131   : > { %1514 = vrot.lane.b32.xlu0 %v3947_v61, %s3102_s10  ;;  %v5820_v52 = vld [vmem:[#allocation84_spill] sm:$0xff] }
 0x132   : > { %v4517_v63 = vpop.permute.xlu1 %1310 }
 0x133   : > { %v4519_v22 = vpop.permute.xlu0 %1308 }
 0x134   : > { %1548 = vrot.lane.b32.xlu1 %v5818_v6, %s3104_s13 }
 0x135   : > { %1516 = vrot.lane.b32.xlu0 %v3943_v35, %s3102_s10 }
 0x136   : > { %v4525_v5 = vpop.permute.xlu1 %1314 }
 0x137   : > { %v4527_v20 = vpop.permute.xlu0 %1312 }
 0x138   : > { %1550 = vrot.lane.b32.xlu1 %v5819_v36, %s3104_s13 }
 0x139   : > { %1580 = vrot.lane.b32.xlu0 %v5820_v52, %s3104_s13 }
 0x13a   : > { %v4533_v61 = vpop.permute.xlu1 %1318 }
 0x13b   : > { %v4535_v23 = vpop.permute.xlu0 %1316 }
 0x13c   : > { %1614 = vrot.lane.b32.xlu1 %v5821_v43, %s3105_s14 }
 0x13d   : > { %1582 = vrot.lane.b32.xlu0 %v5822_v41, %s3104_s13 }
 0x13e   : > { %v1343_v34 = vpop.permute.xlu1 %1342 }
 0x13f   : > { %v4541_v8 = vpop.permute.xlu0 %1320 }
 0x140   : > { %1616 = vrot.lane.b32.xlu1 %v5823_v51, %s3105_s14 }
 0x141   : > { %1646 = vrot.lane.b32.xlu0 %v3853_v19, %s3105_s14 }
 0x142   : > { %v1345_v53 = vpop.permute.xlu1 %1344 }
 0x143   : > { %v1375_v24 = vpop.permute.xlu0 %1374 }
 0x144   : > { %1322 = vrot.lane.b32.xlu1 %v3943_v35, %s3099_s7 }
 0x145   : > { %1648 = vrot.lane.b32.xlu0 %v3851_v31, %s3105_s14 }
 0x146   : > { %v1409_v27 = vpop.permute.xlu1 %1408 }
 0x147   : > { %v4551_v45 = vpop.permute.xlu0 %1376 }
 0x148   : > { %1386 = vrot.lane.b32.xlu1 %v5820_v52, %s3100_s8 }
 0x149   : > { %1354 = vrot.lane.b32.xlu0 %v5818_v6, %s3100_s8 }
 0x14a   : > { %v1411_v15 = vpop.permute.xlu1 %1410 }
 0x14b   : > { %v1441_v26 = vpop.permute.xlu0 %1440 }
 0x14c   : > { %1388 = vrot.lane.b32.xlu1 %v5822_v41, %s3100_s8 }
 0x14d   : > { %1356 = vrot.lane.b32.xlu0 %v5819_v36, %s3100_s8 }
 0x14e   : > { %v1475_v35 = vpop.permute.xlu1 %1474 }
 0x14f   : > { %v4561_v2 = vpop.permute.xlu0 %1442 }
 0x150   : > { %1452 = vrot.lane.b32.xlu1 %v3853_v19, %s3101_s9  ;;  %v1673_v19 = vsel %vm1670_vm2, %v5827_v0, %v5824_v57 }
 0x151   : > { %1420 = vrot.lane.b32.xlu0 %v5821_v43, %s3101_s9  ;;  %v945_v43 = vpack.c.bf16 %v3056_v4, %v3055_v55 }
 0x152   : > { %v1477_v6 = vpop.permute.xlu1 %1476 }
 0x153   : > { %v1507_v52 = vpop.permute.xlu0 %1506  ;;  %v1676_v57 = vsel %vm1670_vm2, %v945_v43, %v5828_v7 }
 0x154   : > { %1454 = vrot.lane.b32.xlu1 %v3851_v31, %s3101_s9  ;;  %v1769_v31 = vsel %vm1767_vm3, %v1673_v19, %v4234_v32  ;;  %v5829_v32 = vld [vmem:[#allocation85_spill] sm:$0xff] }
 0x155   : > { %1422 = vrot.lane.b32.xlu0 %v5823_v51, %s3101_s9  ;;  %v1834_v51 = vsel %vm1832_vm6, %v1769_v31, %v4455_v49  ;;  %v5831_v49 = vld [vmem:[#allocation48_spill] sm:$0xff] }
 0x156   : > { %v1541_v41 = vpop.permute.xlu1 %1540  ;;  %v1899_v0 = vsel %vm1897_vm7, %v1834_v51, %v1343_v34  ;;  %v1771_v31 = vsel %vm1767_vm3, %v1676_v57, %v5831_v49  ;;  %v5835_v49 = vld [vmem:[#allocation38_spill] sm:$0xff] }
 0x157   : > { %v1509_v36 = vpop.permute.xlu0 %1508  ;;  %v1964_v55 = vsel %vm1962_vm8, %v1899_v0, %v1409_v27  ;;  %v1836_v43 = vsel %vm1832_vm6, %v1771_v31, %v4453_v1  ;;  %v5833_v1 = vld [vmem:[#allocation39_spill] sm:$0xff] }
 0x158   : > { %1518 = vrot.lane.b32.xlu1 %v3955_v14, %s3102_s10  ;;  %v2029_v34 = vsel %vm2027_vm9, %v1964_v55, %v1475_v35  ;;  %v1901_v57 = vsel %vm1897_vm7, %v1836_v43, %v1345_v53 }
 0x159   : > { %1486 = vrot.lane.b32.xlu0 %v4116_v12, %s3102_s10  ;;  %v5830_v12 = vld [vmem:[#allocation43_spill] sm:$0xff]  ;;  %v2094_v51 = vsel %vm2092_vm10, %v2029_v34, %v1541_v41  ;;  %v1966_v55 = vsel %vm1962_vm8, %v1901_v57, %v1411_v15  ;;  %v5834_v41 = vld [vmem:[#allocation42_spill] sm:$0xff] }
 0x15a   : > { %v1543_v48 = vpop.permute.xlu1 %1542  ;;  %v1721_v19 = vsel %vm1670_vm2, %v5830_v12, %v5829_v32  ;;  %v2031_v53 = vsel %vm2027_vm9, %v1966_v55, %v1477_v6 }
 0x15b   : > { %v1573_v4 = vpop.permute.xlu0 %1572  ;;  %v1801_v27 = vsel %vm1767_vm3, %v1721_v19, %v4347_v33  ;;  %v5832_v33 = vld [vmem:[#allocation88_spill] sm:$0xff]  ;;  %v1724_v19 = vsel %vm1670_vm2, %v5834_v41, %v5833_v1  ;;  %v2096_v31 = vsel %vm2092_vm10, %v2031_v53, %v1543_v48 }
 0x15c   : > { %1520 = vrot.lane.b32.xlu1 %v3951_v42, %s3102_s10  ;;  %v1866_v7 = vsel %vm1832_vm6, %v1801_v27, %v4519_v22  ;;  %v5840_v1 = vld [vmem:[#allocation56_spill] sm:$0xff] }
 0x15d   : > { %1488 = vrot.lane.b32.xlu0 %v4110_v47, %s3102_s10  ;;  %v1931_v47 = vsel %vm1897_vm7, %v1866_v7, %v1375_v24  ;;  %v1803_v24 = vsel %vm1767_vm3, %v1724_v19, %v4345_v3 }
 0x15e   : > { %v1607_v0 = vpop.permute.xlu1 %1606  ;;  %v1996_v22 = vsel %vm1962_vm8, %v1931_v47, %v1441_v26  ;;  %v1868_v27 = vsel %vm1832_vm6, %v1803_v24, %v4517_v63  ;;  %v5837_v63 = vld [vmem:[#allocation34_spill] sm:$0xff]  ;;  %v5839_v47 = vld [vmem:[#allocation100_spill] sm:$0xff] }
 0x15f   : > { %v1575_v32 = vpop.permute.xlu0 %1574  ;;  %v2159_v35 = vsel %vm2157_vm11, %v2094_v51, %v1607_v0  ;;  %v2061_v15 = vsel %vm2027_vm9, %v1996_v22, %v1507_v52  ;;  %v1933_v6 = vsel %vm1897_vm7, %v1868_v27, %v4551_v45  ;;  %v5836_v0 = vld [vmem:[#allocation87_spill] sm:$0xff] }
 0x160   : > { %1584 = vrot.lane.b32.xlu1 %v5832_v33, %s3104_s13  ;;  %2935 = vmatprep.mubr.msk.bf16.mxu0 %vm2236_vm12, %v2159_v35  ;;  %v2126_v43 = vsel %vm2092_vm10, %v2061_v15, %v1573_v4  ;;  %v1998_v52 = vsel %vm1962_vm8, %v1933_v6, %v4561_v2  ;;  %v5838_v35 = vld [vmem:[#allocation57_spill] sm:$0xff] }
 0x161   : > { %1552 = vrot.lane.b32.xlu0 %v5835_v49, %s3104_s13  ;;  %v2063_v48 = vsel %vm2027_vm9, %v1998_v52, %v1509_v36  ;;  %v5841_v36 = vld [vmem:[#allocation32_spill] sm:$0xff]  ;;  %v5845_v52 = vld [vmem:[#allocation83_spill] sm:$0xff] }
 0x162   : > { %v1609_v34 = vpop.permute.xlu1 %1608  ;;  %v2128_v45 = vsel %vm2092_vm10, %v2063_v48, %v1575_v32 }
 0x163   : > { %v2161_v26 = vsel %vm2157_vm11, %v2096_v31, %v1609_v34  ;;  %v1639_v51 = vpop.permute.xlu0 %1638  ;;  %v5842_v34 = vld [vmem:[#allocation75_spill] sm:$0xff] }
 0x164   : > { %1586 = vrot.lane.b32.xlu1 %v5836_v0, %s3104_s13  ;;  %2936 = vmatmul.mubr.msk.bf16.vlgmr.msra.gmra.mrb[0].mxu0 %vm2236_vm12, %v2161_v26  ;;  %v2191_v3 = vsel %vm2157_vm11, %v2126_v43, %v1639_v51 }
 0x165   : > { %1554 = vrot.lane.b32.xlu0 %v5837_v63, %s3104_s13  ;;  %2967 = vmatprep.mubr.msk.bf16.mxu1 %vm2236_vm12, %v2191_v3  ;;  %v5844_v3 = vld [vmem:[#allocation81_spill] sm:$0xff] }
 0x166   : > { %v1347_v4 = vpop.permute.xlu1 %1346 }
 0x167   : > { %v1641_v7 = vpop.permute.xlu0 %1640 }
 0x168   : > { %v2193_v57 = vsel %vm2157_vm11, %v2128_v45, %v1641_v7  ;;  %1650 = vrot.lane.b32.xlu1 %v5838_v35, %s3105_s14  ;;  %v5847_v45 = vld [vmem:[#allocation47_spill] sm:$0xff] }
 0x169   : > { %1618 = vrot.lane.b32.xlu0 %v5839_v47, %s3105_s14  ;;  %2968 = vmatmul.mubr.msk.bf16.vlgmr.msra.gmra.mrb[0].mxu1 %vm2236_vm12, %v2193_v57  ;;  %v5848_v57 = vld [vmem:[#allocation49_spill] sm:$0xff] }
 0x16a   : > { %v1349_v2 = vpop.permute.xlu1 %1348 }
 0x16b   : > { %v1379_v55 = vpop.permute.xlu0 %1378 }
 0x16c   : > { %1652 = vrot.lane.b32.xlu1 %v5840_v1, %s3105_s14 }
 0x16d   : > { %1620 = vrot.lane.b32.xlu0 %v5841_v36, %s3105_s14 }
 0x16e   : > { %v1413_v32 = vpop.permute.xlu1 %1412 }
 0x16f   : > { %v1381_v19 = vpop.permute.xlu0 %1380 }
 0x170   : > { %1326 = vrot.lane.b32.xlu1 %v3951_v42, %s3099_s7 }
 0x171   : > { %1324 = vrot.lane.b32.xlu0 %v3955_v14, %s3099_s7 }
 0x172   : > { %v1415_v22 = vpop.permute.xlu1 %1414 }
 0x173   : > { %v1445_v53 = vpop.permute.xlu0 %1444 }
 0x174   : > { %1390 = vrot.lane.b32.xlu1 %v5832_v33, %s3100_s8 }
 0x175   : > { %1358 = vrot.lane.b32.xlu0 %v5835_v49, %s3100_s8  ;;  %v5843_v49 = vld [vmem:[#allocation4_spill] sm:$0xff] }
 0x176   : > { %v1479_v24 = vpop.permute.xlu1 %1478  ;;  %v1679_v27 = vsel %vm1670_vm2, %v5843_v49, %v5842_v34 }
 0x177   : > { %v1447_v15 = vpop.permute.xlu0 %1446  ;;  %v1773_v43 = vsel %vm1767_vm3, %v1679_v27, %v4242_v17  ;;  %v5846_v17 = vld [vmem:[#allocation41_spill] sm:$0xff] }
 0x178   : > { %1392 = vrot.lane.b32.xlu1 %v5836_v0, %s3100_s8  ;;  %v1838_v26 = vsel %vm1832_vm6, %v1773_v43, %v4463_v58  ;;  %v1727_v7 = vsel %vm1670_vm2, %v5847_v45, %v5846_v17  ;;  %v5853_v17 = vld [vmem:[#allocation89_spill] sm:$0xff] }
 0x179   : > { %1360 = vrot.lane.b32.xlu0 %v5837_v63, %s3100_s8  ;;  %v1903_v6 = vsel %vm1897_vm7, %v1838_v26, %v1347_v4  ;;  %v1682_v63 = vsel %vm1670_vm2, %v5845_v52, %v5844_v3  ;;  %v1805_v4 = vsel %vm1767_vm3, %v1727_v7, %v4355_v37  ;;  %v5849_v37 = vld [vmem:[#allocation40_spill] sm:$0xff]  ;;  %v5854_v7 = vld [vmem:[#allocation45_spill] sm:$0xff] }
 0x17a   : > { %v1481_v42 = vpop.permute.xlu1 %1480  ;;  %v1968_v48 = vsel %vm1962_vm8, %v1903_v6, %v1413_v32  ;;  %v1775_v58 = vsel %vm1767_vm3, %v1682_v63, %v5848_v57  ;;  %v1870_v32 = vsel %vm1832_vm6, %v1805_v4, %v4527_v20  ;;  %v5851_v63 = vld [vmem:[#allocation90_spill] sm:$0xff] }
 0x17b   : > { %v1511_v31 = vpop.permute.xlu0 %1510  ;;  %v1935_v27 = vsel %vm1897_vm7, %v1870_v32, %v1379_v55 }
 0x17c   : > { %1456 = vrot.lane.b32.xlu1 %v5838_v35, %s3101_s9  ;;  %v2033_v35 = vsel %vm2027_vm9, %v1968_v48, %v1479_v24  ;;  %v2000_v20 = vsel %vm1962_vm8, %v1935_v27, %v1445_v53 }
 0x17d   : > { %1424 = vrot.lane.b32.xlu0 %v5839_v47, %s3101_s9  ;;  %v1840_v47 = vsel %vm1832_vm6, %v1775_v58, %v4461_v11  ;;  %v5850_v11 = vld [vmem:[#allocation44_spill] sm:$0xff]  ;;  %v5855_v58 = vld [vmem:[#allocation61_spill] sm:$0xff] }
 0x17e   : > { %v1545_v14 = vpop.permute.xlu1 %1544  ;;  %v1905_v34 = vsel %vm1897_vm7, %v1840_v47, %v1349_v2  ;;  %v5857_v47 = vld [vmem:[#allocation58_spill] sm:$0xff] }
 0x17f   : > { %v1513_v33 = vpop.permute.xlu0 %1512 }
 0x180   : > { %1458 = vrot.lane.b32.xlu1 %v5840_v1, %s3101_s9  ;;  %v2098_v1 = vsel %vm2092_vm10, %v2033_v35, %v1545_v14  ;;  %v1730_v14 = vsel %vm1670_vm2, %v5850_v11, %v5849_v37 }
 0x181   : > { %1426 = vrot.lane.b32.xlu0 %v5841_v36, %s3101_s9  ;;  %v1807_v55 = vsel %vm1767_vm3, %v1730_v14, %v4353_v40 }
 0x182   : > { %v1547_v51 = vpop.permute.xlu1 %1546  ;;  %v1872_v6 = vsel %vm1832_vm6, %v1807_v55, %v4525_v5 }
 0x183   : > { %v1577_v0 = vpop.permute.xlu0 %1576 }
 0x184   : > { %1522 = vrot.lane.b32.xlu1 %v3963_v30, %s3102_s10 }
 0x185   : > { %1490 = vrot.lane.b32.xlu0 %v4132_v21, %s3102_s10  ;;  %v1970_v21 = vsel %vm1962_vm8, %v1905_v34, %v1415_v22  ;;  %v2065_v22 = vsel %vm2027_vm9, %v2000_v20, %v1511_v31  ;;  %v5852_v31 = vld [vmem:[#allocation46_spill] sm:$0xff] }
 0x186   : > { %v1611_v36 = vpop.permute.xlu1 %1610  ;;  %v2035_v2 = vsel %vm2027_vm9, %v1970_v21, %v1481_v42  ;;  %v2130_v3 = vsel %vm2092_vm10, %v2065_v22, %v1577_v0  ;;  %v1937_v42 = vsel %vm1897_vm7, %v1872_v6, %v1381_v19 }
 0x187   : > { %v2163_v49 = vsel %vm2157_vm11, %v2098_v1, %v1611_v36  ;;  %v1579_v24 = vpop.permute.xlu0 %1578  ;;  %v2100_v43 = vsel %vm2092_vm10, %v2035_v2, %v1547_v51  ;;  %v2002_v40 = vsel %vm1962_vm8, %v1937_v42, %v1447_v15  ;;  %v5858_v1 = vld [vmem:[#allocation62_spill] sm:$0xff] }
 0x188   : > { %1524 = vrot.lane.b32.xlu1 %v3959_v56, %s3102_s10  ;;  %2939 = vmatprep.mubr.msk.bf16.mxu0 %vm2236_vm12, %v2163_v49  ;;  %v2067_v5 = vsel %vm2027_vm9, %v2002_v40, %v1513_v33  ;;  %v5856_v33 = vld [vmem:[#allocation63_spill] sm:$0xff] }
 0x189   : > { %1492 = vrot.lane.b32.xlu0 %v4126_v29, %s3102_s10  ;;  %v2132_v0 = vsel %vm2092_vm10, %v2067_v5, %v1579_v24  ;;  %v1876_v5 = vsel %vm1832_vm6, %v4363_v28, %v4533_v61 }
 0x18a   : > { %v1613_v26 = vpop.permute.xlu1 %1612 }
 0x18b   : > { %v2165_v53 = vsel %vm2157_vm11, %v2100_v43, %v1613_v26  ;;  %v1643_v52 = vpop.permute.xlu0 %1642  ;;  %v5860_v43 = vld [vmem:[#allocation50_spill] sm:$0xff] }
 0x18c   : > { %v2195_v29 = vsel %vm2157_vm11, %v2130_v3, %v1643_v52  ;;  %1588 = vrot.lane.b32.xlu1 %v5851_v63, %s3104_s13  ;;  %2940 = vmatmul.mubr.msk.bf16.gmra.mrb[4].mxu0 %vm2236_vm12, %v2165_v53  ;;  %v1844_v26 = vsel %vm1832_vm6, %v5860_v43, %v4469_v16  ;;  %v1874_v3 = vsel %vm1832_vm6, %v4367_v50, %v4535_v23 }
 0x18d   : > { %1556 = vrot.lane.b32.xlu0 %v5852_v31, %s3104_s13  ;;  %2971 = vmatprep.mubr.msk.bf16.mxu1 %vm2236_vm12, %v2195_v29  ;;  %v1878_v43 = vsel %vm1832_vm6, %v4383_v13, %v4541_v8 }
 0x18e   : > { %v1351_v51 = vpop.permute.xlu1 %1350 }
 0x18f   : > { %v1645_v19 = vpop.permute.xlu0 %1644 }
 0x190   : > { %v2197_v48 = vsel %vm2157_vm11, %v2132_v0, %v1645_v19  ;;  %1590 = vrot.lane.b32.xlu1 %v5853_v17, %s3104_s13 }
 0x191   : > { %1558 = vrot.lane.b32.xlu0 %v5854_v7, %s3104_s13  ;;  %2972 = vmatmul.mubr.msk.bf16.gmra.mrb[4].mxu1 %vm2236_vm12, %v2197_v48 }
 0x192   : > { %v1353_v15 = vpop.permute.xlu1 %1352 }
 0x193   : > { %v1383_v57 = vpop.permute.xlu0 %1382  ;;  %v1909_v53 = vsel %vm1897_vm7, %v1844_v26, %v1353_v15 }
 0x194   : > { %1654 = vrot.lane.b32.xlu1 %v5855_v58, %s3105_s14  ;;  %v1939_v29 = vsel %vm1897_vm7, %v1874_v3, %v1383_v57 }
 0x195   : > { %1622 = vrot.lane.b32.xlu0 %v5856_v33, %s3105_s14 }
 0x196   : > { %v1417_v35 = vpop.permute.xlu1 %1416 }
 0x197   : > { %v1385_v4 = vpop.permute.xlu0 %1384 }
 0x198   : > { %1656 = vrot.lane.b32.xlu1 %v5857_v47, %s3105_s14  ;;  %v1941_v48 = vsel %vm1897_vm7, %v1876_v5, %v1385_v4  ;;  %v5863_v4 = vld [vmem:[#allocation91_spill] sm:$0xff] }
 0x199   : > { %1624 = vrot.lane.b32.xlu0 %v5858_v1, %s3105_s14 }
 0x19a   : > { %v1419_v36 = vpop.permute.xlu1 %1418 }
 0x19b   : > { %v1449_v32 = vpop.permute.xlu0 %1448 }
 0x19c   : > { %1330 = vrot.lane.b32.xlu1 %v3959_v56, %s3099_s7  ;;  %v2004_v16 = vsel %vm1962_vm8, %v1939_v29, %v1449_v32  ;;  %v5865_v32 = vld [vmem:[#allocation69_spill] sm:$0xff] }
 0x19d   : > { %1328 = vrot.lane.b32.xlu0 %v3963_v30, %s3099_s7  ;;  %v5859_v30 = vld [vmem:[#allocation52_spill] sm:$0xff]  ;;  %v4873_v29 = vld [vmem:[%s4848_s29 + $0x18] sm:$0xff] }
 0x19e   : > { %v1483_v34 = vpop.permute.xlu1 %1482  ;;  %v1842_v37 = vsel %vm1832_vm6, %v5859_v30, %v4471_v44 }
 0x19f   : > { %v1451_v49 = vpop.permute.xlu0 %1450  ;;  %v1907_v20 = vsel %vm1897_vm7, %v1842_v37, %v1351_v51 }
 0x1a0   : > { %1394 = vrot.lane.b32.xlu1 %v5851_v63, %s3100_s8  ;;  %v1972_v55 = vsel %vm1962_vm8, %v1907_v20, %v1417_v35  ;;  %v1974_v63 = vsel %vm1962_vm8, %v1909_v53, %v1419_v36 }
 0x1a1   : > { %1362 = vrot.lane.b32.xlu0 %v5852_v31, %s3100_s8  ;;  %v2037_v22 = vsel %vm2027_vm9, %v1972_v55, %v1483_v34  ;;  %v5866_v34 = vld [vmem:[#allocation68_spill] sm:$0xff]  ;;  %v4855_v55 = vld [vmem:[%s4848_s29] sm:$0xff] }
 0x1a2   : > { %v1485_v24 = vpop.permute.xlu1 %1484 }
 0x1a3   : > { %v1515_v27 = vpop.permute.xlu0 %1514  ;;  %v2039_v40 = vsel %vm2027_vm9, %v1974_v63, %v1485_v24 }
 0x1a4   : > { %1396 = vrot.lane.b32.xlu1 %v5853_v17, %s3100_s8  ;;  %v2069_v23 = vsel %vm2027_vm9, %v2004_v16, %v1515_v27  ;;  %v5867_v27 = vld [vmem:[#allocation64_spill] sm:$0xff] }
 0x1a5   : > { %1364 = vrot.lane.b32.xlu0 %v5854_v7, %s3100_s8 }
 0x1a6   : > { %v1549_v56 = vpop.permute.xlu1 %1548 }
 0x1a7   : > { %v1517_v21 = vpop.permute.xlu0 %1516  ;;  %v2102_v44 = vsel %vm2092_vm10, %v2037_v22, %v1549_v56  ;;  %v5868_v56 = vld [vmem:[#allocation65_spill] sm:$0xff]  ;;  %v4858_v22 = vld [vmem:[%s4848_s29 + $0x8] sm:$0xff] }
 0x1a8   : > { %1460 = vrot.lane.b32.xlu1 %v5855_v58, %s3101_s9  ;;  %v5861_v58 = vld [vmem:[#allocation92_spill] sm:$0xff] }
 0x1a9   : > { %1428 = vrot.lane.b32.xlu0 %v5856_v33, %s3101_s9  ;;  %v5862_v33 = vld [vmem:[#allocation55_spill] sm:$0xff] }
 0x1aa   : > { %v1551_v14 = vpop.permute.xlu1 %1550 }
 0x1ab   : > { %v1581_v2 = vpop.permute.xlu0 %1580  ;;  %v2104_v50 = vsel %vm2092_vm10, %v2039_v40, %v1551_v14 }
 0x1ac   : > { %1462 = vrot.lane.b32.xlu1 %v5857_v47, %s3101_s9  ;;  %v2134_v51 = vsel %vm2092_vm10, %v2069_v23, %v1581_v2  ;;  %v5864_v47 = vld [vmem:[#allocation51_spill] sm:$0xff] }
 0x1ad   : > { %1430 = vrot.lane.b32.xlu0 %v5858_v1, %s3101_s9 }
 0x1ae   : > { %v1615_v6 = vpop.permute.xlu1 %1614 }
 0x1af   : > { %v2167_v52 = vsel %vm2157_vm11, %v2102_v44, %v1615_v6  ;;  %v1583_v42 = vpop.permute.xlu0 %1582  ;;  %v4864_v44 = vld [vmem:[%s4848_s29 + $0x10] sm:$0xff]  ;;  %v1846_v6 = vsel %vm1832_vm6, %v4275_v60, %v4479_v54  ;;  %v4881_v60 = vpack.c.bf16 %v4858_v22, %v4855_v55  ;;  %v1848_v54 = vsel %vm1832_vm6, %v4272_v10, %v4477_v39  ;;  %v378_v39 = vld [vmem:[%s4848_s29 + $0x20] sm:$0x3] }
 0x1b0   : > { %1526 = vrot.lane.b32.xlu1 %v3971_v9, %s3102_s10  ;;  %2943 = vmatprep.mubr.msk.bf16.mxu0 %vm2236_vm12, %v2167_v52  ;;  %v887_v52 = vrot.slane %v4855_v55, 1  ;;  %v890_v40 = vrot.slane %v4864_v44, 1  ;;  %v1041_v10 = vpack.c.bf16 %v4873_v29, %v4864_v44 }
 0x1b1   : > { %1494 = vrot.lane.b32.xlu0 %v4148_v62, %s3102_s10  ;;  %v2006_v62 = vsel %vm1962_vm8, %v1941_v48, %v1451_v49 }
 0x1b2   : > { %v1617_v31 = vpop.permute.xlu1 %1616  ;;  %v2071_v28 = vsel %vm2027_vm9, %v2006_v62, %v1517_v21 }
 0x1b3   : > { %v2169_v0 = vsel %vm2157_vm11, %v2104_v50, %v1617_v31  ;;  %v1647_v19 = vpop.permute.xlu0 %1646  ;;  %v2136_v7 = vsel %vm2092_vm10, %v2071_v28, %v1583_v42  ;;  %v888_v42 = vrot.slane %v4858_v22, 1 }
 0x1b4   : > { %v2199_v17 = vsel %vm2157_vm11, %v2134_v51, %v1647_v19  ;;  %1528 = vrot.lane.b32.xlu1 %v3967_v18, %s3102_s10  ;;  %2944 = vmatmul.mubr.msk.bf16.gmra.mrb[8].mxu0 %vm2236_vm12, %v2169_v0 }
 0x1b5   : > { %1496 = vrot.lane.b32.xlu0 %v4142_v25, %s3102_s10  ;;  %2975 = vmatprep.mubr.msk.bf16.mxu1 %vm2236_vm12, %v2199_v17  ;;  %v889_v17 = vsel %vm464_vm0, %v887_v52, %v888_v42 }
 0x1b6   : > { %v4809_v61 = vpop.permute.xlu1 %1322 }
 0x1b7   : > { %v1649_v15 = vpop.permute.xlu0 %1648  ;;  %v1880_v23 = vsel %vm1832_vm6, %v4380_v38, %v4809_v61  ;;  %v892_v61 = vrot.slane %v4873_v29, 1 }
 0x1b8   : > { %v2201_v57 = vsel %vm2157_vm11, %v2136_v7, %v1649_v15  ;;  %1592 = vrot.lane.b32.xlu1 %v5861_v58, %s3104_s13 }
 0x1b9   : > { %1560 = vrot.lane.b32.xlu0 %v5862_v33, %s3104_s13  ;;  %2976 = vmatmul.mubr.msk.bf16.gmra.mrb[8].mxu1 %vm2236_vm12, %v2201_v57  ;;  %v891_v57 = vsel %vm464_vm0, %v888_v42, %v890_v40 }
 0x1ba   : > { %v1387_v25 = vpop.permute.xlu1 %1386 }
 0x1bb   : > { %v1355_v35 = vpop.permute.xlu0 %1354  ;;  %v1943_v3 = vsel %vm1897_vm7, %v1878_v43, %v1387_v25 }
 0x1bc   : > { %1594 = vrot.lane.b32.xlu1 %v5863_v4, %s3104_s13  ;;  %v1911_v63 = vsel %vm1897_vm7, %v1846_v6, %v1355_v35 }
 0x1bd   : > { %1562 = vrot.lane.b32.xlu0 %v5864_v47, %s3104_s13 }
 0x1be   : > { %v1389_v1 = vpop.permute.xlu1 %1388 }
 0x1bf   : > { %v1357_v36 = vpop.permute.xlu0 %1356  ;;  %v1945_v51 = vsel %vm1897_vm7, %v1880_v23, %v1389_v1 }
 0x1c0   : > { %1658 = vrot.lane.b32.xlu1 %v5865_v32, %s3105_s14  ;;  %v1913_v38 = vsel %vm1897_vm7, %v1848_v54, %v1357_v36  ;;  %v900_v36 = vrot.slane %v4855_v55, 2 }
 0x1c1   : > { %1626 = vrot.lane.b32.xlu0 %v5866_v34, %s3105_s14 }
 0x1c2   : > { %v1453_v49 = vpop.permute.xlu1 %1452 }
 0x1c3   : > { %v1421_v24 = vpop.permute.xlu0 %1420  ;;  %v2008_v13 = vsel %vm1962_vm8, %v1943_v3, %v1453_v49  ;;  %v903_v49 = vrot.slane %v4864_v44, 2 }
 0x1c4   : > { %1660 = vrot.lane.b32.xlu1 %v5867_v27, %s3105_s14  ;;  %v1976_v8 = vsel %vm1962_vm8, %v1911_v63, %v1421_v24  ;;  %v893_v24 = vsel %vm464_vm0, %v890_v40, %v892_v61 }
 0x1c5   : > { %1628 = vrot.lane.b32.xlu0 %v5868_v56, %s3105_s14 }
 0x1c6   : > { %v1455_v21 = vpop.permute.xlu1 %1454 }
 0x1c7   : > { %v1423_v30 = vpop.permute.xlu0 %1422  ;;  %v2010_v62 = vsel %vm1962_vm8, %v1945_v51, %v1455_v21  ;;  %v5873_v51 = vld [vmem:[#allocation54_spill] sm:$0xff] }
 0x1c8   : > { %1334 = vrot.lane.b32.xlu1 %v3967_v18, %s3099_s7  ;;  %v1978_v7 = vsel %vm1962_vm8, %v1913_v38, %v1423_v30 }
 0x1c9   : > { %1332 = vrot.lane.b32.xlu0 %v3971_v9, %s3099_s7 }
 0x1ca   : > { %v1519_v37 = vpop.permute.xlu1 %1518 }
 0x1cb   : > { %v1487_v14 = vpop.permute.xlu0 %1486  ;;  %v2073_v16 = vsel %vm2027_vm9, %v2008_v13, %v1519_v37  ;;  %v905_v37 = vrot.slane %v4873_v29, 2  ;;  %v5872_v29 = vld [vmem:[#allocation70_spill] sm:$0xff] }
 0x1cc   : > { %1398 = vrot.lane.b32.xlu1 %v5861_v58, %s3100_s8  ;;  %v2041_v50 = vsel %vm2027_vm9, %v1976_v8, %v1487_v14  ;;  %v894_v58 = vrot.slane %v378_v39, 1  ;;  %v5869_v14 = vld [vmem:[#allocation60_spill] sm:$0xff] }
 0x1cd   : > { %1366 = vrot.lane.b32.xlu0 %v5862_v33, %s3100_s8  ;;  %v906_v43 = vsel %vm673_vm1, %v903_v49, %v905_v37 }
 0x1ce   : > { %v1521_v20 = vpop.permute.xlu1 %1520 }
 0x1cf   : > { %v1489_v2 = vpop.permute.xlu0 %1488  ;;  %v2075_v15 = vsel %vm2027_vm9, %v2010_v62, %v1521_v20  ;;  %v4978_v62 = vld [vmem:[%s4848_s29 + $0x40] sm:$0xff] }
 0x1d0   : > { %1400 = vrot.lane.b32.xlu1 %v5863_v4, %s3100_s8  ;;  %v2043_v33 = vsel %vm2027_vm9, %v1978_v7, %v1489_v2  ;;  %v907_v2 = vrot.slane %v378_v39, 2  ;;  %v4969_v39 = vld [vmem:[%s4848_s29 + $0x38] sm:$0xff] }
 0x1d1   : > { %1368 = vrot.lane.b32.xlu0 %v5864_v47, %s3100_s8  ;;  %v5875_v7 = vld [vmem:[#allocation53_spill] sm:$0xff] }
 0x1d2   : > { %v1585_v18 = vpop.permute.xlu1 %1584 }
 0x1d3   : > { %v1553_v9 = vpop.permute.xlu0 %1552  ;;  %v2138_v31 = vsel %vm2092_vm10, %v2073_v16, %v1585_v18 }
 0x1d4   : > { %1464 = vrot.lane.b32.xlu1 %v5865_v32, %s3101_s9  ;;  %v2106_v0 = vsel %vm2092_vm10, %v2041_v50, %v1553_v9 }
 0x1d5   : > { %1432 = vrot.lane.b32.xlu0 %v5866_v34, %s3101_s9  ;;  %v901_v34 = vrot.slane %v4858_v22, 2  ;;  %v5870_v22 = vld [vmem:[#allocation59_spill] sm:$0xff] }
 0x1d6   : > { %v1587_v26 = vpop.permute.xlu1 %1586 }
 0x1d7   : > { %v1555_v53 = vpop.permute.xlu0 %1554  ;;  %v2140_v25 = vsel %vm2092_vm10, %v2075_v15, %v1587_v26  ;;  %v902_v20 = vsel %vm673_vm1, %v900_v36, %v901_v34  ;;  %v908_v26 = vsel %vm673_vm1, %v905_v37, %v907_v2  ;;  %v1047_v36 = vpack.c.bf16 %v4978_v62, %v4969_v39 }
 0x1d8   : > { %1466 = vrot.lane.b32.xlu1 %v5867_v27, %s3101_s9  ;;  %v2108_v4 = vsel %vm2092_vm10, %v2043_v33, %v1555_v53  ;;  %v895_v27 = vsel %vm464_vm0, %v892_v61, %v894_v58  ;;  %v1045_v3 = vpack.c.bf16 %v908_v26, %v906_v43  ;;  %v5871_v53 = vld [vmem:[#allocation71_spill] sm:$0xff]  ;;  %v921_v33 = vrot.slane %v4969_v39, 1 }
 0x1d9   : > { %1434 = vrot.lane.b32.xlu0 %v5868_v56, %s3101_s9  ;;  %v1043_v30 = vpack.c.bf16 %v895_v27, %v893_v24  ;;  %v923_v37 = vrot.slane %v4978_v62, 1 }
 0x1da   : > { %v1651_v5 = vpop.permute.xlu1 %1650 }
 0x1db   : > { %v2203_v19 = vsel %vm2157_vm11, %v2138_v31, %v1651_v5  ;;  %v1619_v48 = vpop.permute.xlu0 %1618  ;;  %v4964_v31 = vld [vmem:[%s4848_s29 + $0x30] sm:$0xff] }
 0x1dc   : > { %v2171_v28 = vsel %vm2157_vm11, %v2106_v0, %v1619_v48  ;;  %1530 = vrot.lane.b32.xlu1 %v4881_v60, %s3102_s10  ;;  %2979 = vmatprep.mubr.msk.bf16.mxu1 %vm2236_vm12, %v2203_v19  ;;  %v1850_v0 = vsel %vm1832_vm6, %v5873_v51, %v4487_v59  ;;  %v919_v38 = vrot.slane %v4964_v31, 1  ;;  %v5874_v59 = vld [vmem:[#allocation22_spill] sm:$0xff] }
 0x1dd   : > { %1498 = vrot.lane.b32.xlu0 %v5830_v12, %s3102_s10  ;;  %2947 = vmatprep.mubr.msk.bf16.mxu0 %vm2236_vm12, %v2171_v28  ;;  %v1042_v12 = vpack.c.bf16 %v891_v57, %v889_v17  ;;  %v1852_v15 = vsel %vm1832_vm6, %v5875_v7, %v5874_v59 }
 0x1de   : > { %v1653_v35 = vpop.permute.xlu1 %1652 }
 0x1df   : > { %v2205_v47 = vsel %vm2157_vm11, %v2140_v25, %v1653_v35  ;;  %v1621_v1 = vpop.permute.xlu0 %1620  ;;  %v5876_v25 = vld [vmem:[#allocation13_spill] sm:$0xff] }
 0x1e0   : > { %v2173_v32 = vsel %vm2157_vm11, %v2108_v4, %v1621_v1  ;;  %1532 = vrot.lane.b32.xlu1 %v1041_v10, %s3102_s10  ;;  %2980 = vmatmul.mubr.msk.bf16.gmra.mrb[12].mxu1 %vm2236_vm12, %v2205_v47 }
 0x1e1   : > { %1500 = vrot.lane.b32.xlu0 %v5834_v41, %s3102_s10  ;;  %2948 = vmatmul.mubr.msk.bf16.gmra.mrb[12].mxu0 %vm2236_vm12, %v2173_v32  ;;  %v904_v41 = vsel %vm673_vm1, %v901_v34, %v903_v49  ;;  %v383_v32 = vld [vmem:[%s4848_s29 + $0x48] sm:$0x3] }
 0x1e2   : > { %v1327_v56 = vpop.permute.xlu1 %1326  ;;  %v1044_v55 = vpack.c.bf16 %v904_v41, %v902_v20  ;;  %v922_v41 = vsel %vm464_vm0, %v919_v38, %v921_v33  ;;  %v925_v2 = vrot.slane %v383_v32, 1 }
 0x1e3   : > { %v1325_v21 = vpop.permute.xlu0 %1324  ;;  %v1884_v35 = vsel %vm1832_vm6, %v5876_v25, %v1327_v56 }
 0x1e4   : > { %1596 = vrot.lane.b32.xlu1 %v1042_v12, %s3104_s13  ;;  %v1882_v5 = vsel %vm1832_vm6, %v4399_v46, %v1325_v21 }
 0x1e5   : > { %1564 = vrot.lane.b32.xlu0 %v5869_v14, %s3104_s13 }
 0x1e6   : > { %v1391_v18 = vpop.permute.xlu1 %1390 }
 0x1e7   : > { %v1359_v9 = vpop.permute.xlu0 %1358  ;;  %v1947_v19 = vsel %vm1897_vm7, %v1882_v5, %v1391_v18 }
 0x1e8   : > { %1598 = vrot.lane.b32.xlu1 %v1043_v30, %s3104_s13  ;;  %v1915_v28 = vsel %vm1897_vm7, %v1850_v0, %v1359_v9 }
 0x1e9   : > { %1566 = vrot.lane.b32.xlu0 %v5870_v22, %s3104_s13 }
 0x1ea   : > { %v1393_v44 = vpop.permute.xlu1 %1392 }
 0x1eb   : > { %v1361_v6 = vpop.permute.xlu0 %1360 }
 0x1ec   : > { %1662 = vrot.lane.b32.xlu1 %v1044_v55, %s3105_s14  ;;  %v1917_v56 = vsel %vm1897_vm7, %v1852_v15, %v1361_v6 }
 0x1ed   : > { %1630 = vrot.lane.b32.xlu0 %v5871_v53, %s3105_s14 }
 0x1ee   : > { %v1457_v52 = vpop.permute.xlu1 %1456 }
 0x1ef   : > { %v1425_v42 = vpop.permute.xlu0 %1424  ;;  %v2012_v46 = vsel %vm1962_vm8, %v1947_v19, %v1457_v52  ;;  %v924_v52 = vsel %vm464_vm0, %v921_v33, %v923_v37  ;;  %v5879_v19 = vld [vmem:[#allocation74_spill] sm:$0xff] }
 0x1f0   : > { %1664 = vrot.lane.b32.xlu1 %v1045_v3, %s3105_s14  ;;  %v1980_v57 = vsel %vm1962_vm8, %v1915_v28, %v1425_v42  ;;  %v926_v42 = vsel %vm464_vm0, %v923_v37, %v925_v2  ;;  %v5885_v37 = vld [vmem:[#allocation25_spill] sm:$0xff] }
 0x1f1   : > { %1632 = vrot.lane.b32.xlu0 %v5872_v29, %s3105_s14 }
 0x1f2   : > { %v1459_v63 = vpop.permute.xlu1 %1458 }
 0x1f3   : > { %v1427_v13 = vpop.permute.xlu0 %1426 }
 0x1f4   : > { %1338 = vrot.lane.b32.xlu1 %v1041_v10, %s3099_s7 }
 0x1f5   : > { %1336 = vrot.lane.b32.xlu0 %v4881_v60, %s3099_s7  ;;  %v4961_v60 = vld [vmem:[%s4848_s29 + $0x28] sm:$0xff] }
 0x1f6   : > { %v1523_v54 = vpop.permute.xlu1 %1522  ;;  %v918_v17 = vrot.slane %v4961_v60, 1  ;;  %v1046_v61 = vpack.c.bf16 %v4964_v31, %v4961_v60 }
 0x1f7   : > { %v1491_v8 = vpop.permute.xlu0 %1490  ;;  %v2077_v58 = vsel %vm2027_vm9, %v2012_v46, %v1523_v54  ;;  %v936_v54 = vrot.slane %v4978_v62, 2 }
 0x1f8   : > { %1402 = vrot.lane.b32.xlu1 %v1042_v12, %s3100_s8  ;;  %v2045_v4 = vsel %vm2027_vm9, %v1980_v57, %v1491_v8  ;;  %v1949_v12 = vsel %vm1897_vm7, %v1884_v35, %v1393_v44  ;;  %v920_v27 = vsel %vm464_vm0, %v918_v17, %v919_v38  ;;  %v931_v44 = vrot.slane %v4961_v60, 2  ;;  %v5877_v8 = vld [vmem:[#allocation67_spill] sm:$0xff]  ;;  %v5880_v38 = vld [vmem:[#allocation72_spill] sm:$0xff]  ;;  %v5882_v35 = vld [vmem:[#allocation26_spill] sm:$0xff] }
 0x1f9   : > { %1370 = vrot.lane.b32.xlu0 %v5869_v14, %s3100_s8  ;;  %v2014_v21 = vsel %vm1962_vm8, %v1949_v12, %v1459_v63  ;;  %v1982_v14 = vsel %vm1962_vm8, %v1917_v56, %v1427_v13  ;;  %v1049_v13 = vpack.c.bf16 %v926_v42, %v924_v52 }
 0x1fa   : > { %v1525_v16 = vpop.permute.xlu1 %1524 }
 0x1fb   : > { %v1493_v40 = vpop.permute.xlu0 %1492  ;;  %v2079_v20 = vsel %vm2027_vm9, %v2014_v21, %v1525_v16 }
 0x1fc   : > { %1404 = vrot.lane.b32.xlu1 %v1043_v30, %s3100_s8  ;;  %v2047_v18 = vsel %vm2027_vm9, %v1982_v14, %v1493_v40  ;;  %v938_v40 = vrot.slane %v383_v32, 2  ;;  %v5886_v14 = vld [vmem:[#allocation6_spill] sm:$0xff] }
 0x1fd   : > { %1372 = vrot.lane.b32.xlu0 %v5870_v22, %s3100_s8 }
 0x1fe   : > { %v1589_v23 = vpop.permute.xlu1 %1588 }
 0x1ff   : > { %v1557_v50 = vpop.permute.xlu0 %1556  ;;  %v2142_v47 = vsel %vm2092_vm10, %v2077_v58, %v1589_v23  ;;  %v5881_v58 = vld [vmem:[#allocation15_spill] sm:$0xff] }
 0x200   : > { %1468 = vrot.lane.b32.xlu1 %v1044_v55, %s3101_s9  ;;  %v2110_v34 = vsel %vm2092_vm10, %v2045_v4, %v1557_v50  ;;  %v5883_v4 = vld [vmem:[#allocation7_spill] sm:$0xff] }
 0x201   : > { %1436 = vrot.lane.b32.xlu0 %v5871_v53, %s3101_s9  ;;  %v934_v53 = vrot.slane %v4969_v39, 2 }
 0x202   : > { %v1591_v10 = vpop.permute.xlu1 %1590 }
 0x203   : > { %v1559_v48 = vpop.permute.xlu0 %1558  ;;  %v2144_v9 = vsel %vm2092_vm10, %v2079_v20, %v1591_v10  ;;  %v937_v5 = vsel %vm673_vm1, %v934_v53, %v936_v54  ;;  %v939_v10 = vsel %vm673_vm1, %v936_v54, %v938_v40  ;;  %v1856_v20 = vsel %vm1832_vm6, %v5886_v14, %v5885_v37  ;;  %v5889_v37 = vld [vmem:[#allocation10_spill] sm:$0xff] }
 0x204   : > { %1470 = vrot.lane.b32.xlu1 %v1045_v3, %s3101_s9  ;;  %v2112_v22 = vsel %vm2092_vm10, %v2047_v18, %v1559_v48  ;;  %v932_v3 = vrot.slane %v4964_v31, 2  ;;  %v5878_v31 = vld [vmem:[#allocation66_spill] sm:$0xff]  ;;  %v1051_v0 = vpack.c.bf16 %v939_v10, %v937_v5 }
 0x205   : > { %1438 = vrot.lane.b32.xlu0 %v5872_v29, %s3101_s9  ;;  %s5092_s9 = scalar_lea.vmem %s5373_s4, %s2854_s6 }
 0x206   : > { %v1655_v1 = vpop.permute.xlu1 %1654  ;;  %v933_v16 = vsel %vm673_vm1, %v931_v44, %v932_v3 }
 0x207   : > { %v2207_v49 = vsel %vm2157_vm11, %v2142_v47, %v1655_v1  ;;  %v1623_v24 = vpop.permute.xlu0 %1622  ;;  %v1854_v47 = vsel %vm1832_vm6, %v5883_v4, %v5882_v35 }
 0x208   : > { %v2175_v30 = vsel %vm2157_vm11, %v2110_v34, %v1623_v24  ;;  %1534 = vrot.lane.b32.xlu1 %v1046_v61, %s3102_s10  ;;  %2983 = vmatprep.mubr.msk.bf16.mxu1 %vm2236_vm12, %v2207_v49  ;;  %v5884_v24 = vld [vmem:[#allocation14_spill] sm:$0xff] }
 0x209   : > { %1502 = vrot.lane.b32.xlu0 %v5847_v45, %s3102_s10  ;;  %2951 = vmatprep.mubr.msk.bf16.mxu0 %vm2236_vm12, %v2175_v30  ;;  %v1048_v45 = vpack.c.bf16 %v922_v41, %v920_v27 }
 0x20a   : > { %v1657_v55 = vpop.permute.xlu1 %1656 }
 0x20b   : > { %v2209_v43 = vsel %vm2157_vm11, %v2144_v9, %v1657_v55  ;;  %v1625_v26 = vpop.permute.xlu0 %1624 }
 0x20c   : > { %v2177_v6 = vsel %vm2157_vm11, %v2112_v22, %v1625_v26  ;;  %1536 = vrot.lane.b32.xlu1 %v1047_v36, %s3102_s10  ;;  %2984 = vmatmul.mubr.msk.bf16.gmra.mrb[16].mxu1 %vm2236_vm12, %v2209_v43 }
 0x20d   : > { %1504 = vrot.lane.b32.xlu0 %v5850_v11, %s3102_s10  ;;  %2952 = vmatmul.mubr.msk.bf16.gmra.mrb[16].mxu0 %vm2236_vm12, %v2177_v6  ;;  %v935_v11 = vsel %vm673_vm1, %v932_v3, %v934_v53  ;;  %v5080_v6 = vld [vmem:[%s5372_s3] ss:$0 sm:$0xff] }
 0x20e   : > { %v1331_v29 = vpop.permute.xlu1 %1330  ;;  %v1050_v60 = vpack.c.bf16 %v935_v11, %v933_v16 }
 0x20f   : > { %v1329_v63 = vpop.permute.xlu0 %1328  ;;  %v1888_v27 = vsel %vm1832_vm6, %v5884_v24, %v1331_v29 }
 0x210   : > { %1600 = vrot.lane.b32.xlu1 %v1048_v45, %s3104_s13  ;;  %v1886_v33 = vsel %vm1832_vm6, %v5881_v58, %v1329_v63 }
 0x211   : > { %1568 = vrot.lane.b32.xlu0 %v5877_v8, %s3104_s13 }
 0x212   : > { %v1395_v23 = vpop.permute.xlu1 %1394 }
 0x213   : > { %v1363_v50 = vpop.permute.xlu0 %1362  ;;  %v1951_v1 = vsel %vm1897_vm7, %v1886_v33, %v1395_v23 }
 0x214   : > { %1602 = vrot.lane.b32.xlu1 %v1049_v13, %s3104_s13  ;;  %v1919_v32 = vsel %vm1897_vm7, %v1854_v47, %v1363_v50 }
 0x215   : > { %1570 = vrot.lane.b32.xlu0 %v5878_v31, %s3104_s13 }
 0x216   : > { %v1397_v39 = vpop.permute.xlu1 %1396 }
 0x217   : > { %v1365_v51 = vpop.permute.xlu0 %1364  ;;  %v1953_v41 = vsel %vm1897_vm7, %v1888_v27, %v1397_v39  ;;  %v5887_v27 = vld [vmem:[#allocation19_spill] sm:$0xff] }
 0x218   : > { %1666 = vrot.lane.b32.xlu1 %v1050_v60, %s3105_s14  ;;  %v1921_v55 = vsel %vm1897_vm7, %v1856_v20, %v1365_v51 }
 0x219   : > { %1634 = vrot.lane.b32.xlu0 %v5879_v19, %s3105_s14 }
 0x21a   : > { %v1461_v48 = vpop.permute.xlu1 %1460 }
 0x21b   : > { %v1429_v17 = vpop.permute.xlu0 %1428  ;;  %v2016_v12 = vsel %vm1962_vm8, %v1951_v1, %v1461_v48 }
 0x21c   : > { %1668 = vrot.lane.b32.xlu1 %v1051_v0, %s3105_s14  ;;  %v1984_v34 = vsel %vm1962_vm8, %v1919_v32, %v1429_v17 }
 0x21d   : > { %1636 = vrot.lane.b32.xlu0 %v5880_v38, %s3105_s14 }
 0x21e   : > { %v1463_v62 = vpop.permute.xlu1 %1462 }
 0x21f   : > { %v1431_v28 = vpop.permute.xlu0 %1430  ;;  %v2018_v22 = vsel %vm1962_vm8, %v1953_v41, %v1463_v62 }
 0x220   : > { %v1986_v26 = vsel %vm1962_vm8, %v1921_v55, %v1431_v28 }
 0x222   : > { %v1527_v46 = vpop.permute.xlu1 %1526 }
 0x223   : > { %v1495_v61 = vpop.permute.xlu0 %1494  ;;  %v2081_v49 = vsel %vm2027_vm9, %v2016_v12, %v1527_v46 }
 0x224   : > { %v2049_v56 = vsel %vm2027_vm9, %v1984_v34, %v1495_v61 }
 0x226   : > { %v1529_v59 = vpop.permute.xlu1 %1528 }
 0x227   : > { %v1497_v7 = vpop.permute.xlu0 %1496  ;;  %v2083_v44 = vsel %vm2027_vm9, %v2018_v22, %v1529_v59  ;;  %v5890_v22 = vld [vmem:[#allocation18_spill] sm:$0xff] }
 0x228   : > { %v2051_v45 = vsel %vm2027_vm9, %v1986_v26, %v1497_v7 }
 0x22a   : > { %v1593_v15 = vpop.permute.xlu1 %1592 }
 0x22b   : > { %v1561_v57 = vpop.permute.xlu0 %1560  ;;  %v2146_v21 = vsel %vm2092_vm10, %v2081_v49, %v1593_v15 }
 0x22c   : > { %v2114_v2 = vsel %vm2092_vm10, %v2049_v56, %v1561_v57 }
 0x22e   : > { %v1595_v25 = vpop.permute.xlu1 %1594 }
 0x22f   : > { %v1563_v36 = vpop.permute.xlu0 %1562  ;;  %v2148_v3 = vsel %vm2092_vm10, %v2083_v44, %v1595_v25 }
 0x230   : > { %v2116_v52 = vsel %vm2092_vm10, %v2051_v45, %v1563_v36 }
 0x232   : > { %v1659_v30 = vpop.permute.xlu1 %1658 }
 0x233   : > { %v2211_v18 = vsel %vm2157_vm11, %v2146_v21, %v1659_v30  ;;  %v1627_v9 = vpop.permute.xlu0 %1626  ;;  %v5888_v30 = vld [vmem:[#allocation29_spill] sm:$0xff] }
 0x234   : > { %v2179_v43 = vsel %vm2157_vm11, %v2114_v2, %v1627_v9  ;;  %2987 = vmatprep.mubr.msk.bf16.mxu1 %vm2236_vm12, %v2211_v18  ;;  %v1858_v14 = vsel %vm1832_vm6, %v5889_v37, %v5888_v30 }
 0x235   : > { %2955 = vmatprep.mubr.msk.bf16.mxu0 %vm2236_vm12, %v2179_v43 }
 0x236   : > { %v1661_v53 = vpop.permute.xlu1 %1660 }
 0x237   : > { %v2213_v42 = vsel %vm2157_vm11, %v2148_v3, %v1661_v53  ;;  %v1629_v29 = vpop.permute.xlu0 %1628  ;;  %v2937_v63 = vpop.f32.mrb[0].mxu0  ;;  %v5891_v3 = vld [vmem:[#allocation27_spill] sm:$0xff]  ;;  %v5892_v53 = vld [vmem:[#allocation8_spill] sm:$0xff] }
 0x238   : > { %v2181_v13 = vsel %vm2157_vm11, %v2116_v52, %v1629_v29  ;;  %v2351_v54 = vadd.f32 %v2937_v63, %v5080_v6  ;;  %v2342_v8 = vpop.f32.mrb[1].mxu0  ;;  %2988 = vmatmul.mubr.msk.bf16.gmra.mrb[20].mxu1 %vm2236_vm12, %v2213_v42  ;;  %v1860_v52 = vsel %vm1832_vm6, %v5892_v53, %v5891_v3  ;;  %v5895_v3 = vld [vmem:[#allocation11_spill] sm:$0xff] }
 0x239   : > { %v2343_v16 = vadd.f32 %v5080_v6, %v2342_v8  ;;  %2956 = vmatmul.mubr.msk.bf16.gmra.mrb[20].mxu0 %vm2236_vm12, %v2181_v13  ;;  %v2938_v11 = vpop.f32.mrb[2].mxu0 }
 0x23a   : > { %v2599_v40 = vmax.f32 %v2351_v54, 0.0  ;;  %v2354_v23 = vadd.f32 %v2938_v11, %v5080_v6  ;;  %v1335_v50 = vpop.permute.xlu1 %1334  ;;  %v2345_v60 = vpop.f32.mrb[3].mxu0 }
 0x23b   : > { %v2597_v31 = vmax.f32 %v2343_v16, 0.0  ;;  %v2346_v5 = vadd.f32 %v5080_v6, %v2345_v60  ;;  %v1333_v10 = vpop.permute.xlu0 %1332  ;;  %v1892_v43 = vsel %vm1832_vm6, %v5890_v22, %v1335_v50 }
 0x23c   : > { %2664 = vst.msk [vmem:[%s5092_s9 + $0x10] sm:$0xff] %vm2661_vm13, %v2599_v40  ;;  %v2600_v39 = vmax.f32 %v2354_v23, 0.0  ;;  %v2969_v51 = vpop.f32.mrb[0].mxu1  ;;  %v1890_v56 = vsel %vm1832_vm6, %v5887_v27, %v1333_v10 }
 0x23d   : > { %2662 = vst.msk [vmem:[%s5092_s9] sm:$0xff] %vm2661_vm13, %v2597_v31  ;;  %v2598_v0 = vmax.f32 %v2346_v5, 0.0  ;;  %v2479_v19 = vadd.f32 %v2969_v51, %v5080_v6  ;;  %v2470_v48 = vpop.f32.mrb[1].mxu1 }
 0x23e   : > { %2665 = vst.msk [vmem:[%s5092_s9 + $0x18] sm:$0xff] %vm2661_vm13, %v2600_v39  ;;  %v2471_v17 = vadd.f32 %v5080_v6, %v2470_v48  ;;  %v2970_v38 = vpop.f32.mrb[2].mxu1  ;;  %v1399_v62 = vpop.permute.xlu1 %1398 }
 0x23f   : > { %2663 = vst.msk [vmem:[%s5092_s9 + $0x8] sm:$0xff] %vm2661_vm13, %v2598_v0  ;;  %v2631_v28 = vmax.f32 %v2479_v19, 0.0  ;;  %v2482_v46 = vadd.f32 %v2970_v38, %v5080_v6  ;;  %v2473_v61 = vpop.f32.mrb[3].mxu1  ;;  %v1367_v59 = vpop.permute.xlu0 %1366  ;;  %v1955_v20 = vsel %vm1897_vm7, %v1890_v56, %v1399_v62 }
 0x240   : > { %v2629_v7 = vmax.f32 %v2471_v17, 0.0  ;;  %v2474_v15 = vadd.f32 %v5080_v6, %v2473_v61  ;;  %v1923_v2 = vsel %vm1897_vm7, %v1858_v14, %v1367_v59 }
 0x241   : > { %2696 = vst.msk [vmem:[%s5092_s9 + $0x110] sm:$0xff] %vm2661_vm13, %v2631_v28  ;;  %v2632_v57 = vmax.f32 %v2482_v46, 0.0 }
 0x242   : > { %2694 = vst.msk [vmem:[%s5092_s9 + $0x100] sm:$0xff] %vm2661_vm13, %v2629_v7  ;;  %v2630_v58 = vmax.f32 %v2474_v15, 0.0  ;;  %v1401_v33 = vpop.permute.xlu1 %1400 }
 0x243   : > { %2697 = vst.msk [vmem:[%s5092_s9 + $0x118] sm:$0xff] %vm2661_vm13, %v2632_v57  ;;  %v1369_v25 = vpop.permute.xlu0 %1368  ;;  %v1957_v42 = vsel %vm1897_vm7, %v1892_v43, %v1401_v33  ;;  %v5893_v43 = vld [vmem:[#allocation21_spill] sm:$0xff] }
 0x244   : > { %2695 = vst.msk [vmem:[%s5092_s9 + $0x108] sm:$0xff] %vm2661_vm13, %v2630_v58  ;;  %v1925_v8 = vsel %vm1897_vm7, %v1860_v52, %v1369_v25  ;;  %v5896_v52 = vld [vmem:[#allocation33_spill] sm:$0xff] }
 0x246   : > { %v1465_v35 = vpop.permute.xlu1 %1464 }
 0x247   : > { %v1433_v4 = vpop.permute.xlu0 %1432  ;;  %v2020_v18 = vsel %vm1962_vm8, %v1955_v20, %v1465_v35 }
 0x248   : > { %v1988_v9 = vsel %vm1962_vm8, %v1923_v2, %v1433_v4 }
 0x24a   : > { %v1467_v47 = vpop.permute.xlu1 %1466 }
 0x24b   : > { %v1435_v1 = vpop.permute.xlu0 %1434  ;;  %v2022_v16 = vsel %vm1962_vm8, %v1957_v42, %v1467_v47  ;;  %v5897_v42 = vld [vmem:[#allocation12_spill] sm:$0xff] }
 0x24c   : > { %v1990_v50 = vsel %vm1962_vm8, %v1925_v8, %v1435_v1  ;;  %v5898_v8 = vld [vmem:[#allocation20_spill] sm:$0xff] }
 0x24e   : > { %v1531_v36 = vpop.permute.xlu1 %1530 }
 0x24f   : > { %v1499_v32 = vpop.permute.xlu0 %1498  ;;  %v2085_v55 = vsel %vm2027_vm9, %v2020_v18, %v1531_v36 }
 0x250   : > { %v2053_v26 = vsel %vm2027_vm9, %v1988_v9, %v1499_v32 }
 0x252   : > { %v1533_v12 = vpop.permute.xlu1 %1532 }
 0x253   : > { %v1501_v34 = vpop.permute.xlu0 %1500  ;;  %v2087_v60 = vsel %vm2027_vm9, %v2022_v16, %v1533_v12 }
 0x254   : > { %v2055_v10 = vsel %vm2027_vm9, %v1990_v50, %v1501_v34 }
 0x256   : > { %v1597_v49 = vpop.permute.xlu1 %1596 }
 0x257   : > { %v1565_v24 = vpop.permute.xlu0 %1564  ;;  %v2150_v44 = vsel %vm2092_vm10, %v2085_v55, %v1597_v49 }
 0x258   : > { %v2118_v29 = vsel %vm2092_vm10, %v2053_v26, %v1565_v24 }
 0x25a   : > { %v1599_v21 = vpop.permute.xlu1 %1598 }
 0x25b   : > { %v1567_v41 = vpop.permute.xlu0 %1566  ;;  %v2152_v39 = vsel %vm2092_vm10, %v2087_v60, %v1599_v21 }
 0x25c   : > { %v2120_v17 = vsel %vm2092_vm10, %v2055_v10, %v1567_v41 }
 0x25e   : > { %v1663_v45 = vpop.permute.xlu1 %1662 }
 0x25f   : > { %v2215_v63 = vsel %vm2157_vm11, %v2150_v44, %v1663_v45  ;;  %v1631_v13 = vpop.permute.xlu0 %1630  ;;  %v2941_v54 = vpop.f32.mrb[4].mxu0  ;;  %v5894_v45 = vld [vmem:[#allocation31_spill] sm:$0xff] }
 0x260   : > { %v2183_v11 = vsel %vm2157_vm11, %v2118_v29, %v1631_v13  ;;  %v2367_v40 = vadd.f32 %v2941_v54, %v5080_v6  ;;  %v2358_v23 = vpop.f32.mrb[5].mxu0  ;;  %2991 = vmatprep.mubr.msk.bf16.mxu1 %vm2236_vm12, %v2215_v63  ;;  %v1864_v53 = vsel %vm1832_vm6, %v5895_v3, %v5894_v45  ;;  %v1862_v29 = vsel %vm1832_vm6, %v5897_v42, %v5896_v52 }
 0x261   : > { %v2359_v31 = vadd.f32 %v5080_v6, %v2358_v23  ;;  %2959 = vmatprep.mubr.msk.bf16.mxu0 %vm2236_vm12, %v2183_v11  ;;  %v2942_v5 = vpop.f32.mrb[6].mxu0 }
 0x262   : > { %v2603_v51 = vmax.f32 %v2367_v40, 0.0  ;;  %v2370_v0 = vadd.f32 %v2942_v5, %v5080_v6  ;;  %v1665_v19 = vpop.permute.xlu1 %1664  ;;  %v2361_v48 = vpop.f32.mrb[7].mxu0 }
 0x263   : > { %v2601_v38 = vmax.f32 %v2359_v31, 0.0  ;;  %v2217_v62 = vsel %vm2157_vm11, %v2152_v39, %v1665_v19  ;;  %v2362_v28 = vadd.f32 %v5080_v6, %v2361_v48  ;;  %v1633_v46 = vpop.permute.xlu0 %1632 }
 0x264   : > { %2668 = vst.msk [vmem:[%s5092_s9 + $0x30] sm:$0xff] %vm2661_vm13, %v2603_v51  ;;  %v2604_v61 = vmax.f32 %v2370_v0, 0.0  ;;  %v2185_v59 = vsel %vm2157_vm11, %v2120_v17, %v1633_v46  ;;  %v2973_v7 = vpop.f32.mrb[4].mxu1  ;;  %2992 = vmatmul.mubr.msk.bf16.gmra.mrb[24].mxu1 %vm2236_vm12, %v2217_v62 }
 0x265   : > { %2666 = vst.msk [vmem:[%s5092_s9 + $0x20] sm:$0xff] %vm2661_vm13, %v2601_v38  ;;  %v2602_v15 = vmax.f32 %v2362_v28, 0.0  ;;  %v2495_v57 = vadd.f32 %v2973_v7, %v5080_v6  ;;  %2960 = vmatmul.mubr.msk.bf16.gmra.mrb[24].mxu0 %vm2236_vm12, %v2185_v59  ;;  %v2486_v58 = vpop.f32.mrb[5].mxu1 }
 0x266   : > { %2669 = vst.msk [vmem:[%s5092_s9 + $0x38] sm:$0xff] %vm2661_vm13, %v2604_v61  ;;  %v2487_v33 = vadd.f32 %v5080_v6, %v2486_v58  ;;  %v2974_v25 = vpop.f32.mrb[6].mxu1  ;;  %v1339_v35 = vpop.permute.xlu1 %1338 }
 0x267   : > { %2667 = vst.msk [vmem:[%s5092_s9 + $0x28] sm:$0xff] %vm2661_vm13, %v2602_v15  ;;  %v2635_v4 = vmax.f32 %v2495_v57, 0.0  ;;  %v2498_v47 = vadd.f32 %v2974_v25, %v5080_v6  ;;  %v2489_v1 = vpop.f32.mrb[7].mxu1  ;;  %v1337_v36 = vpop.permute.xlu0 %1336  ;;  %v1896_v16 = vsel %vm1832_vm6, %v5898_v8, %v1339_v35 }
 0x268   : > { %v2633_v32 = vmax.f32 %v2487_v33, 0.0  ;;  %v2490_v12 = vadd.f32 %v5080_v6, %v2489_v1  ;;  %v1894_v26 = vsel %vm1832_vm6, %v5893_v43, %v1337_v36 }
 0x269   : > { %2700 = vst.msk [vmem:[%s5092_s9 + $0x130] sm:$0xff] %vm2661_vm13, %v2635_v4  ;;  %v2636_v34 = vmax.f32 %v2498_v47, 0.0 }
 0x26a   : > { %2698 = vst.msk [vmem:[%s5092_s9 + $0x120] sm:$0xff] %vm2661_vm13, %v2633_v32  ;;  %v2634_v49 = vmax.f32 %v2490_v12, 0.0  ;;  %v1403_v24 = vpop.permute.xlu1 %1402 }
 0x26b   : > { %2701 = vst.msk [vmem:[%s5092_s9 + $0x138] sm:$0xff] %vm2661_vm13, %v2636_v34  ;;  %v1371_v27 = vpop.permute.xlu0 %1370  ;;  %v1959_v63 = vsel %vm1897_vm7, %v1894_v26, %v1403_v24 }
 0x26c   : > { %2699 = vst.msk [vmem:[%s5092_s9 + $0x128] sm:$0xff] %vm2661_vm13, %v2634_v49  ;;  %v1927_v11 = vsel %vm1897_vm7, %v1862_v29, %v1371_v27 }
 0x26e   : > { %v1405_v56 = vpop.permute.xlu1 %1404 }
 0x26f   : > { %v1373_v21 = vpop.permute.xlu0 %1372  ;;  %v1961_v60 = vsel %vm1897_vm7, %v1896_v16, %v1405_v56 }
 0x270   : > { %v1929_v7 = vsel %vm1897_vm7, %v1864_v53, %v1373_v21 }
 0x272   : > { %v1469_v30 = vpop.permute.xlu1 %1468 }
 0x273   : > { %v1437_v37 = vpop.permute.xlu0 %1436  ;;  %v2024_v40 = vsel %vm1962_vm8, %v1959_v63, %v1469_v30 }
 0x274   : > { %v1992_v31 = vsel %vm1962_vm8, %v1927_v11, %v1437_v37 }
 0x276   : > { %v1471_v14 = vpop.permute.xlu1 %1470 }
 0x277   : > { %v1439_v20 = vpop.permute.xlu0 %1438  ;;  %v2026_v15 = vsel %vm1962_vm8, %v1961_v60, %v1471_v14 }
 0x278   : > { %v1994_v25 = vsel %vm1962_vm8, %v1929_v7, %v1439_v20 }
 0x27a   : > { %v1535_v41 = vpop.permute.xlu1 %1534 }
 0x27b   : > { %v1503_v2 = vpop.permute.xlu0 %1502  ;;  %v2089_v5 = vsel %vm2027_vm9, %v2024_v40, %v1535_v41 }
 0x27c   : > { %v2057_v51 = vsel %vm2027_vm9, %v1992_v31, %v1503_v2 }
 0x27e   : > { %v1537_v18 = vpop.permute.xlu1 %1536 }
 0x27f   : > { %v1505_v9 = vpop.permute.xlu0 %1504  ;;  %v2091_v35 = vsel %vm2027_vm9, %v2026_v15, %v1537_v18 }
 0x280   : > { %v2059_v36 = vsel %vm2027_vm9, %v1994_v25, %v1505_v9 }
 0x282   : > { %v1601_v55 = vpop.permute.xlu1 %1600 }
 0x283   : > { %v1569_v22 = vpop.permute.xlu0 %1568  ;;  %v2154_v0 = vsel %vm2092_vm10, %v2089_v5, %v1601_v55 }
 0x284   : > { %v2122_v62 = vsel %vm2092_vm10, %v2057_v51, %v1569_v22 }
 0x286   : > { %v1603_v44 = vpop.permute.xlu1 %1602 }
 0x287   : > { %v1571_v13 = vpop.permute.xlu0 %1570  ;;  %v2945_v54 = vpop.f32.mrb[8].mxu0  ;;  %v2156_v32 = vsel %vm2092_vm10, %v2091_v35, %v1603_v44 }
 0x288   : > { %v2383_v23 = vadd.f32 %v2945_v54, %v5080_v6  ;;  %v2374_v50 = vpop.f32.mrb[9].mxu0  ;;  %v2124_v24 = vsel %vm2092_vm10, %v2059_v36, %v1571_v13 }
 0x289   : > { %v2375_v10 = vadd.f32 %v5080_v6, %v2374_v50  ;;  %v2946_v39 = vpop.f32.mrb[10].mxu0 }
 0x28a   : > { %v2607_v19 = vmax.f32 %v2383_v23, 0.0  ;;  %v2386_v48 = vadd.f32 %v2946_v39, %v5080_v6  ;;  %v1667_v17 = vpop.permute.xlu1 %1666  ;;  %v2377_v38 = vpop.f32.mrb[11].mxu0 }
 0x28b   : > { %v2605_v28 = vmax.f32 %v2375_v10, 0.0  ;;  %v2219_v46 = vsel %vm2157_vm11, %v2154_v0, %v1667_v17  ;;  %v2378_v61 = vadd.f32 %v5080_v6, %v2377_v38  ;;  %v1635_v59 = vpop.permute.xlu0 %1634 }
 0x28c   : > { %2672 = vst.msk [vmem:[%s5092_s9 + $0x50] sm:$0xff] %vm2661_vm13, %v2607_v19  ;;  %v2608_v57 = vmax.f32 %v2386_v48, 0.0  ;;  %v2187_v58 = vsel %vm2157_vm11, %v2122_v62, %v1635_v59  ;;  %v2977_v33 = vpop.f32.mrb[8].mxu1  ;;  %2995 = vmatprep.mubr.msk.bf16.mxu1 %vm2236_vm12, %v2219_v46 }
 0x28d   : > { %2670 = vst.msk [vmem:[%s5092_s9 + $0x40] sm:$0xff] %vm2661_vm13, %v2605_v28  ;;  %v2606_v4 = vmax.f32 %v2378_v61, 0.0  ;;  %v2511_v47 = vadd.f32 %v2977_v33, %v5080_v6  ;;  %2963 = vmatprep.mubr.msk.bf16.mxu0 %vm2236_vm12, %v2187_v58  ;;  %v2502_v1 = vpop.f32.mrb[9].mxu1 }
 0x28e   : > { %2673 = vst.msk [vmem:[%s5092_s9 + $0x58] sm:$0xff] %vm2661_vm13, %v2608_v57  ;;  %v2503_v12 = vadd.f32 %v5080_v6, %v2502_v1  ;;  %v2978_v34 = vpop.f32.mrb[10].mxu1  ;;  %v1669_v49 = vpop.permute.xlu1 %1668 }
 0x28f   : > { %2671 = vst.msk [vmem:[%s5092_s9 + $0x48] sm:$0xff] %vm2661_vm13, %v2606_v4  ;;  %v2639_v27 = vmax.f32 %v2511_v47, 0.0  ;;  %v2514_v56 = vadd.f32 %v2978_v34, %v5080_v6  ;;  %v2221_v21 = vsel %vm2157_vm11, %v2156_v32, %v1669_v49  ;;  %v2505_v30 = vpop.f32.mrb[11].mxu1  ;;  %v1637_v37 = vpop.permute.xlu0 %1636 }
 0x290   : > { %v2637_v14 = vmax.f32 %v2503_v12, 0.0  ;;  %v2506_v20 = vadd.f32 %v5080_v6, %v2505_v30  ;;  %v2189_v41 = vsel %vm2157_vm11, %v2124_v24, %v1637_v37  ;;  %2996 = vmatmul.mubr.msk.bf16.gmra.mrb[28].mxu1 %vm2236_vm12, %v2221_v21 }
 0x291   : > { %2704 = vst.msk [vmem:[%s5092_s9 + $0x150] sm:$0xff] %vm2661_vm13, %v2639_v27  ;;  %v2640_v2 = vmax.f32 %v2514_v56, 0.0  ;;  %2964 = vmatmul.mubr.msk.bf16.gmra.mrb[28].mxu0 %vm2236_vm12, %v2189_v41 }
 0x292   : > { %2702 = vst.msk [vmem:[%s5092_s9 + $0x140] sm:$0xff] %vm2661_vm13, %v2637_v14  ;;  %v2638_v18 = vmax.f32 %v2506_v20, 0.0 }
 0x293   : > { %2705 = vst.msk [vmem:[%s5092_s9 + $0x158] sm:$0xff] %vm2661_vm13, %v2640_v2 }
 0x294   : > { %2703 = vst.msk [vmem:[%s5092_s9 + $0x148] sm:$0xff] %vm2661_vm13, %v2638_v18 }
 0x2b3   : > { %v2981_v9 = vpop.f32.mrb[12].mxu1 }
 0x2b4   : > { %v2949_v55 = vpop.f32.mrb[12].mxu0  ;;  %v2527_v22 = vadd.f32 %v2981_v9, %v5080_v6  ;;  %v2518_v43 = vpop.f32.mrb[13].mxu1 }
 0x2b5   : > { %v2399_v26 = vadd.f32 %v2949_v55, %v5080_v6  ;;  %v2390_v44 = vpop.f32.mrb[13].mxu0  ;;  %v2519_v45 = vadd.f32 %v5080_v6, %v2518_v43  ;;  %v2982_v3 = vpop.f32.mrb[14].mxu1 }
 0x2b6   : > { %v2643_v53 = vmax.f32 %v2527_v22, 0.0  ;;  %v2391_v52 = vadd.f32 %v5080_v6, %v2390_v44  ;;  %v2950_v42 = vpop.f32.mrb[14].mxu0  ;;  %v2530_v29 = vadd.f32 %v2982_v3, %v5080_v6  ;;  %v2521_v63 = vpop.f32.mrb[15].mxu1 }
 0x2b7   : > { %v2611_v13 = vmax.f32 %v2399_v26, 0.0  ;;  %v2641_v54 = vmax.f32 %v2519_v45, 0.0  ;;  %v2402_v8 = vadd.f32 %v2950_v42, %v5080_v6  ;;  %v2393_v16 = vpop.f32.mrb[15].mxu0  ;;  %v2522_v11 = vadd.f32 %v5080_v6, %v2521_v63 }
 0x2b8   : > { %2708 = vst.msk [vmem:[%s5092_s9 + $0x170] sm:$0xff] %vm2661_vm13, %v2643_v53  ;;  %v2609_v40 = vmax.f32 %v2391_v52, 0.0  ;;  %v2644_v23 = vmax.f32 %v2530_v29, 0.0  ;;  %v2394_v50 = vadd.f32 %v5080_v6, %v2393_v16 }
 0x2b9   : > { %2676 = vst.msk [vmem:[%s5092_s9 + $0x70] sm:$0xff] %vm2661_vm13, %v2611_v13  ;;  %2706 = vst.msk [vmem:[%s5092_s9 + $0x160] sm:$0xff] %vm2661_vm13, %v2641_v54  ;;  %v2612_v60 = vmax.f32 %v2402_v8, 0.0  ;;  %v2642_v31 = vmax.f32 %v2522_v11, 0.0 }
 0x2ba   : > { %2674 = vst.msk [vmem:[%s5092_s9 + $0x60] sm:$0xff] %vm2661_vm13, %v2609_v40  ;;  %2709 = vst.msk [vmem:[%s5092_s9 + $0x178] sm:$0xff] %vm2661_vm13, %v2644_v23  ;;  %v2610_v5 = vmax.f32 %v2394_v50, 0.0 }
 0x2bb   : > { %2677 = vst.msk [vmem:[%s5092_s9 + $0x78] sm:$0xff] %vm2661_vm13, %v2612_v60  ;;  %2707 = vst.msk [vmem:[%s5092_s9 + $0x168] sm:$0xff] %vm2661_vm13, %v2642_v31 }
 0x2bc   : > { %2675 = vst.msk [vmem:[%s5092_s9 + $0x68] sm:$0xff] %vm2661_vm13, %v2610_v5 }
 0x2df   : > { %v2985_v10 = vpop.f32.mrb[16].mxu1 }
 0x2e0   : > { %v2953_v39 = vpop.f32.mrb[16].mxu0  ;;  %v2543_v51 = vadd.f32 %v2985_v10, %v5080_v6  ;;  %v2534_v0 = vpop.f32.mrb[17].mxu1 }
 0x2e1   : > { %v2415_v19 = vadd.f32 %v2953_v39, %v5080_v6  ;;  %v2406_v48 = vpop.f32.mrb[17].mxu0  ;;  %v2535_v17 = vadd.f32 %v5080_v6, %v2534_v0  ;;  %v2986_v38 = vpop.f32.mrb[18].mxu1 }
 0x2e2   : > { %v2647_v62 = vmax.f32 %v2543_v51, 0.0  ;;  %v2407_v28 = vadd.f32 %v5080_v6, %v2406_v48  ;;  %v2954_v46 = vpop.f32.mrb[18].mxu0  ;;  %v2546_v61 = vadd.f32 %v2986_v38, %v5080_v6  ;;  %v2537_v59 = vpop.f32.mrb[19].mxu1 }
 0x2e3   : > { %v2615_v7 = vmax.f32 %v2415_v19, 0.0  ;;  %v2645_v15 = vmax.f32 %v2535_v17, 0.0  ;;  %v2418_v57 = vadd.f32 %v2954_v46, %v5080_v6  ;;  %v2409_v58 = vpop.f32.mrb[19].mxu0  ;;  %v2538_v33 = vadd.f32 %v5080_v6, %v2537_v59 }
 0x2e4   : > { %2712 = vst.msk [vmem:[%s5092_s9 + $0x190] sm:$0xff] %vm2661_vm13, %v2647_v62  ;;  %v2613_v25 = vmax.f32 %v2407_v28, 0.0  ;;  %v2648_v35 = vmax.f32 %v2546_v61, 0.0  ;;  %v2410_v4 = vadd.f32 %v5080_v6, %v2409_v58 }
 0x2e5   : > { %2680 = vst.msk [vmem:[%s5092_s9 + $0x90] sm:$0xff] %vm2661_vm13, %v2615_v7  ;;  %2710 = vst.msk [vmem:[%s5092_s9 + $0x180] sm:$0xff] %vm2661_vm13, %v2645_v15  ;;  %v2616_v47 = vmax.f32 %v2418_v57, 0.0  ;;  %v2646_v1 = vmax.f32 %v2538_v33, 0.0 }
 0x2e6   : > { %2678 = vst.msk [vmem:[%s5092_s9 + $0x80] sm:$0xff] %vm2661_vm13, %v2613_v25  ;;  %2713 = vst.msk [vmem:[%s5092_s9 + $0x198] sm:$0xff] %vm2661_vm13, %v2648_v35  ;;  %v2614_v36 = vmax.f32 %v2410_v4, 0.0 }
 0x2e7   : > { %2681 = vst.msk [vmem:[%s5092_s9 + $0x98] sm:$0xff] %vm2661_vm13, %v2616_v47  ;;  %2711 = vst.msk [vmem:[%s5092_s9 + $0x188] sm:$0xff] %vm2661_vm13, %v2646_v1 }
 0x2e8   : > { %2679 = vst.msk [vmem:[%s5092_s9 + $0x88] sm:$0xff] %vm2661_vm13, %v2614_v36 }
 0x30b   : > { %v2989_v32 = vpop.f32.mrb[20].mxu1 }
 0x30c   : > { %v2957_v12 = vpop.f32.mrb[20].mxu0  ;;  %v2559_v34 = vadd.f32 %v2989_v32, %v5080_v6  ;;  %v2550_v49 = vpop.f32.mrb[21].mxu1 }
 0x30d   : > { %v2431_v24 = vadd.f32 %v2957_v12, %v5080_v6  ;;  %v2422_v27 = vpop.f32.mrb[21].mxu0  ;;  %v2551_v56 = vadd.f32 %v5080_v6, %v2550_v49  ;;  %v2990_v21 = vpop.f32.mrb[22].mxu1 }
 0x30e   : > { %v2651_v30 = vmax.f32 %v2559_v34, 0.0  ;;  %v2423_v37 = vadd.f32 %v5080_v6, %v2422_v27  ;;  %v2958_v14 = vpop.f32.mrb[22].mxu0  ;;  %v2562_v20 = vadd.f32 %v2990_v21, %v5080_v6  ;;  %v2553_v41 = vpop.f32.mrb[23].mxu1 }
 0x30f   : > { %v2619_v2 = vmax.f32 %v2431_v24, 0.0  ;;  %v2649_v18 = vmax.f32 %v2551_v56, 0.0  ;;  %v2434_v9 = vadd.f32 %v2958_v14, %v5080_v6  ;;  %v2425_v55 = vpop.f32.mrb[23].mxu0  ;;  %v2554_v22 = vadd.f32 %v5080_v6, %v2553_v41 }
 0x310   : > { %2716 = vst.msk [vmem:[%s5092_s9 + $0x1b0] sm:$0xff] %vm2661_vm13, %v2651_v30  ;;  %v2617_v43 = vmax.f32 %v2423_v37, 0.0  ;;  %v2652_v26 = vmax.f32 %v2562_v20, 0.0  ;;  %v2426_v44 = vadd.f32 %v5080_v6, %v2425_v55 }
 0x311   : > { %2684 = vst.msk [vmem:[%s5092_s9 + $0xb0] sm:$0xff] %vm2661_vm13, %v2619_v2  ;;  %2714 = vst.msk [vmem:[%s5092_s9 + $0x1a0] sm:$0xff] %vm2661_vm13, %v2649_v18  ;;  %v2620_v45 = vmax.f32 %v2434_v9, 0.0  ;;  %v2650_v3 = vmax.f32 %v2554_v22, 0.0 }
 0x312   : > { %2682 = vst.msk [vmem:[%s5092_s9 + $0xa0] sm:$0xff] %vm2661_vm13, %v2617_v43  ;;  %2717 = vst.msk [vmem:[%s5092_s9 + $0x1b8] sm:$0xff] %vm2661_vm13, %v2652_v26  ;;  %v2618_v53 = vmax.f32 %v2426_v44, 0.0 }
 0x313   : > { %2685 = vst.msk [vmem:[%s5092_s9 + $0xb8] sm:$0xff] %vm2661_vm13, %v2620_v45  ;;  %2715 = vst.msk [vmem:[%s5092_s9 + $0x1a8] sm:$0xff] %vm2661_vm13, %v2650_v3 }
 0x314   : > { %2683 = vst.msk [vmem:[%s5092_s9 + $0xa8] sm:$0xff] %vm2661_vm13, %v2618_v53 }
 0x337   : > { %v2993_v52 = vpop.f32.mrb[24].mxu1 }
 0x338   : > { %v2961_v42 = vpop.f32.mrb[24].mxu0  ;;  %v2575_v29 = vadd.f32 %v2993_v52, %v5080_v6  ;;  %v2566_v63 = vpop.f32.mrb[25].mxu1 }
 0x339   : > { %v2447_v13 = vadd.f32 %v2961_v42, %v5080_v6  ;;  %v2438_v54 = vpop.f32.mrb[25].mxu0  ;;  %v2567_v8 = vadd.f32 %v5080_v6, %v2566_v63  ;;  %v2994_v16 = vpop.f32.mrb[26].mxu1 }
 0x33a   : > { %v2655_v11 = vmax.f32 %v2575_v29, 0.0  ;;  %v2439_v40 = vadd.f32 %v5080_v6, %v2438_v54  ;;  %v2962_v23 = vpop.f32.mrb[26].mxu0  ;;  %v2578_v50 = vadd.f32 %v2994_v16, %v5080_v6  ;;  %v2569_v60 = vpop.f32.mrb[27].mxu1 }
 0x33b   : > { %v2623_v31 = vmax.f32 %v2447_v13, 0.0  ;;  %v2653_v5 = vmax.f32 %v2567_v8, 0.0  ;;  %v2450_v10 = vadd.f32 %v2962_v23, %v5080_v6  ;;  %v2441_v39 = vpop.f32.mrb[27].mxu0  ;;  %v2570_v51 = vadd.f32 %v5080_v6, %v2569_v60 }
 0x33c   : > { %2720 = vst.msk [vmem:[%s5092_s9 + $0x1d0] sm:$0xff] %vm2661_vm13, %v2655_v11  ;;  %v2621_v0 = vmax.f32 %v2439_v40, 0.0  ;;  %v2656_v19 = vmax.f32 %v2578_v50, 0.0  ;;  %v2442_v48 = vadd.f32 %v5080_v6, %v2441_v39 }
 0x33d   : > { %2688 = vst.msk [vmem:[%s5092_s9 + $0xd0] sm:$0xff] %vm2661_vm13, %v2623_v31  ;;  %2718 = vst.msk [vmem:[%s5092_s9 + $0x1c0] sm:$0xff] %vm2661_vm13, %v2653_v5  ;;  %v2624_v17 = vmax.f32 %v2450_v10, 0.0  ;;  %v2654_v38 = vmax.f32 %v2570_v51, 0.0 }
 0x33e   : > { %2686 = vst.msk [vmem:[%s5092_s9 + $0xc0] sm:$0xff] %vm2661_vm13, %v2621_v0  ;;  %2721 = vst.msk [vmem:[%s5092_s9 + $0x1d8] sm:$0xff] %vm2661_vm13, %v2656_v19  ;;  %v2622_v62 = vmax.f32 %v2442_v48, 0.0 }
 0x33f   : > { %2689 = vst.msk [vmem:[%s5092_s9 + $0xd8] sm:$0xff] %vm2661_vm13, %v2624_v17  ;;  %2719 = vst.msk [vmem:[%s5092_s9 + $0x1c8] sm:$0xff] %vm2661_vm13, %v2654_v38 }
 0x340   : > { %2687 = vst.msk [vmem:[%s5092_s9 + $0xc8] sm:$0xff] %vm2661_vm13, %v2622_v62 }
 0x363   : > { %v2997_v28 = vpop.f32.mrb[28].mxu1 }
 0x364   : > { %v2965_v46 = vpop.f32.mrb[28].mxu0  ;;  %v2591_v61 = vadd.f32 %v2997_v28, %v5080_v6  ;;  %v2582_v59 = vpop.f32.mrb[29].mxu1 }
 0x365   : > { %v2463_v7 = vadd.f32 %v2965_v46, %v5080_v6  ;;  %v2454_v15 = vpop.f32.mrb[29].mxu0  ;;  %v2583_v57 = vadd.f32 %v5080_v6, %v2582_v59  ;;  %v2998_v58 = vpop.f32.mrb[30].mxu1 }
 0x366   : > { %v2659_v33 = vmax.f32 %v2591_v61, 0.0  ;;  %v2455_v25 = vadd.f32 %v5080_v6, %v2454_v15  ;;  %v2966_v35 = vpop.f32.mrb[30].mxu0  ;;  %v2594_v4 = vadd.f32 %v2998_v58, %v5080_v6  ;;  %v2585_v47 = vpop.f32.mrb[31].mxu1 }
 0x367   : > { %v2627_v1 = vmax.f32 %v2463_v7, 0.0  ;;  %v2657_v36 = vmax.f32 %v2583_v57, 0.0  ;;  %v2466_v32 = vadd.f32 %v2966_v35, %v5080_v6  ;;  %v2457_v12 = vpop.f32.mrb[31].mxu0  ;;  %v2586_v34 = vadd.f32 %v5080_v6, %v2585_v47 }
 0x368   : > { %2724 = vst.msk [vmem:[%s5092_s9 + $0x1f0] sm:$0xff] %vm2661_vm13, %v2659_v33  ;;  %v2625_v49 = vmax.f32 %v2455_v25, 0.0  ;;  %v2660_v24 = vmax.f32 %v2594_v4, 0.0  ;;  %v2458_v27 = vadd.f32 %v5080_v6, %v2457_v12 }
 0x369   : > { %2692 = vst.msk [vmem:[%s5092_s9 + $0xf0] sm:$0xff] %vm2661_vm13, %v2627_v1  ;;  %2722 = vst.msk [vmem:[%s5092_s9 + $0x1e0] sm:$0xff] %vm2661_vm13, %v2657_v36  ;;  %v2628_v56 = vmax.f32 %v2466_v32, 0.0  ;;  %v2658_v21 = vmax.f32 %v2586_v34, 0.0 }
 0x36a   : > { %2690 = vst.msk [vmem:[%s5092_s9 + $0xe0] sm:$0xff] %vm2661_vm13, %v2625_v49  ;;  %2725 = vst.msk [vmem:[%s5092_s9 + $0x1f8] sm:$0xff] %vm2661_vm13, %v2660_v24  ;;  %v2626_v30 = vmax.f32 %v2458_v27, 0.0 }
 0x36b   : > { %2693 = vst.msk [vmem:[%s5092_s9 + $0xf8] sm:$0xff] %vm2661_vm13, %v2628_v56  ;;  %2723 = vst.msk [vmem:[%s5092_s9 + $0x1e8] sm:$0xff] %vm2661_vm13, %v2658_v21 }
 0x36c   : > { %2691 = vst.msk [vmem:[%s5092_s9 + $0xe8] sm:$0xff] %vm2661_vm13, %v2626_v30 }
 0x36d PF: > { %s14_s19 = sadd.s32 1, %s3095_s19   ;;  %s5899_s15 = smov %s3087_s17 }
 0x36e   : > { %p11_p9 = scmp.ge.s32.totalorder %s14_s19, 6   ;;  %s5900_s16 = smov %s3091_s18 }
 0x36f   : > { %s5901_s17 = smov %s5904_s20  ;;  %s5902_s18 = smov %s5908_s21 }
 0x370   :  { %13 = sbr.rel (!%p11_p9) target bundleno = 3 (0x3), region = 69 }

</bundles_post_ra>
